<compile_context>
chip_gen: v6e
topology: v6e:2x2x1
jax: 0.10.0
libtpu: 0.0.40
codegen_flags: <defaults>
</compile_context>

<pallas_src>
import functools

import jax
import jax.numpy as jnp
from jax.experimental import pallas as pl
from jax.experimental.pallas import tpu as pltpu

TILE_N = 128   # node-row tile
TILE_K = 128   # K block over the aggregation (node-column) reduction axis


# ---------------------------------------------------------------------------
# Pallas kernels
# ---------------------------------------------------------------------------
def _gcn_layer_kernel(a_ref, x_ref, w_ref, shift_ref, o_ref, acc_ref, *, apply_relu):
    """One fused GCN layer row-tile:  o = act( A[i, :] @ (X @ W) + shift ).

    The node dimension of A / X is K-blocked (grid axis 1) so VMEM stays O(tile);
    XW is computed in-kernel per K block (no [N, fout] HBM round trip). All dots
    use bf16 operands with f32 MXU accumulation in the VMEM scratch.
    """
    k = pl.program_id(1)

    @pl.when(k == 0)
    def _():
        acc_ref[...] = jnp.zeros_like(acc_ref)

    xw = jnp.dot(x_ref[...], w_ref[...], preferred_element_type=jnp.float32)
    acc_ref[...] += jnp.dot(a_ref[...], xw.astype(jnp.bfloat16),
                            preferred_element_type=jnp.float32)

    @pl.when(k == pl.num_programs(1) - 1)
    def _():
        y = acc_ref[...] + shift_ref[...]
        if apply_relu:
            y = jnp.maximum(y, 0.0)
        o_ref[...] = y.astype(o_ref.dtype)


def _gcn_last_combine_kernel(a_ref, x_ref, w_ref, shift_ref, g_ref, prev_ref,
                             o_ref, acc_ref):
    """Expert last layer fused with the MoE combine:

        o = prev + gate[:, e] * (A @ (X @ W) + shift)

    `prev` and `o` alias the same HBM buffer (input_output_aliases), so the
    stacked [E, N, C] expert outputs are never written to / re-read from HBM.
    """
    k = pl.program_id(1)

    @pl.when(k == 0)
    def _():
        acc_ref[...] = jnp.zeros_like(acc_ref)

    xw = jnp.dot(x_ref[...], w_ref[...], preferred_element_type=jnp.float32)
    acc_ref[...] += jnp.dot(a_ref[...], xw.astype(jnp.bfloat16),
                            preferred_element_type=jnp.float32)

    @pl.when(k == pl.num_programs(1) - 1)
    def _():
        o_ref[...] = prev_ref[...] + g_ref[...] * (acc_ref[...] + shift_ref[...])


def _gate_softmax_kernel(x_ref, wg_ref, o_ref):
    # o = softmax(x @ w_gate, axis=-1) per node-row tile (kept in f32 for gating fidelity)
    logits = jnp.dot(x_ref[...], wg_ref[...], preferred_element_type=jnp.float32)
    m = jnp.max(logits, axis=-1, keepdims=True)
    e = jnp.exp(logits - m)
    o_ref[...] = e * pl.reciprocal(jnp.sum(e, axis=-1, keepdims=True), approx=False)


# ---------------------------------------------------------------------------
# Pallas wrappers
# ---------------------------------------------------------------------------
def fused_gcn_layer(a, x, w, shift, *, apply_relu, out_dtype=jnp.bfloat16,
                    tn=TILE_N, tk=TILE_K):
    n = a.shape[0]                      # padded (multiple of tn and tk)
    fin, fout = w.shape
    kern = functools.partial(_gcn_layer_kernel, apply_relu=apply_relu)
    return pl.pallas_call(
        kern,
        out_shape=jax.ShapeDtypeStruct((n, fout), out_dtype),
        grid=(n // tn, n // tk),
        in_specs=[pl.BlockSpec((tn, tk), lambda i, k: (i, k)),
                  pl.BlockSpec((tk, fin), lambda i, k: (k, 0)),
                  pl.BlockSpec((fin, fout), lambda i, k: (0, 0)),
                  pl.BlockSpec((1, fout), lambda i, k: (0, 0))],
        out_specs=pl.BlockSpec((tn, fout), lambda i, k: (i, 0)),
        scratch_shapes=[pltpu.VMEM((tn, fout), jnp.float32)],
        compiler_params=pltpu.CompilerParams(
            dimension_semantics=("parallel", "arbitrary")),
    )(a, x, w, shift.reshape(1, fout))


def fused_gcn_last_combine(a, x, w, shift, gate_col, out_prev, *,
                           tn=TILE_N, tk=TILE_K):
    n = a.shape[0]
    fin, fout = w.shape
    return pl.pallas_call(
        _gcn_last_combine_kernel,
        out_shape=jax.ShapeDtypeStruct((n, fout), jnp.float32),
        grid=(n // tn, n // tk),
        in_specs=[pl.BlockSpec((tn, tk), lambda i, k: (i, k)),
                  pl.BlockSpec((tk, fin), lambda i, k: (k, 0)),
                  pl.BlockSpec((fin, fout), lambda i, k: (0, 0)),
                  pl.BlockSpec((1, fout), lambda i, k: (0, 0)),
                  pl.BlockSpec((tn, 1), lambda i, k: (i, 0)),
                  pl.BlockSpec((tn, fout), lambda i, k: (i, 0))],
        out_specs=pl.BlockSpec((tn, fout), lambda i, k: (i, 0)),
        scratch_shapes=[pltpu.VMEM((tn, fout), jnp.float32)],
        input_output_aliases={5: 0},    # accumulate in place into out_prev
        compiler_params=pltpu.CompilerParams(
            dimension_semantics=("parallel", "arbitrary")),
    )(a, x, w, shift.reshape(1, fout), gate_col, out_prev)


def gate_softmax(x, w_gate, tn=TILE_N):
    n, fin = x.shape
    ne = w_gate.shape[1]
    return pl.pallas_call(
        _gate_softmax_kernel,
        out_shape=jax.ShapeDtypeStruct((n, ne), jnp.float32),
        grid=(n // tn,),
        in_specs=[pl.BlockSpec((tn, fin), lambda i: (i, 0)),
                  pl.BlockSpec((fin, ne), lambda i: (0, 0))],
        out_specs=pl.BlockSpec((tn, ne), lambda i: (i, 0)),
        compiler_params=pltpu.CompilerParams(dimension_semantics=("parallel",)),
    )(x, w_gate)


# ---------------------------------------------------------------------------
# Parameters (BN scale folded into W, bias + BN shift folded into `shift`)
# ---------------------------------------------------------------------------
def init_params(key, in_channels, hidden_channels, out_channels,
                num_layers, min_layers):
    num_experts = num_layers - min_layers + 1
    bn_eps = 1e-5

    def glorot(k, fin, fout):
        lim = jnp.sqrt(6.0 / (fin + fout))
        return jax.random.uniform(k, (fin, fout), jnp.float32, -lim, lim)

    experts = []
    for e in range(num_experts):
        depth = min_layers + e
        layers = []
        for layer in range(depth):
            fin = in_channels if layer == 0 else hidden_channels
            fout = out_channels if layer == depth - 1 else hidden_channels
            key, sub = jax.random.split(key)
            w = glorot(sub, fin, fout)
            b = jnp.zeros((fout,), jnp.float32)
            if layer < depth - 1:
                # BatchNorm1d eval with default init (gamma=1, beta=0, mean=0, var=1)
                gamma = jnp.ones((fout,), jnp.float32)
                beta = jnp.zeros((fout,), jnp.float32)
                mean = jnp.zeros((fout,), jnp.float32)
                var = jnp.ones((fout,), jnp.float32)
                scale = gamma / jnp.sqrt(var + bn_eps)
                shift = beta - mean * scale
            else:
                scale = jnp.ones((fout,), jnp.float32)
                shift = jnp.zeros((fout,), jnp.float32)
            # Fold:  (A @ (X W)) * scale + b*scale + shift  ==  A @ (X (W*scale)) + shift'
            w_folded = (w * scale[None, :]).astype(jnp.bfloat16)
            shift_folded = b * scale + shift
            layers.append(dict(w=w_folded, shift=shift_folded))
        experts.append(layers)

    # Gate: module inits w_gate to zeros; use small random values so top-k is exercised.
    key, sub = jax.random.split(key)
    w_gate = 0.1 * jax.random.normal(sub, (in_channels, num_experts), jnp.float32)
    return {"experts": experts, "w_gate": w_gate}


# ---------------------------------------------------------------------------
# Forward (experts scheduled per depth step; combine fused into last layers)
# ---------------------------------------------------------------------------
def _pad_to_multiple(arr, multiple, axes):
    pads = [(0, 0)] * arr.ndim
    need = False
    for ax in axes:
        r = (-arr.shape[ax]) % multiple
        if r:
            need = True
        pads[ax] = (0, r)
    return jnp.pad(arr, pads) if need else arr


def _block_diag_bf16(mats):
    if len(mats) == 1:
        return mats[0]
    rows = sum(m.shape[0] for m in mats)
    cols = sum(m.shape[1] for m in mats)
    out = jnp.zeros((rows, cols), jnp.bfloat16)
    r = c = 0
    for m in mats:
        out = out.at[r:r + m.shape[0], c:c + m.shape[1]].set(m)
        r += m.shape[0]
        c += m.shape[1]
    return out


def _run_experts_combine(experts, a_bf, x_bf, gates, out_channels):
    """All GCN experts on a shared depth-step schedule.

    At each depth step the experts whose current layer is a middle layer are
    batched into ONE fused kernel call (shared-input weight concat at step 0,
    block-diagonal W afterwards) so the adjacency is streamed once per step,
    and the expert finishing at that step fuses its last layer with the
    gate-weighted combine (accumulated into an aliased output buffer).
    """
    num_experts = len(experts)
    depths = [len(layers) for layers in experts]
    n_pad = a_bf.shape[0]

    out = jnp.zeros((n_pad, out_channels), jnp.float32)
    hidden = {e: None for e in range(num_experts)}   # None -> still the shared input x

    for l in range(max(depths)):
        finishing = [e for e in range(num_experts) if depths[e] == l + 1]
        middle = [e for e in range(num_experts) if depths[e] > l + 1]

        for e in finishing:
            lay = experts[e][l]
            h_in = x_bf if hidden[e] is None else hidden[e]
            out = fused_gcn_last_combine(a_bf, h_in, lay["w"], lay["shift"],
                                         gates[:, e:e + 1], out)

        if middle:
            lays = [experts[e][l] for e in middle]
            inputs = [x_bf if hidden[e] is None else hidden[e] for e in middle]
            if all(inp is x_bf for inp in inputs):
                h_in = x_bf
                w_cat = jnp.concatenate([lay["w"] for lay in lays], axis=1)
            else:
                h_in = inputs[0] if len(inputs) == 1 else jnp.concatenate(inputs, axis=1)
                w_cat = _block_diag_bf16([lay["w"] for lay in lays])
            shift_cat = jnp.concatenate([lay["shift"] for lay in lays])
            h_cat = fused_gcn_layer(a_bf, h_in, w_cat, shift_cat,
                                    apply_relu=True, out_dtype=jnp.bfloat16)
            off = 0
            for e, lay in zip(middle, lays):
                fo = lay["w"].shape[1]
                hidden[e] = h_cat[:, off:off + fo]
                off += fo
    return out


def cv_squared(v, eps=1e-10):
    if v.shape[0] == 1:
        return jnp.float32(0.0)
    return jnp.var(v, ddof=1) / (jnp.mean(v) ** 2 + eps)


def gcn_ogb_moe_forward(params, x, a_norm, *, top_k, coef):
    n = x.shape[0]
    num_experts = params["w_gate"].shape[1]
    out_channels = params["experts"][0][-1]["w"].shape[1]

    # Pad node count to the tile multiple (padded rows/cols of A are zero).
    x_pad = _pad_to_multiple(x, TILE_N, axes=(0,))
    a_pad = _pad_to_multiple(a_norm, TILE_N, axes=(0, 1))
    a_bf = a_pad.astype(jnp.bfloat16)
    x_bf = x_pad.astype(jnp.bfloat16)

    # --- noisy_top_k_gating (eval: no noise); softmax logits via Pallas ---
    probs = gate_softmax(x_pad, params["w_gate"])                 # [n_pad, E]
    kk = min(top_k + 1, num_experts)
    top_vals, top_idx = jax.lax.top_k(probs, kk)
    topk_vals = top_vals[:, :top_k]
    topk_idx = top_idx[:, :top_k]
    gate_vals = topk_vals / (jnp.sum(topk_vals, axis=1, keepdims=True) + 1e-6)
    gates = jnp.zeros_like(probs)
    for j in range(top_k):
        gates = gates + jax.nn.one_hot(topk_idx[:, j], num_experts,
                                       dtype=jnp.float32) * gate_vals[:, j:j + 1]

    gates_real = gates[:n]
    importance = jnp.sum(gates_real, axis=0)
    load = jnp.sum((gates_real > 0).astype(jnp.float32), axis=0)  # _gates_to_load (eval)
    loss = coef * (cv_squared(importance) + cv_squared(load))

    # --- experts + fused gate-weighted combine ---
    out_pad = _run_experts_combine(params["experts"], a_bf, x_bf, gates, out_channels)
    return out_pad[:n], loss, gates_real, probs[:n]


# ---------------------------------------------------------------------------
# Pure-JAX reference (mirrors the kernel arithmetic: bf16 operands, f32 accum)
# ---------------------------------------------------------------------------
def _reference_expert_combine(params, x, a, gates):
    a_bf = a.astype(jnp.bfloat16)
    outs = []
    for layers in params["experts"]:
        h = x.astype(jnp.bfloat16)
        for li, lay in enumerate(layers):
            xw = jnp.dot(h, lay["w"],
                         preferred_element_type=jnp.float32).astype(jnp.bfloat16)
            y = jnp.dot(a_bf, xw, preferred_element_type=jnp.float32) + lay["shift"]
            if li < len(layers) - 1:
                h = jnp.maximum(y, 0.0).astype(jnp.bfloat16)
            else:
                h = y
        outs.append(h)
    stacked = jnp.stack(outs, axis=0)                     # [E, N, C] f32
    return jnp.einsum("ne,enc->nc", gates, stacked)


# ---------------------------------------------------------------------------
if __name__ == "__main__":
    N = 200                 # not a multiple of 128 -> exercises the padding path
    in_channels = 8
    hidden_channels = 32
    out_channels = 16
    num_layers = 4
    min_layers = 2
    top_k = 2
    coef = 1e-2

    key = jax.random.PRNGKey(0)
    key, kx, ka, kp = jax.random.split(key, 4)

    x = jax.random.normal(kx, (N, in_channels), jnp.float32)

    # Random symmetric adjacency with self loops, GCN-normalized.
    logits = jax.random.uniform(ka, (N, N))
    adj = (logits + logits.T > 1.6).astype(jnp.float32)
    adj = jnp.minimum(adj + jnp.eye(N, dtype=jnp.float32), 1.0)
    deg = jnp.sum(adj, axis=1)
    d_inv_sqrt = 1.0 / jnp.sqrt(deg)
    a_norm = adj * d_inv_sqrt[:, None] * d_inv_sqrt[None, :]

    params = init_params(kp, in_channels, hidden_channels, out_channels,
                         num_layers, min_layers)

    fwd = jax.jit(functools.partial(gcn_ogb_moe_forward, top_k=top_k, coef=coef))
    y, lb_loss, gates, probs = fwd(params, x, a_norm)
    y = jax.block_until_ready(y)

    # --- sanity / correctness checks ---
    assert y.shape == (N, out_channels)
    assert bool(jnp.all(jnp.isfinite(y))) and bool(jnp.isfinite(lb_loss))

    probs_ref = jax.nn.softmax(x @ params["w_gate"], axis=-1)
    assert float(jnp.max(jnp.abs(probs - probs_ref))) < 5e-2

    y_ref = _reference_expert_combine(params, x, a_norm, gates)
    assert float(jnp.max(jnp.abs(y - y_ref))) < 1e-2

    print("KERNEL_OK")
</pallas_src>

<mosaic_0001>
module attributes {stable_mosaic.version = 11 : i64} {
  func.func @_gate_softmax_kernel(%arg0: i32, %arg1: memref<128x8xf32, #tpu.memory_space<vmem>>, %arg2: memref<8x3xf32, #tpu.memory_space<vmem>>, %arg3: memref<128x3xf32, #tpu.memory_space<vmem>>) attributes {dimension_semantics = [#tpu.dimension_semantics<parallel>], iteration_bounds = array<i64: 2>, scalar_prefetch = 0 : i64, scratch_operands = 0 : i64, tpu.core_type = #tpu.core_type<tc>, window_params = [{transform_indices = @transform_0, window_bounds = array<i64: 128, 8>}, {pipeline_mode = #tpu.pipeline_mode<synchronous>, transform_indices = @transform_1, window_bounds = array<i64: 8, 3>}, {transform_indices = @transform_2, window_bounds = array<i64: 128, 3>}]} {
    %c0 = arith.constant 0 : index
    %c0_0 = arith.constant 0 : index
    %0 = vector.load %arg1[%c0, %c0_0] : memref<128x8xf32, #tpu.memory_space<vmem>>, vector<128x8xf32>
    %c0_1 = arith.constant 0 : index
    %c0_2 = arith.constant 0 : index
    %1 = vector.load %arg2[%c0_1, %c0_2] : memref<8x3xf32, #tpu.memory_space<vmem>>, vector<8x3xf32>
    %cst = arith.constant dense<0.000000e+00> : vector<128x3xf32>
    %2 = tpu.matmul %0, %1, %cst {dimension_numbers = #tpu.dot_dimension_numbers<[1], [0], [0], [1], [0, 0, 1, 1], [], []>} : vector<128x8xf32>, vector<8x3xf32>, vector<128x3xf32> -> vector<128x3xf32>
    %cst_3 = arith.constant dense<0xFF800000> : vector<128xf32>
    %3 = vector.multi_reduction <maximumf>, %2, %cst_3 [1] : vector<128x3xf32> to vector<128xf32>
    %4 = vector.shape_cast %3 : vector<128xf32> to vector<128x1xf32>
    %5 = vector.broadcast %4 : vector<128x1xf32> to vector<128x3xf32>
    %6 = arith.subf %2, %5 : vector<128x3xf32>
    %7 = math.exp %6 : vector<128x3xf32>
    %cst_4 = arith.constant dense<0.000000e+00> : vector<128xf32>
    %8 = vector.multi_reduction <add>, %7, %cst_4 [1] : vector<128x3xf32> to vector<128xf32>
    %9 = vector.shape_cast %8 : vector<128xf32> to vector<128x1xf32>
    %10 = tpu.reciprocal %9 : vector<128x1xf32> -> vector<128x1xf32>
    %11 = vector.broadcast %10 : vector<128x1xf32> to vector<128x3xf32>
    %12 = arith.mulf %7, %11 : vector<128x3xf32>
    %c0_5 = arith.constant 0 : index
    %c0_6 = arith.constant 0 : index
    %13 = vector.load %arg3[%c0_5, %c0_6] : memref<128x3xf32, #tpu.memory_space<vmem>>, vector<128x3xf32>
    tpu.vector_store %arg3[%c0_5, %c0_6], %12 {strides = array<i32>} : memref<128x3xf32, #tpu.memory_space<vmem>>, vector<128x3xf32>,
    return
  }
  func.func @transform_0(%arg0: i32) -> (i32, i32) {
    %c0_i32 = arith.constant 0 : i32
    %c0_i32_0 = arith.constant 0 : i32
    return %arg0, %c0_i32 : i32, i32
  }
  func.func @transform_1(%arg0: i32) -> (i32, i32) {
    %c0_i32 = arith.constant 0 : i32
    %c0_i32_0 = arith.constant 0 : i32
    %c0_i32_1 = arith.constant 0 : i32
    return %c0_i32, %c0_i32_0 : i32, i32
  }
  func.func @transform_2(%arg0: i32) -> (i32, i32) {
    %c0_i32 = arith.constant 0 : i32
    %c0_i32_0 = arith.constant 0 : i32
    return %arg0, %c0_i32 : i32, i32
  }
}

module attributes {stable_mosaic.version = 11 : i64} {
  func.func @_gcn_layer_kernel(%arg0: i32, %arg1: i32, %arg2: memref<128x128xbf16, #tpu.memory_space<vmem>>, %arg3: memref<128x8xbf16, #tpu.memory_space<vmem>>, %arg4: memref<8x96xbf16, #tpu.memory_space<vmem>>, %arg5: memref<1x96xf32, #tpu.memory_space<vmem>>, %arg6: memref<128x96xbf16, #tpu.memory_space<vmem>>, %arg7: memref<128x96xf32, #tpu.memory_space<vmem>>) attributes {dimension_semantics = [#tpu.dimension_semantics<parallel>, #tpu.dimension_semantics<arbitrary>], iteration_bounds = array<i64: 2, 2>, scalar_prefetch = 0 : i64, scratch_operands = 1 : i64, tpu.core_type = #tpu.core_type<tc>, window_params = [{transform_indices = @transform_0, window_bounds = array<i64: 128, 128>}, {transform_indices = @transform_1, window_bounds = array<i64: 128, 8>}, {pipeline_mode = #tpu.pipeline_mode<synchronous>, transform_indices = @transform_2, window_bounds = array<i64: 8, 96>}, {pipeline_mode = #tpu.pipeline_mode<synchronous>, transform_indices = @transform_3, window_bounds = array<i64: 1, 96>}, {transform_indices = @transform_4, window_bounds = array<i64: 128, 96>}]} {
    %c0_i32 = arith.constant 0 : i32
    %0 = arith.cmpi eq, %arg1, %c0_i32 : i32
    %1 = arith.extui %0 : i1 to i32
    %c0_i32_0 = arith.constant 0 : i32
    %2 = arith.cmpi ne, %1, %c0_i32_0 : i32
    scf.if %2 {
      %cst_12 = arith.constant 0.000000e+00 : f32
      %15 = vector.broadcast %cst_12 : f32 to vector<128x96xf32>
      %c0_13 = arith.constant 0 : index
      %c0_14 = arith.constant 0 : index
      %16 = vector.load %arg7[%c0_13, %c0_14] : memref<128x96xf32, #tpu.memory_space<vmem>>, vector<128x96xf32>
      tpu.vector_store %arg7[%c0_13, %c0_14], %15 {strides = array<i32>} : memref<128x96xf32, #tpu.memory_space<vmem>>, vector<128x96xf32>,
    } else {
    }
    %c0 = arith.constant 0 : index
    %c0_1 = arith.constant 0 : index
    %3 = vector.load %arg3[%c0, %c0_1] : memref<128x8xbf16, #tpu.memory_space<vmem>>, vector<128x8xbf16>
    %c0_2 = arith.constant 0 : index
    %c0_3 = arith.constant 0 : index
    %4 = vector.load %arg4[%c0_2, %c0_3] : memref<8x96xbf16, #tpu.memory_space<vmem>>, vector<8x96xbf16>
    %cst = arith.constant dense<0.000000e+00> : vector<128x96xf32>
    %5 = tpu.matmul %3, %4, %cst {dimension_numbers = #tpu.dot_dimension_numbers<[1], [0], [0], [1], [0, 0, 1, 1], [], []>} : vector<128x8xbf16>, vector<8x96xbf16>, vector<128x96xf32> -> vector<128x96xf32>
    %c0_4 = arith.constant 0 : index
    %c0_5 = arith.constant 0 : index
    %6 = vector.load %arg7[%c0_4, %c0_5] : memref<128x96xf32, #tpu.memory_space<vmem>>, vector<128x96xf32>
    %c0_6 = arith.constant 0 : index
    %c0_7 = arith.constant 0 : index
    %7 = vector.load %arg2[%c0_6, %c0_7] : memref<128x128xbf16, #tpu.memory_space<vmem>>, vector<128x128xbf16>
    %8 = arith.truncf %5 : vector<128x96xf32> to vector<128x96xbf16>
    %cst_8 = arith.constant dense<0.000000e+00> : vector<128x96xf32>
    %9 = tpu.matmul %7, %8, %cst_8 {dimension_numbers = #tpu.dot_dimension_numbers<[1], [0], [0], [1], [0, 0, 1, 1], [], []>} : vector<128x128xbf16>, vector<128x96xbf16>, vector<128x96xf32> -> vector<128x96xf32>
    %10 = arith.addf %6, %9 : vector<128x96xf32>
    %c0_9 = arith.constant 0 : index
    %c0_10 = arith.constant 0 : index
    %11 = vector.load %arg7[%c0_9, %c0_10] : memref<128x96xf32, #tpu.memory_space<vmem>>, vector<128x96xf32>
    tpu.vector_store %arg7[%c0_9, %c0_10], %10 {strides = array<i32>} : memref<128x96xf32, #tpu.memory_space<vmem>>, vector<128x96xf32>,
    %c1_i32 = arith.constant 1 : i32
    %12 = arith.cmpi eq, %arg1, %c1_i32 : i32
    %13 = arith.extui %12 : i1 to i32
    %c0_i32_11 = arith.constant 0 : i32
    %14 = arith.cmpi ne, %13, %c0_i32_11 : i32
    scf.if %14 {
      %c0_12 = arith.constant 0 : index
      %c0_13 = arith.constant 0 : index
      %15 = vector.load %arg7[%c0_12, %c0_13] : memref<128x96xf32, #tpu.memory_space<vmem>>, vector<128x96xf32>
      %c0_14 = arith.constant 0 : index
      %c0_15 = arith.constant 0 : index
      %16 = vector.load %arg5[%c0_14, %c0_15] : memref<1x96xf32, #tpu.memory_space<vmem>>, vector<1x96xf32>
      %17 = vector.broadcast %16 : vector<1x96xf32> to vector<128x96xf32>
      %18 = arith.addf %15, %17 : vector<128x96xf32>
      %cst_16 = arith.constant 0.000000e+00 : f32
      %19 = vector.broadcast %cst_16 : f32 to vector<128x96xf32>
      %20 = arith.maximumf %18, %19 : vector<128x96xf32>
      %21 = arith.truncf %20 : vector<128x96xf32> to vector<128x96xbf16>
      %c0_17 = arith.constant 0 : index
      %c0_18 = arith.constant 0 : index
      %22 = vector.load %arg6[%c0_17, %c0_18] : memref<128x96xbf16, #tpu.memory_space<vmem>>, vector<128x96xbf16>
      tpu.vector_store %arg6[%c0_17, %c0_18], %21 {strides = array<i32>} : memref<128x96xbf16, #tpu.memory_space<vmem>>, vector<128x96xbf16>,
    } else {
    }
    return
  }
  func.func @transform_0(%arg0: i32, %arg1: i32) -> (i32, i32) {
    %c0_i32 = arith.constant 0 : i32
    return %arg0, %arg1 : i32, i32
  }
  func.func @transform_1(%arg0: i32, %arg1: i32) -> (i32, i32) {
    %c0_i32 = arith.constant 0 : i32
    %c0_i32_0 = arith.constant 0 : i32
    return %arg1, %c0_i32 : i32, i32
  }
  func.func @transform_2(%arg0: i32, %arg1: i32) -> (i32, i32) {
    %c0_i32 = arith.constant 0 : i32
    %c0_i32_0 = arith.constant 0 : i32
    %c0_i32_1 = arith.constant 0 : i32
    return %c0_i32, %c0_i32_0 : i32, i32
  }
  func.func @transform_3(%arg0: i32, %arg1: i32) -> (i32, i32) {
    %c0_i32 = arith.constant 0 : i32
    %c0_i32_0 = arith.constant 0 : i32
    %c0_i32_1 = arith.constant 0 : i32
    return %c0_i32, %c0_i32_0 : i32, i32
  }
  func.func @transform_4(%arg0: i32, %arg1: i32) -> (i32, i32) {
    %c0_i32 = arith.constant 0 : i32
    %c0_i32_0 = arith.constant 0 : i32
    return %arg0, %c0_i32 : i32, i32
  }
}

module attributes {stable_mosaic.version = 11 : i64} {
  func.func @_gcn_layer_kernel(%arg0: i32, %arg1: i32, %arg2: memref<128x128xbf16, #tpu.memory_space<vmem>>, %arg3: memref<128x64xbf16, #tpu.memory_space<vmem>>, %arg4: memref<64x64xbf16, #tpu.memory_space<vmem>>, %arg5: memref<1x64xf32, #tpu.memory_space<vmem>>, %arg6: memref<128x64xbf16, #tpu.memory_space<vmem>>, %arg7: memref<128x64xf32, #tpu.memory_space<vmem>>) attributes {dimension_semantics = [#tpu.dimension_semantics<parallel>, #tpu.dimension_semantics<arbitrary>], iteration_bounds = array<i64: 2, 2>, scalar_prefetch = 0 : i64, scratch_operands = 1 : i64, tpu.core_type = #tpu.core_type<tc>, window_params = [{transform_indices = @transform_0, window_bounds = array<i64: 128, 128>}, {transform_indices = @transform_1, window_bounds = array<i64: 128, 64>}, {pipeline_mode = #tpu.pipeline_mode<synchronous>, transform_indices = @transform_2, window_bounds = array<i64: 64, 64>}, {pipeline_mode = #tpu.pipeline_mode<synchronous>, transform_indices = @transform_3, window_bounds = array<i64: 1, 64>}, {transform_indices = @transform_4, window_bounds = array<i64: 128, 64>}]} {
    %c0_i32 = arith.constant 0 : i32
    %0 = arith.cmpi eq, %arg1, %c0_i32 : i32
    %1 = arith.extui %0 : i1 to i32
    %c0_i32_0 = arith.constant 0 : i32
    %2 = arith.cmpi ne, %1, %c0_i32_0 : i32
    scf.if %2 {
      %cst_12 = arith.constant 0.000000e+00 : f32
      %15 = vector.broadcast %cst_12 : f32 to vector<128x64xf32>
      %c0_13 = arith.constant 0 : index
      %c0_14 = arith.constant 0 : index
      %16 = vector.load %arg7[%c0_13, %c0_14] : memref<128x64xf32, #tpu.memory_space<vmem>>, vector<128x64xf32>
      tpu.vector_store %arg7[%c0_13, %c0_14], %15 {strides = array<i32>} : memref<128x64xf32, #tpu.memory_space<vmem>>, vector<128x64xf32>,
    } else {
    }
    %c0 = arith.constant 0 : index
    %c0_1 = arith.constant 0 : index
    %3 = vector.load %arg3[%c0, %c0_1] : memref<128x64xbf16, #tpu.memory_space<vmem>>, vector<128x64xbf16>
    %c0_2 = arith.constant 0 : index
    %c0_3 = arith.constant 0 : index
    %4 = vector.load %arg4[%c0_2, %c0_3] : memref<64x64xbf16, #tpu.memory_space<vmem>>, vector<64x64xbf16>
    %cst = arith.constant dense<0.000000e+00> : vector<128x64xf32>
    %5 = tpu.matmul %3, %4, %cst {dimension_numbers = #tpu.dot_dimension_numbers<[1], [0], [0], [1], [0, 0, 1, 1], [], []>} : vector<128x64xbf16>, vector<64x64xbf16>, vector<128x64xf32> -> vector<128x64xf32>
    %c0_4 = arith.constant 0 : index
    %c0_5 = arith.constant 0 : index
    %6 = vector.load %arg7[%c0_4, %c0_5] : memref<128x64xf32, #tpu.memory_space<vmem>>, vector<128x64xf32>
    %c0_6 = arith.constant 0 : index
    %c0_7 = arith.constant 0 : index
    %7 = vector.load %arg2[%c0_6, %c0_7] : memref<128x128xbf16, #tpu.memory_space<vmem>>, vector<128x128xbf16>
    %8 = arith.truncf %5 : vector<128x64xf32> to vector<128x64xbf16>
    %cst_8 = arith.constant dense<0.000000e+00> : vector<128x64xf32>
    %9 = tpu.matmul %7, %8, %cst_8 {dimension_numbers = #tpu.dot_dimension_numbers<[1], [0], [0], [1], [0, 0, 1, 1], [], []>} : vector<128x128xbf16>, vector<128x64xbf16>, vector<128x64xf32> -> vector<128x64xf32>
    %10 = arith.addf %6, %9 : vector<128x64xf32>
    %c0_9 = arith.constant 0 : index
    %c0_10 = arith.constant 0 : index
    %11 = vector.load %arg7[%c0_9, %c0_10] : memref<128x64xf32, #tpu.memory_space<vmem>>, vector<128x64xf32>
    tpu.vector_store %arg7[%c0_9, %c0_10], %10 {strides = array<i32>} : memref<128x64xf32, #tpu.memory_space<vmem>>, vector<128x64xf32>,
    %c1_i32 = arith.constant 1 : i32
    %12 = arith.cmpi eq, %arg1, %c1_i32 : i32
    %13 = arith.extui %12 : i1 to i32
    %c0_i32_11 = arith.constant 0 : i32
    %14 = arith.cmpi ne, %13, %c0_i32_11 : i32
    scf.if %14 {
      %c0_12 = arith.constant 0 : index
      %c0_13 = arith.constant 0 : index
      %15 = vector.load %arg7[%c0_12, %c0_13] : memref<128x64xf32, #tpu.memory_space<vmem>>, vector<128x64xf32>
      %c0_14 = arith.constant 0 : index
      %c0_15 = arith.constant 0 : index
      %16 = vector.load %arg5[%c0_14, %c0_15] : memref<1x64xf32, #tpu.memory_space<vmem>>, vector<1x64xf32>
      %17 = vector.broadcast %16 : vector<1x64xf32> to vector<128x64xf32>
      %18 = arith.addf %15, %17 : vector<128x64xf32>
      %cst_16 = arith.constant 0.000000e+00 : f32
      %19 = vector.broadcast %cst_16 : f32 to vector<128x64xf32>
      %20 = arith.maximumf %18, %19 : vector<128x64xf32>
      %21 = arith.truncf %20 : vector<128x64xf32> to vector<128x64xbf16>
      %c0_17 = arith.constant 0 : index
      %c0_18 = arith.constant 0 : index
      %22 = vector.load %arg6[%c0_17, %c0_18] : memref<128x64xbf16, #tpu.memory_space<vmem>>, vector<128x64xbf16>
      tpu.vector_store %arg6[%c0_17, %c0_18], %21 {strides = array<i32>} : memref<128x64xbf16, #tpu.memory_space<vmem>>, vector<128x64xbf16>,
    } else {
    }
    return
  }
  func.func @transform_0(%arg0: i32, %arg1: i32) -> (i32, i32) {
    %c0_i32 = arith.constant 0 : i32
    return %arg0, %arg1 : i32, i32
  }
  func.func @transform_1(%arg0: i32, %arg1: i32) -> (i32, i32) {
    %c0_i32 = arith.constant 0 : i32
    %c0_i32_0 = arith.constant 0 : i32
    return %arg1, %c0_i32 : i32, i32
  }
  func.func @transform_2(%arg0: i32, %arg1: i32) -> (i32, i32) {
    %c0_i32 = arith.constant 0 : i32
    %c0_i32_0 = arith.constant 0 : i32
    %c0_i32_1 = arith.constant 0 : i32
    return %c0_i32, %c0_i32_0 : i32, i32
  }
  func.func @transform_3(%arg0: i32, %arg1: i32) -> (i32, i32) {
    %c0_i32 = arith.constant 0 : i32
    %c0_i32_0 = arith.constant 0 : i32
    %c0_i32_1 = arith.constant 0 : i32
    return %c0_i32, %c0_i32_0 : i32, i32
  }
  func.func @transform_4(%arg0: i32, %arg1: i32) -> (i32, i32) {
    %c0_i32 = arith.constant 0 : i32
    %c0_i32_0 = arith.constant 0 : i32
    return %arg0, %c0_i32 : i32, i32
  }
}

module attributes {stable_mosaic.version = 11 : i64} {
  func.func @_gcn_layer_kernel(%arg0: i32, %arg1: i32, %arg2: memref<128x128xbf16, #tpu.memory_space<vmem>>, %arg3: memref<128x32xbf16, #tpu.memory_space<vmem>>, %arg4: memref<32x32xbf16, #tpu.memory_space<vmem>>, %arg5: memref<1x32xf32, #tpu.memory_space<vmem>>, %arg6: memref<128x32xbf16, #tpu.memory_space<vmem>>, %arg7: memref<128x32xf32, #tpu.memory_space<vmem>>) attributes {dimension_semantics = [#tpu.dimension_semantics<parallel>, #tpu.dimension_semantics<arbitrary>], iteration_bounds = array<i64: 2, 2>, scalar_prefetch = 0 : i64, scratch_operands = 1 : i64, tpu.core_type = #tpu.core_type<tc>, window_params = [{transform_indices = @transform_0, window_bounds = array<i64: 128, 128>}, {transform_indices = @transform_1, window_bounds = array<i64: 128, 32>}, {pipeline_mode = #tpu.pipeline_mode<synchronous>, transform_indices = @transform_2, window_bounds = array<i64: 32, 32>}, {pipeline_mode = #tpu.pipeline_mode<synchronous>, transform_indices = @transform_3, window_bounds = array<i64: 1, 32>}, {transform_indices = @transform_4, window_bounds = array<i64: 128, 32>}]} {
    %c0_i32 = arith.constant 0 : i32
    %0 = arith.cmpi eq, %arg1, %c0_i32 : i32
    %1 = arith.extui %0 : i1 to i32
    %c0_i32_0 = arith.constant 0 : i32
    %2 = arith.cmpi ne, %1, %c0_i32_0 : i32
    scf.if %2 {
      %cst_12 = arith.constant 0.000000e+00 : f32
      %15 = vector.broadcast %cst_12 : f32 to vector<128x32xf32>
      %c0_13 = arith.constant 0 : index
      %c0_14 = arith.constant 0 : index
      %16 = vector.load %arg7[%c0_13, %c0_14] : memref<128x32xf32, #tpu.memory_space<vmem>>, vector<128x32xf32>
      tpu.vector_store %arg7[%c0_13, %c0_14], %15 {strides = array<i32>} : memref<128x32xf32, #tpu.memory_space<vmem>>, vector<128x32xf32>,
    } else {
    }
    %c0 = arith.constant 0 : index
    %c0_1 = arith.constant 0 : index
    %3 = vector.load %arg3[%c0, %c0_1] : memref<128x32xbf16, #tpu.memory_space<vmem>>, vector<128x32xbf16>
    %c0_2 = arith.constant 0 : index
    %c0_3 = arith.constant 0 : index
    %4 = vector.load %arg4[%c0_2, %c0_3] : memref<32x32xbf16, #tpu.memory_space<vmem>>, vector<32x32xbf16>
    %cst = arith.constant dense<0.000000e+00> : vector<128x32xf32>
    %5 = tpu.matmul %3, %4, %cst {dimension_numbers = #tpu.dot_dimension_numbers<[1], [0], [0], [1], [0, 0, 1, 1], [], []>} : vector<128x32xbf16>, vector<32x32xbf16>, vector<128x32xf32> -> vector<128x32xf32>
    %c0_4 = arith.constant 0 : index
    %c0_5 = arith.constant 0 : index
    %6 = vector.load %arg7[%c0_4, %c0_5] : memref<128x32xf32, #tpu.memory_space<vmem>>, vector<128x32xf32>
    %c0_6 = arith.constant 0 : index
    %c0_7 = arith.constant 0 : index
    %7 = vector.load %arg2[%c0_6, %c0_7] : memref<128x128xbf16, #tpu.memory_space<vmem>>, vector<128x128xbf16>
    %8 = arith.truncf %5 : vector<128x32xf32> to vector<128x32xbf16>
    %cst_8 = arith.constant dense<0.000000e+00> : vector<128x32xf32>
    %9 = tpu.matmul %7, %8, %cst_8 {dimension_numbers = #tpu.dot_dimension_numbers<[1], [0], [0], [1], [0, 0, 1, 1], [], []>} : vector<128x128xbf16>, vector<128x32xbf16>, vector<128x32xf32> -> vector<128x32xf32>
    %10 = arith.addf %6, %9 : vector<128x32xf32>
    %c0_9 = arith.constant 0 : index
    %c0_10 = arith.constant 0 : index
    %11 = vector.load %arg7[%c0_9, %c0_10] : memref<128x32xf32, #tpu.memory_space<vmem>>, vector<128x32xf32>
    tpu.vector_store %arg7[%c0_9, %c0_10], %10 {strides = array<i32>} : memref<128x32xf32, #tpu.memory_space<vmem>>, vector<128x32xf32>,
    %c1_i32 = arith.constant 1 : i32
    %12 = arith.cmpi eq, %arg1, %c1_i32 : i32
    %13 = arith.extui %12 : i1 to i32
    %c0_i32_11 = arith.constant 0 : i32
    %14 = arith.cmpi ne, %13, %c0_i32_11 : i32
    scf.if %14 {
      %c0_12 = arith.constant 0 : index
      %c0_13 = arith.constant 0 : index
      %15 = vector.load %arg7[%c0_12, %c0_13] : memref<128x32xf32, #tpu.memory_space<vmem>>, vector<128x32xf32>
      %c0_14 = arith.constant 0 : index
      %c0_15 = arith.constant 0 : index
      %16 = vector.load %arg5[%c0_14, %c0_15] : memref<1x32xf32, #tpu.memory_space<vmem>>, vector<1x32xf32>
      %17 = vector.broadcast %16 : vector<1x32xf32> to vector<128x32xf32>
      %18 = arith.addf %15, %17 : vector<128x32xf32>
      %cst_16 = arith.constant 0.000000e+00 : f32
      %19 = vector.broadcast %cst_16 : f32 to vector<128x32xf32>
      %20 = arith.maximumf %18, %19 : vector<128x32xf32>
      %21 = arith.truncf %20 : vector<128x32xf32> to vector<128x32xbf16>
      %c0_17 = arith.constant 0 : index
      %c0_18 = arith.constant 0 : index
      %22 = vector.load %arg6[%c0_17, %c0_18] : memref<128x32xbf16, #tpu.memory_space<vmem>>, vector<128x32xbf16>
      tpu.vector_store %arg6[%c0_17, %c0_18], %21 {strides = array<i32>} : memref<128x32xbf16, #tpu.memory_space<vmem>>, vector<128x32xbf16>,
    } else {
    }
    return
  }
  func.func @transform_0(%arg0: i32, %arg1: i32) -> (i32, i32) {
    %c0_i32 = arith.constant 0 : i32
    return %arg0, %arg1 : i32, i32
  }
  func.func @transform_1(%arg0: i32, %arg1: i32) -> (i32, i32) {
    %c0_i32 = arith.constant 0 : i32
    %c0_i32_0 = arith.constant 0 : i32
    return %arg1, %c0_i32 : i32, i32
  }
  func.func @transform_2(%arg0: i32, %arg1: i32) -> (i32, i32) {
    %c0_i32 = arith.constant 0 : i32
    %c0_i32_0 = arith.constant 0 : i32
    %c0_i32_1 = arith.constant 0 : i32
    return %c0_i32, %c0_i32_0 : i32, i32
  }
  func.func @transform_3(%arg0: i32, %arg1: i32) -> (i32, i32) {
    %c0_i32 = arith.constant 0 : i32
    %c0_i32_0 = arith.constant 0 : i32
    %c0_i32_1 = arith.constant 0 : i32
    return %c0_i32, %c0_i32_0 : i32, i32
  }
  func.func @transform_4(%arg0: i32, %arg1: i32) -> (i32, i32) {
    %c0_i32 = arith.constant 0 : i32
    %c0_i32_0 = arith.constant 0 : i32
    return %arg0, %c0_i32 : i32, i32
  }
}

module attributes {stable_mosaic.version = 11 : i64} {
  func.func @_gcn_last_combine_kernel(%arg0: i32, %arg1: i32, %arg2: memref<128x128xbf16, #tpu.memory_space<vmem>>, %arg3: memref<128x32xbf16, #tpu.memory_space<vmem>>, %arg4: memref<32x16xbf16, #tpu.memory_space<vmem>>, %arg5: memref<1x16xf32, #tpu.memory_space<vmem>>, %arg6: memref<128x1xf32, #tpu.memory_space<vmem>>, %arg7: memref<128x16xf32, #tpu.memory_space<vmem>>, %arg8: memref<128x16xf32, #tpu.memory_space<vmem>>, %arg9: memref<128x16xf32, #tpu.memory_space<vmem>>) attributes {dimension_semantics = [#tpu.dimension_semantics<parallel>, #tpu.dimension_semantics<arbitrary>], iteration_bounds = array<i64: 2, 2>, scalar_prefetch = 0 : i64, scratch_operands = 1 : i64, tpu.core_type = #tpu.core_type<tc>, window_params = [{transform_indices = @transform_0, window_bounds = array<i64: 128, 128>}, {transform_indices = @transform_1, window_bounds = array<i64: 128, 32>}, {pipeline_mode = #tpu.pipeline_mode<synchronous>, transform_indices = @transform_2, window_bounds = array<i64: 32, 16>}, {pipeline_mode = #tpu.pipeline_mode<synchronous>, transform_indices = @transform_3, window_bounds = array<i64: 1, 16>}, {transform_indices = @transform_4, window_bounds = array<i64: 128, 1>}, {transform_indices = @transform_5, window_bounds = array<i64: 128, 16>}, {transform_indices = @transform_6, window_bounds = array<i64: 128, 16>}]} {
    %c0_i32 = arith.constant 0 : i32
    %0 = arith.cmpi eq, %arg1, %c0_i32 : i32
    %1 = arith.extui %0 : i1 to i32
    %c0_i32_0 = arith.constant 0 : i32
    %2 = arith.cmpi ne, %1, %c0_i32_0 : i32
    scf.if %2 {
      %cst_12 = arith.constant 0.000000e+00 : f32
      %15 = vector.broadcast %cst_12 : f32 to vector<128x16xf32>
      %c0_13 = arith.constant 0 : index
      %c0_14 = arith.constant 0 : index
      %16 = vector.load %arg9[%c0_13, %c0_14] : memref<128x16xf32, #tpu.memory_space<vmem>>, vector<128x16xf32>
      tpu.vector_store %arg9[%c0_13, %c0_14], %15 {strides = array<i32>} : memref<128x16xf32, #tpu.memory_space<vmem>>, vector<128x16xf32>,
    } else {
    }
    %c0 = arith.constant 0 : index
    %c0_1 = arith.constant 0 : index
    %3 = vector.load %arg3[%c0, %c0_1] : memref<128x32xbf16, #tpu.memory_space<vmem>>, vector<128x32xbf16>
    %c0_2 = arith.constant 0 : index
    %c0_3 = arith.constant 0 : index
    %4 = vector.load %arg4[%c0_2, %c0_3] : memref<32x16xbf16, #tpu.memory_space<vmem>>, vector<32x16xbf16>
    %cst = arith.constant dense<0.000000e+00> : vector<128x16xf32>
    %5 = tpu.matmul %3, %4, %cst {dimension_numbers = #tpu.dot_dimension_numbers<[1], [0], [0], [1], [0, 0, 1, 1], [], []>} : vector<128x32xbf16>, vector<32x16xbf16>, vector<128x16xf32> -> vector<128x16xf32>
    %c0_4 = arith.constant 0 : index
    %c0_5 = arith.constant 0 : index
    %6 = vector.load %arg9[%c0_4, %c0_5] : memref<128x16xf32, #tpu.memory_space<vmem>>, vector<128x16xf32>
    %c0_6 = arith.constant 0 : index
    %c0_7 = arith.constant 0 : index
    %7 = vector.load %arg2[%c0_6, %c0_7] : memref<128x128xbf16, #tpu.memory_space<vmem>>, vector<128x128xbf16>
    %8 = arith.truncf %5 : vector<128x16xf32> to vector<128x16xbf16>
    %cst_8 = arith.constant dense<0.000000e+00> : vector<128x16xf32>
    %9 = tpu.matmul %7, %8, %cst_8 {dimension_numbers = #tpu.dot_dimension_numbers<[1], [0], [0], [1], [0, 0, 1, 1], [], []>} : vector<128x128xbf16>, vector<128x16xbf16>, vector<128x16xf32> -> vector<128x16xf32>
    %10 = arith.addf %6, %9 : vector<128x16xf32>
    %c0_9 = arith.constant 0 : index
    %c0_10 = arith.constant 0 : index
    %11 = vector.load %arg9[%c0_9, %c0_10] : memref<128x16xf32, #tpu.memory_space<vmem>>, vector<128x16xf32>
    tpu.vector_store %arg9[%c0_9, %c0_10], %10 {strides = array<i32>} : memref<128x16xf32, #tpu.memory_space<vmem>>, vector<128x16xf32>,
    %c1_i32 = arith.constant 1 : i32
    %12 = arith.cmpi eq, %arg1, %c1_i32 : i32
    %13 = arith.extui %12 : i1 to i32
    %c0_i32_11 = arith.constant 0 : i32
    %14 = arith.cmpi ne, %13, %c0_i32_11 : i32
    scf.if %14 {
      %c0_12 = arith.constant 0 : index
      %c0_13 = arith.constant 0 : index
      %15 = vector.load %arg7[%c0_12, %c0_13] : memref<128x16xf32, #tpu.memory_space<vmem>>, vector<128x16xf32>
      %c0_14 = arith.constant 0 : index
      %c0_15 = arith.constant 0 : index
      %16 = vector.load %arg6[%c0_14, %c0_15] : memref<128x1xf32, #tpu.memory_space<vmem>>, vector<128x1xf32>
      %c0_16 = arith.constant 0 : index
      %c0_17 = arith.constant 0 : index
      %17 = vector.load %arg9[%c0_16, %c0_17] : memref<128x16xf32, #tpu.memory_space<vmem>>, vector<128x16xf32>
      %c0_18 = arith.constant 0 : index
      %c0_19 = arith.constant 0 : index
      %18 = vector.load %arg5[%c0_18, %c0_19] : memref<1x16xf32, #tpu.memory_space<vmem>>, vector<1x16xf32>
      %19 = vector.broadcast %18 : vector<1x16xf32> to vector<128x16xf32>
      %20 = arith.addf %17, %19 : vector<128x16xf32>
      %21 = vector.broadcast %16 : vector<128x1xf32> to vector<128x16xf32>
      %22 = arith.mulf %21, %20 : vector<128x16xf32>
      %23 = arith.addf %15, %22 : vector<128x16xf32>
      %c0_20 = arith.constant 0 : index
      %c0_21 = arith.constant 0 : index
      %24 = vector.load %arg8[%c0_20, %c0_21] : memref<128x16xf32, #tpu.memory_space<vmem>>, vector<128x16xf32>
      tpu.vector_store %arg8[%c0_20, %c0_21], %23 {strides = array<i32>} : memref<128x16xf32, #tpu.memory_space<vmem>>, vector<128x16xf32>,
    } else {
    }
    return
  }
  func.func @transform_0(%arg0: i32, %arg1: i32) -> (i32, i32) {
    %c0_i32 = arith.constant 0 : i32
    return %arg0, %arg1 : i32, i32
  }
  func.func @transform_1(%arg0: i32, %arg1: i32) -> (i32, i32) {
    %c0_i32 = arith.constant 0 : i32
    %c0_i32_0 = arith.constant 0 : i32
    return %arg1, %c0_i32 : i32, i32
  }
  func.func @transform_2(%arg0: i32, %arg1: i32) -> (i32, i32) {
    %c0_i32 = arith.constant 0 : i32
    %c0_i32_0 = arith.constant 0 : i32
    %c0_i32_1 = arith.constant 0 : i32
    return %c0_i32, %c0_i32_0 : i32, i32
  }
  func.func @transform_3(%arg0: i32, %arg1: i32) -> (i32, i32) {
    %c0_i32 = arith.constant 0 : i32
    %c0_i32_0 = arith.constant 0 : i32
    %c0_i32_1 = arith.constant 0 : i32
    return %c0_i32, %c0_i32_0 : i32, i32
  }
  func.func @transform_4(%arg0: i32, %arg1: i32) -> (i32, i32) {
    %c0_i32 = arith.constant 0 : i32
    %c0_i32_0 = arith.constant 0 : i32
    return %arg0, %c0_i32 : i32, i32
  }
  func.func @transform_5(%arg0: i32, %arg1: i32) -> (i32, i32) {
    %c0_i32 = arith.constant 0 : i32
    %c0_i32_0 = arith.constant 0 : i32
    return %arg0, %c0_i32 : i32, i32
  }
  func.func @transform_6(%arg0: i32, %arg1: i32) -> (i32, i32) {
    %c0_i32 = arith.constant 0 : i32
    %c0_i32_0 = arith.constant 0 : i32
    return %arg0, %c0_i32 : i32, i32
  }
}

</mosaic_0001>

<bundles_post_ra>
// kernel: gcn_ogb_moe_forward.7
= control target key start
LH: loop header
LB: loop body
LE: loop exit
PB: predicated region body
PF: predicated region fallthrough
CT: control target
= control target key end

     0   :  { %s774_s9 = smov 0   ;;  %s979_s0 = inlined_call_operand.vmem [shape: f32[256,8], index: 0, kind: input, shape index: {}]   ;;  %s980_s1 = inlined_call_operand.vmem [shape: f32[8,3], index: 1, kind: input, shape index: {}]   ;;  %s981_s2 = inlined_call_operand.vmem [shape: f32[256,3], index: 2, kind: output, shape index: {}]  }
   0x1 LB: > { %s607_s10 = sadd.s32 4294967295, %s757_s9   ;;  %p611_p0 = scmp.ge.s32.totalorder %s757_s9, 1  ;;  %s757_s9 = sphi %s774_s9, %s12_s9  }
   0x2   : > { %p113_p1 = scmp.lt.s32.totalorder %s757_s9, 3 }
   0x4   : > { %p114_p2 = pnand %p611_p0, %p113_p1 }
   0x5   : > { %s612_s13 = sshll.u32 (!%p114_p2), %s607_s10, 4 }
   0x6   : > { %117 = sbr.rel (%p114_p2) target bundleno = 555 (0x22b), region = 28  ;;  %p136_p3 = scmp.lt.s32.totalorder (!%p114_p2), %s612_s13, 31 }
   0xb   : > { %v163_v0 = vld [vmem:[%s980_s1] sm:$0xff]  ;;  %s983_s13 = smov (!%p136_p3, %s612_s13), 31  ;;  %vm164_vm0 = vcmask 64512   ;;  %vm358_vm1 = vcmask 23552  }
   0xc   : > { %651 = vmatprep.subr.mxu0 %v163_v0  ;;  %677 = vmatprep.subr.mxu1 %v163_v0  ;;  %s613_s14 = sshll.u32 %s983_s13, 3 }
   0xd   : > { %652 = vmatpush3.msra.mxu0 %v163_v0  ;;  %678 = vmatpush3.msra.mxu1 %v163_v0  ;;  %s139_s17 = scalar_lea.vmem %s979_s0, %s613_s14  ;;  %s926_s20 = scalar_lea.vmem %s981_s2, %s613_s14 }
   0xe   : > { %v147_v1 = vld [vmem:[%s139_s17] sm:$0xff]  ;;  %v148_v3 = vld [vmem:[%s139_s17 + $0x8] sm:$0xff]  ;;  %v149_v5 = vld [vmem:[%s139_s17 + $0x10] sm:$0xff] }
   0xf   : > { %v155_v2 = vld [vmem:[%s139_s17 + $0x40] sm:$0xff]  ;;  %653 = vmatprep.mubr.msk.f32.mxu0 %vm164_vm0, %v147_v1  ;;  %v156_v4 = vld [vmem:[%s139_s17 + $0x48] sm:$0xff]  ;;  %v157_v6 = vld [vmem:[%s139_s17 + $0x50] sm:$0xff] }
  0x10   : > { %665 = vmatprep.mubr.msk.f32.mxu1 %vm164_vm0, %v155_v2  ;;  %654 = vmatmul.mubr.msk.f32.vlgmr.msra.gmra.mxu0 %vm164_vm0, %v148_v3  ;;  %v150_v7 = vld [vmem:[%s139_s17 + $0x18] sm:$0xff]  ;;  %v151_v9 = vld [vmem:[%s139_s17 + $0x20] sm:$0xff]  ;;  %v152_v11 = vld [vmem:[%s139_s17 + $0x28] sm:$0xff] }
  0x11   : > { %666 = vmatmul.mubr.msk.f32.vlgmr.msra.gmra.mxu1 %vm164_vm0, %v156_v4  ;;  %656 = vmatprep.mubr.msk.f32.mxu0 %vm164_vm0, %v149_v5  ;;  %v158_v8 = vld [vmem:[%s139_s17 + $0x58] sm:$0xff]  ;;  %v159_v10 = vld [vmem:[%s139_s17 + $0x60] sm:$0xff]  ;;  %v160_v12 = vld [vmem:[%s139_s17 + $0x68] sm:$0xff] }
  0x12   : > { %668 = vmatprep.mubr.msk.f32.mxu1 %vm164_vm0, %v157_v6  ;;  %v153_v13 = vld [vmem:[%s139_s17 + $0x30] sm:$0xff]  ;;  %v154_v15 = vld [vmem:[%s139_s17 + $0x38] sm:$0xff] }
  0x13   : > { %v161_v14 = vld [vmem:[%s139_s17 + $0x70] sm:$0xff]  ;;  %v162_v16 = vld [vmem:[%s139_s17 + $0x78] sm:$0xff] }
  0x14   : > { %657 = vmatmul.mubr.msk.f32.gmra.mxu0 %vm164_vm0, %v150_v7 }
  0x15   : > { %669 = vmatmul.mubr.msk.f32.gmra.mxu1 %vm164_vm0, %v158_v8  ;;  %659 = vmatprep.mubr.msk.f32.mxu0 %vm164_vm0, %v151_v9 }
  0x16   : > { %671 = vmatprep.mubr.msk.f32.mxu1 %vm164_vm0, %v159_v10 }
  0x18   : > { %660 = vmatmul.mubr.msk.f32.gmra.mxu0 %vm164_vm0, %v152_v11 }
  0x19   : > { %672 = vmatmul.mubr.msk.f32.gmra.mxu1 %vm164_vm0, %v160_v12  ;;  %662 = vmatprep.mubr.msk.f32.mxu0 %vm164_vm0, %v153_v13 }
  0x1a   : > { %674 = vmatprep.mubr.msk.f32.mxu1 %vm164_vm0, %v161_v14 }
  0x1c   : > { %663 = vmatmul.mubr.msk.f32.gmra.mxu0 %vm164_vm0, %v154_v15 }
  0x1d   : > { %675 = vmatmul.mubr.msk.f32.gmra.mxu1 %vm164_vm0, %v162_v16 }
  0xd0   : > { %v655_v17 = vpop.f32.mrf.mxu0 }
  0xd1   : > { %v667_v18 = vpop.f32.mrf.mxu1  ;;  %v362_v20 = vsel %vm358_vm1, %v655_v17, -inf }
  0xd2   : > { %v386_v19 = vsel %vm358_vm1, %v667_v18, -inf  ;;  %363 = vmax.xlane.f32.xlu0 %v362_v20  ;;  %v279_v21 = vpop.f32.mrf.mxu0 }
  0xd3   : > { %387 = vmax.xlane.f32.xlu1 %v386_v19  ;;  %v319_v22 = vpop.f32.mrf.mxu1  ;;  %v359_v24 = vsel %vm358_vm1, %v279_v21, -inf }
  0xd4   : > { %v658_v23 = vpop.f32.mrf.mxu0  ;;  %v383_v30 = vsel %vm358_vm1, %v319_v22, -inf }
  0xd5   : > { %v368_v25 = vsel %vm358_vm1, %v658_v23, -inf  ;;  %v670_v26 = vpop.f32.mrf.mxu1 }
  0xd6   : > { %360 = vmax.xlane.f32.xlu0 %v359_v24  ;;  %v289_v27 = vpop.f32.mrf.mxu0  ;;  %v392_v28 = vsel %vm358_vm1, %v670_v26, -inf }
  0xd7   : > { %369 = vmax.xlane.f32.xlu1 %v368_v25  ;;  %v329_v31 = vpop.f32.mrf.mxu1  ;;  %v365_v35 = vsel %vm358_vm1, %v289_v27, -inf }
  0xd8   : > { %v814_v29 = vpop.f32.mrf.mxu0  ;;  %v389_v34 = vsel %vm358_vm1, %v329_v31, -inf }
  0xd9   : > { %v819_v33 = vpop.f32.mrf.mxu1  ;;  %v374_v36 = vsel %vm358_vm1, %v814_v29, -inf }
  0xda   : > { %384 = vmax.xlane.f32.xlu0 %v383_v30  ;;  %v817_v32 = vpop.f32.mrf.mxu0  ;;  %v398_v40 = vsel %vm358_vm1, %v819_v33, -inf }
  0xdb   : > { %393 = vmax.xlane.f32.xlu1 %v392_v28  ;;  %v371_v37 = vsel %vm358_vm1, %v817_v32, -inf  ;;  %v827_v38 = vpop.f32.mrf.mxu1 }
  0xdc   : > { %v829_v39 = vpop.f32.mrf.mxu0  ;;  %v395_v41 = vsel %vm358_vm1, %v827_v38, -inf }
  0xdd   : > { %v837_v43 = vpop.f32.mrf.mxu1  ;;  %v380_v44 = vsel %vm358_vm1, %v829_v39, -inf }
  0xde   : > { %390 = vmax.xlane.f32.xlu0 %v389_v34  ;;  %v835_v42 = vpop.f32.mrf.mxu0  ;;  %v404_v47 = vsel %vm358_vm1, %v837_v43, -inf }
  0xdf   : > { %366 = vmax.xlane.f32.xlu1 %v365_v35  ;;  %v377_v45 = vsel %vm358_vm1, %v835_v42, -inf  ;;  %v843_v46 = vpop.f32.mrf.mxu1 }
  0xe0   : > { %v401_v48 = vsel %vm358_vm1, %v843_v46, -inf }
  0xe2   : > { %372 = vmax.xlane.f32.xlu0 %v371_v37 }
  0xe3   : > { %375 = vmax.xlane.f32.xlu1 %v374_v36 }
  0xe6   : > { %396 = vmax.xlane.f32.xlu0 %v395_v41 }
  0xe7   : > { %399 = vmax.xlane.f32.xlu1 %v398_v40 }
  0xea   : > { %378 = vmax.xlane.f32.xlu0 %v377_v45 }
  0xeb   : > { %381 = vmax.xlane.f32.xlu1 %v380_v44 }
  0xee   : > { %402 = vmax.xlane.f32.xlu0 %v401_v48 }
  0xef   : > { %405 = vmax.xlane.f32.xlu1 %v404_v47 }
 0x15b   : > { %v364_v50 = vpop.xlane.xlu0 %363 }
 0x15c   : > { %v388_v49 = vpop.xlane.xlu1 %387  ;;  %v408_v52 = vsub.f32 %v655_v17, %v364_v50 }
 0x15d   : > { %v416_v51 = vsub.f32 %v667_v18, %v388_v49 }
 0x15e   : > { %v425_v53 = vmul.f32 1.442695, %v408_v52 }
 0x15f   : > { %v441_v54 = vmul.f32 1.442695, %v416_v51  ;;  %v361_v55 = vpop.xlane.xlu0 %360 }
 0x160   : > { %v370_v56 = vpop.xlane.xlu1 %369  ;;  %v407_v57 = vsub.f32 %v279_v21, %v361_v55  ;;  %687 = vpow2.f32 %v425_v53 }
 0x161   : > { %v410_v58 = vsub.f32 %v658_v23, %v370_v56  ;;  %689 = vpow2.f32 %v441_v54 }
 0x162   : > { %v423_v59 = vmul.f32 1.442695, %v407_v57 }
 0x163   : > { %v429_v60 = vmul.f32 1.442695, %v410_v58  ;;  %v385_v61 = vpop.xlane.xlu0 %384 }
 0x164   : > { %v394_v62 = vpop.xlane.xlu1 %393  ;;  %691 = vpow2.f32 %v423_v59  ;;  %v415_v63 = vsub.f32 %v319_v22, %v385_v61 }
 0x165   : > { %v418_v0 = vsub.f32 %v670_v26, %v394_v62  ;;  %693 = vpow2.f32 %v429_v60 }
 0x166   : > { %v439_v1 = vmul.f32 1.442695, %v415_v63 }
 0x167   : > { %v445_v2 = vmul.f32 1.442695, %v418_v0  ;;  %v391_v3 = vpop.xlane.xlu0 %390 }
 0x168   : > { %v367_v4 = vpop.xlane.xlu1 %366  ;;  %695 = vpow2.f32 %v439_v1  ;;  %v417_v5 = vsub.f32 %v329_v31, %v391_v3 }
 0x169   : > { %v409_v6 = vsub.f32 %v289_v27, %v367_v4  ;;  %697 = vpow2.f32 %v445_v2 }
 0x16a   : > { %v443_v8 = vmul.f32 1.442695, %v417_v5 }
 0x16b   : > { %v427_v7 = vmul.f32 1.442695, %v409_v6  ;;  %v373_v10 = vpop.xlane.xlu0 %372 }
 0x16c   : > { %v376_v9 = vpop.xlane.xlu1 %375  ;;  %v411_v12 = vsub.f32 %v817_v32, %v373_v10 }
 0x16d   : > { %v412_v11 = vsub.f32 %v814_v29, %v376_v9  ;;  %699 = vpow2.f32 %v427_v7  ;;  %v851_v13 = vpop.eup %687 }
 0x16e   : > { %701 = vpow2.f32 %v443_v8  ;;  %v431_v15 = vmul.f32 1.442695, %v411_v12  ;;  %v458_v18 = vsel %vm358_vm1, %v851_v13, 0.0  ;;  %v855_v19 = vpop.eup %689 }
 0x16f   : > { %v433_v14 = vmul.f32 1.442695, %v412_v11  ;;  %v397_v17 = vpop.xlane.xlu0 %396  ;;  %459 = vadd.xlane.f32.xlu1 %v458_v18  ;;  %v482_v26 = vsel %vm358_vm1, %v855_v19, 0.0 }
 0x170   : > { %v400_v16 = vpop.xlane.xlu1 %399  ;;  %v419_v21 = vsub.f32 %v827_v38, %v397_v17 }
 0x171   : > { %703 = vpow2.f32 %v433_v14  ;;  %v420_v20 = vsub.f32 %v819_v33, %v400_v16  ;;  %v859_v22 = vpop.eup %691 }
 0x172   : > { %v455_v24 = vsel %vm358_vm1, %v859_v22, 0.0  ;;  %705 = vpow2.f32 %v431_v15  ;;  %v447_v25 = vmul.f32 1.442695, %v419_v21  ;;  %v865_v29 = vpop.eup %693 }
 0x173   : > { %v449_v23 = vmul.f32 1.442695, %v420_v20  ;;  %456 = vadd.xlane.f32.xlu0 %v455_v24  ;;  %v379_v28 = vpop.xlane.xlu0 %378  ;;  %483 = vadd.xlane.f32.xlu1 %v482_v26  ;;  %v464_v36 = vsel %vm358_vm1, %v865_v29, 0.0 }
 0x174   : > { %v382_v27 = vpop.xlane.xlu1 %381  ;;  %v413_v31 = vsub.f32 %v835_v42, %v379_v28 }
 0x175   : > { %707 = vpow2.f32 %v449_v23  ;;  %v414_v30 = vsub.f32 %v829_v39, %v382_v27  ;;  %v869_v32 = vpop.eup %695 }
 0x176   : > { %v479_v34 = vsel %vm358_vm1, %v869_v32, 0.0  ;;  %709 = vpow2.f32 %v447_v25  ;;  %v435_v35 = vmul.f32 1.442695, %v413_v31  ;;  %v875_v40 = vpop.eup %697 }
 0x177   : > { %v437_v33 = vmul.f32 1.442695, %v414_v30  ;;  %480 = vadd.xlane.f32.xlu0 %v479_v34  ;;  %v403_v38 = vpop.xlane.xlu0 %402  ;;  %465 = vadd.xlane.f32.xlu1 %v464_v36  ;;  %v488_v47 = vsel %vm358_vm1, %v875_v40, 0.0 }
 0x178   : > { %v406_v37 = vpop.xlane.xlu1 %405  ;;  %v421_v41 = vsub.f32 %v843_v46, %v403_v38 }
 0x179   : > { %711 = vpow2.f32 %v437_v33  ;;  %v422_v39 = vsub.f32 %v837_v43, %v406_v37 }
 0x17a   : > { %v879_v42 = vpop.eup %699  ;;  %713 = vpow2.f32 %v435_v35  ;;  %v451_v45 = vmul.f32 1.442695, %v421_v41 }
 0x17b   : > { %v453_v44 = vmul.f32 1.442695, %v422_v39  ;;  %v461_v48 = vsel %vm358_vm1, %v879_v42, 0.0  ;;  %v885_v49 = vpop.eup %701  ;;  %489 = vadd.xlane.f32.xlu1 %v488_v47 }
 0x17c   : > { %462 = vadd.xlane.f32.xlu0 %v461_v48  ;;  %v485_v46 = vsel %vm358_vm1, %v885_v49, 0.0 }
 0x17d   : > { %715 = vpow2.f32 %v453_v44 }
 0x17e   : > { %v887_v50 = vpop.eup %703  ;;  %717 = vpow2.f32 %v451_v45 }
 0x17f   : > { %v470_v43 = vsel %vm358_vm1, %v887_v50, 0.0  ;;  %v893_v51 = vpop.eup %705 }
 0x180   : > { %471 = vadd.xlane.f32.xlu1 %v470_v43  ;;  %486 = vadd.xlane.f32.xlu0 %v485_v46  ;;  %v467_v54 = vsel %vm358_vm1, %v893_v51, 0.0 }
 0x182   : > { %v895_v52 = vpop.eup %707 }
 0x183   : > { %v494_v53 = vsel %vm358_vm1, %v895_v52, 0.0  ;;  %v901_v55 = vpop.eup %709 }
 0x184   : > { %495 = vadd.xlane.f32.xlu1 %v494_v53  ;;  %468 = vadd.xlane.f32.xlu0 %v467_v54  ;;  %v491_v58 = vsel %vm358_vm1, %v901_v55, 0.0 }
 0x186   : > { %v903_v56 = vpop.eup %711 }
 0x187   : > { %v476_v57 = vsel %vm358_vm1, %v903_v56, 0.0  ;;  %v909_v59 = vpop.eup %713 }
 0x188   : > { %477 = vadd.xlane.f32.xlu1 %v476_v57  ;;  %492 = vadd.xlane.f32.xlu0 %v491_v58  ;;  %v473_v62 = vsel %vm358_vm1, %v909_v59, 0.0 }
 0x18a   : > { %v911_v60 = vpop.eup %715 }
 0x18b   : > { %v500_v61 = vsel %vm358_vm1, %v911_v60, 0.0  ;;  %v917_v63 = vpop.eup %717 }
 0x18c   : > { %501 = vadd.xlane.f32.xlu1 %v500_v61  ;;  %474 = vadd.xlane.f32.xlu0 %v473_v62  ;;  %v497_v0 = vsel %vm358_vm1, %v917_v63, 0.0 }
 0x190   : > { %498 = vadd.xlane.f32.xlu0 %v497_v0 }
 0x1f8   : > { %v460_v1 = vpop.xlane.xlu1 %459 }
 0x1f9   : > { %719 = vrcp.f32 %v460_v1 }
 0x1fc   : > { %v457_v2 = vpop.xlane.xlu0 %456  ;;  %v484_v3 = vpop.xlane.xlu1 %483 }
 0x1fd   : > { %721 = vrcp.f32 %v457_v2 }
 0x1fe   : > { %723 = vrcp.f32 %v484_v3 }
 0x200   : > { %v481_v4 = vpop.xlane.xlu0 %480  ;;  %v466_v5 = vpop.xlane.xlu1 %465 }
 0x201   : > { %725 = vrcp.f32 %v481_v4 }
 0x202   : > { %727 = vrcp.f32 %v466_v5 }
 0x204   : > { %v490_v6 = vpop.xlane.xlu1 %489 }
 0x205   : > { %v463_v7 = vpop.xlane.xlu0 %462  ;;  %729 = vrcp.f32 %v490_v6 }
 0x206   : > { %v720_v8 = vpop.eup %719  ;;  %731 = vrcp.f32 %v463_v7 }
 0x207   : > { %v520_v9 = vmul.f32 %v720_v8, %v851_v13 }
 0x209   : > { %v472_v10 = vpop.xlane.xlu1 %471  ;;  %v487_v11 = vpop.xlane.xlu0 %486  ;;  %536 = vst.msk [vmem:[%s926_s20 + $0x8] sm:$0xff] %vm358_vm1, %v520_v9 }
 0x20a   : > { %v722_v12 = vpop.eup %721  ;;  %733 = vrcp.f32 %v472_v10 }
 0x20b   : > { %v724_v14 = vpop.eup %723  ;;  %v519_v15 = vmul.f32 %v722_v12, %v859_v22  ;;  %735 = vrcp.f32 %v487_v11 }
 0x20c   : > { %v528_v16 = vmul.f32 %v724_v14, %v855_v19 }
 0x20d   : > { %535 = vst.msk [vmem:[%s926_s20] sm:$0xff] %vm358_vm1, %v519_v15  ;;  %v496_v17 = vpop.xlane.xlu1 %495  ;;  %v469_v18 = vpop.xlane.xlu0 %468 }
 0x20e   : > { %v726_v20 = vpop.eup %725  ;;  %544 = vst.msk [vmem:[%s926_s20 + $0x48] sm:$0xff] %vm358_vm1, %v528_v16  ;;  %737 = vrcp.f32 %v496_v17 }
 0x20f   : > { %v728_v13 = vpop.eup %727  ;;  %v527_v21 = vmul.f32 %v726_v20, %v869_v32  ;;  %739 = vrcp.f32 %v469_v18 }
 0x210   : > { %v522_v23 = vmul.f32 %v728_v13, %v865_v29 }
 0x211   : > { %543 = vst.msk [vmem:[%s926_s20 + $0x40] sm:$0xff] %vm358_vm1, %v527_v21  ;;  %v478_v22 = vpop.xlane.xlu1 %477  ;;  %v493_v19 = vpop.xlane.xlu0 %492 }
 0x212   : > { %538 = vst.msk [vmem:[%s926_s20 + $0x18] sm:$0xff] %vm358_vm1, %v522_v23  ;;  %741 = vrcp.f32 %v478_v22  ;;  %v730_v24 = vpop.eup %729 }
 0x213   : > { %743 = vrcp.f32 %v493_v19  ;;  %v732_v25 = vpop.eup %731  ;;  %v530_v26 = vmul.f32 %v730_v24, %v875_v40 }
 0x214   : > { %v521_v27 = vmul.f32 %v732_v25, %v879_v42 }
 0x215   : > { %v502_v28 = vpop.xlane.xlu1 %501  ;;  %v475_v30 = vpop.xlane.xlu0 %474  ;;  %546 = vst.msk [vmem:[%s926_s20 + $0x58] sm:$0xff] %vm358_vm1, %v530_v26 }
 0x216   : > { %745 = vrcp.f32 %v502_v28  ;;  %537 = vst.msk [vmem:[%s926_s20 + $0x10] sm:$0xff] %vm358_vm1, %v521_v27 }
 0x217   : > { %v734_v29 = vpop.eup %733  ;;  %747 = vrcp.f32 %v475_v30 }
 0x218   : > { %v736_v31 = vpop.eup %735  ;;  %v524_v32 = vmul.f32 %v734_v29, %v887_v50 }
 0x219   : > { %v529_v33 = vmul.f32 %v736_v31, %v885_v49  ;;  %v499_v34 = vpop.xlane.xlu0 %498 }
 0x21a   : > { %540 = vst.msk [vmem:[%s926_s20 + $0x28] sm:$0xff] %vm358_vm1, %v524_v32  ;;  %749 = vrcp.f32 %v499_v34 }
 0x21b   : > { %v738_v35 = vpop.eup %737  ;;  %545 = vst.msk [vmem:[%s926_s20 + $0x50] sm:$0xff] %vm358_vm1, %v529_v33 }
 0x21c   : > { %v740_v36 = vpop.eup %739  ;;  %v532_v37 = vmul.f32 %v738_v35, %v895_v52 }
 0x21d   : > { %v523_v38 = vmul.f32 %v740_v36, %v893_v51 }
 0x21e   : > { %548 = vst.msk [vmem:[%s926_s20 + $0x68] sm:$0xff] %vm358_vm1, %v532_v37 }
 0x21f   : > { %v742_v40 = vpop.eup %741  ;;  %539 = vst.msk [vmem:[%s926_s20 + $0x20] sm:$0xff] %vm358_vm1, %v523_v38 }
 0x220   : > { %v744_v39 = vpop.eup %743  ;;  %v526_v41 = vmul.f32 %v742_v40, %v903_v56 }
 0x221   : > { %v531_v42 = vmul.f32 %v744_v39, %v901_v55 }
 0x222   : > { %542 = vst.msk [vmem:[%s926_s20 + $0x38] sm:$0xff] %vm358_vm1, %v526_v41 }
 0x223   : > { %v746_v44 = vpop.eup %745  ;;  %547 = vst.msk [vmem:[%s926_s20 + $0x60] sm:$0xff] %vm358_vm1, %v531_v42 }
 0x224   : > { %v748_v45 = vpop.eup %747  ;;  %v534_v47 = vmul.f32 %v746_v44, %v911_v60 }
 0x225   : > { %v525_v48 = vmul.f32 %v748_v45, %v909_v59 }
 0x226   : > { %550 = vst.msk [vmem:[%s926_s20 + $0x78] sm:$0xff] %vm358_vm1, %v534_v47 }
 0x227   : > { %v750_v49 = vpop.eup %749  ;;  %541 = vst.msk [vmem:[%s926_s20 + $0x30] sm:$0xff] %vm358_vm1, %v525_v48 }
 0x228   : > { %v533_v50 = vmul.f32 %v750_v49, %v917_v63 }
 0x22a   : > { %549 = vst.msk [vmem:[%s926_s20 + $0x70] sm:$0xff] %vm358_vm1, %v533_v50 }
 0x22b PF: > { %s12_s9 = sadd.s32 1, %s757_s9  }
 0x22c   : > { %p9_p4 = scmp.ge.s32.totalorder %s12_s9, 4  }
 0x22e   :  { %11 = sbr.rel (!%p9_p4) target bundleno = 1 (0x1), region = 58 }

// kernel: gcn_ogb_moe_forward.8
= control target key start
LH: loop header
LB: loop body
LE: loop exit
PB: predicated region body
PF: predicated region fallthrough
CT: control target
= control target key end

     0   :  { %s1316_s15 = smov 0   ;;  %s1318_s16 = smov 0   ;;  %s1528_s0 = inlined_call_operand.vmem [shape: bf16[256,256], index: 0, kind: input, shape index: {}]   ;;  %s1529_s1 = inlined_call_operand.vmem [shape: bf16[256,8], index: 1, kind: input, shape index: {}]   ;;  %s1530_s2 = inlined_call_operand.vmem [shape: bf16[8,96], index: 2, kind: input, shape index: {}]   ;;  %s1531_s3 = inlined_call_operand.vmem [shape: f32[1,96], index: 3, kind: input, shape index: {}]   ;;  %s1532_s4 = inlined_call_operand.vmem [shape: bf16[256,96], index: 4, kind: output, shape index: {}]  }
   0x1   :  { %s1320_s17 = smov 0   ;;  %s1322_s18 = smov 0  }
   0x2   :  { %s1324_s19 = smov 0   ;;  %s1326_s20 = smov 0  }
   0x3   :  { %s1328_s21 = smov 0  }
   0x4 LB: > { %s23_s22 = sadd.s32 1, %s1280_s19  ;;  %s26_s23 = sadd.s32 1, %s1284_s20  ;;  %s1288_s21 = sphi %s1328_s21, %s14_s21   ;;  %s1284_s20 = sphi %s1326_s20, %s1538_s20   ;;  %s1280_s19 = sphi %s1324_s19, %s1537_s19   ;;  %s1276_s18 = sphi %s1322_s18, %s1536_s18   ;;  %s1272_s17 = sphi %s1320_s17, %s1535_s17   ;;  %s1268_s16 = sphi %s1318_s16, %s1534_s16   ;;  %s1264_s15 = sphi %s1316_s15, %s1533_s15  }
   0x5   : > { %p24_p0 = scmp.ge.s32.totalorder %s23_s22, 2  ;;  %p42_p1 = scmp.ne.s32.totalorder %s1268_s16, %s1264_s15 }
   0x6   : > { %p43_p2 = scmp.eq.s32.totalorder %s1288_s21, 0  ;;  %s35_s27 = sadd.s32 1, %s1268_s16 }
   0x7   : > { %s1540_s22 = smov (%p24_p0, %s23_s22), 0  ;;  %s1542_s23 = smov (!%p24_p0, %s26_s23), %s1284_s20 }
   0x8   : > { %p44_p3 = por %p43_p2, %p42_p1  ;;  %p28_p4 = scmp.ge.s32.totalorder %s1542_s23, 2 }
   0x9   : > { %s31_s24 = ssub.s32 %s1280_s19, %s1540_s22  ;;  %p996_p6 = scmp.ge.s32.totalorder %s1288_s21, 4 }
   0xa   : > { %s1544_s23 = smov (%p28_p4, %s1542_s23), 0 }
   0xb   : > { %s30_s25 = ssub.s32 %s1284_s20, %s1544_s23  ;;  %168 = sbr.rel (%p996_p6) target bundleno = 32 (0x20), region = 24 }
   0xc   : > { %s32_s26 = sor.u32 %s31_s24, %s30_s25 }
   0xd   : > { %p33_p5 = scmp.eq.s32.totalorder %s32_s26, 0 }
   0xf   : > { %s1367_s28 = scalar_select %p33_p5, %s1268_s16, %s35_s27  }
  0x10   : > { %171 = sbr.rel (!%p44_p3) target bundleno = 32 (0x20), region = 28  ;;  %s173_s29 = sand.u32 (%p44_p3), 1, %s1268_s16  }
  0x11   : > { %s1052_s30 = sshll.u32 (%p44_p3), %s1284_s20, 5  ;;  %s997_s5 = sshll.u32 (%p44_p3), %s173_s29, 6 }
  0x12   : > { %s178_s6 = sadd.s32 (%p44_p3), %s1280_s19, %s1052_s30  ;;  %s175_s11 = scalar_lea.vmem (%p44_p3), [#allocation3], %s997_s5 }
  0x13   : > { %s1000_s7 = sshll.u32 (%p44_p3), %s178_s6, 2 }
  0x14   : > { %s1376_s10 = scalar_lea.vmem (%p44_p3), %s1528_s0, %s1000_s7 }
  0x15   : > { %v197_v0 = vld [vmem:[%s1376_s10] sm:$0xf]  ;;  %v199_v1 = vld [vmem:[%s1376_s10 + $0x8] sm:$0xf]  ;;  %v201_v2 = vld [vmem:[%s1376_s10 + $0x10] sm:$0xf] }
  0x16   : > { %198 = vst [vmem:[%s175_s11] sm:$0xf] %v197_v0  ;;  %200 = vst [vmem:[%s175_s11 + $0x4] sm:$0xf] %v199_v1  ;;  %v203_v3 = vld [vmem:[%s1376_s10 + $0x18] sm:$0xf] }
  0x17   : > { %202 = vst [vmem:[%s175_s11 + $0x8] sm:$0xf] %v201_v2  ;;  %v205_v4 = vld [vmem:[%s1376_s10 + $0x20] sm:$0xf]  ;;  %v207_v5 = vld [vmem:[%s1376_s10 + $0x28] sm:$0xf] }
  0x18   : > { %204 = vst [vmem:[%s175_s11 + $0xc] sm:$0xf] %v203_v3  ;;  %206 = vst [vmem:[%s175_s11 + $0x10] sm:$0xf] %v205_v4  ;;  %v209_v6 = vld [vmem:[%s1376_s10 + $0x30] sm:$0xf] }
  0x19   : > { %208 = vst [vmem:[%s175_s11 + $0x14] sm:$0xf] %v207_v5  ;;  %v211_v7 = vld [vmem:[%s1376_s10 + $0x38] sm:$0xf]  ;;  %v213_v8 = vld [vmem:[%s1376_s10 + $0x40] sm:$0xf] }
  0x1a   : > { %210 = vst [vmem:[%s175_s11 + $0x18] sm:$0xf] %v209_v6  ;;  %212 = vst [vmem:[%s175_s11 + $0x1c] sm:$0xf] %v211_v7  ;;  %v215_v9 = vld [vmem:[%s1376_s10 + $0x48] sm:$0xf] }
  0x1b   : > { %214 = vst [vmem:[%s175_s11 + $0x20] sm:$0xf] %v213_v8  ;;  %v217_v10 = vld [vmem:[%s1376_s10 + $0x50] sm:$0xf]  ;;  %v219_v11 = vld [vmem:[%s1376_s10 + $0x58] sm:$0xf] }
  0x1c   : > { %216 = vst [vmem:[%s175_s11 + $0x24] sm:$0xf] %v215_v9  ;;  %218 = vst [vmem:[%s175_s11 + $0x28] sm:$0xf] %v217_v10  ;;  %v221_v12 = vld [vmem:[%s1376_s10 + $0x60] sm:$0xf] }
  0x1d   : > { %220 = vst [vmem:[%s175_s11 + $0x2c] sm:$0xf] %v219_v11  ;;  %v223_v13 = vld [vmem:[%s1376_s10 + $0x68] sm:$0xf]  ;;  %v225_v14 = vld [vmem:[%s1376_s10 + $0x70] sm:$0xf] }
  0x1e   : > { %222 = vst [vmem:[%s175_s11 + $0x30] sm:$0xf] %v221_v12  ;;  %224 = vst [vmem:[%s175_s11 + $0x34] sm:$0xf] %v223_v13  ;;  %v227_v15 = vld [vmem:[%s1376_s10 + $0x78] sm:$0xf] }
  0x1f   : > { %226 = vst [vmem:[%s175_s11 + $0x38] sm:$0xf] %v225_v14  ;;  %228 = vst [vmem:[%s175_s11 + $0x3c] sm:$0xf] %v227_v15 }
  0x20 PF: > { %p1001_p7 = scmp.ge.s32.totalorder %s1288_s21, 1  ;;  %p292_p8 = scmp.lt.s32.totalorder %s1288_s21, 5 }
  0x22   : > { %p293_p9 = pnand %p1001_p7, %p292_p8 }
  0x23   : > { %s299_s12 = sand.u32 (!%p293_p9), 1, %s1264_s15   ;;  %s1003_s13 = sshll.u32 (!%p293_p9), %s1272_s17, 4 }
  0x24   : > { %296 = sbr.rel (%p293_p9) target bundleno = 554 (0x22a), region = 73  ;;  %s1002_s14 = sshll.u32 (!%p293_p9), %s299_s12, 6 }
  0x25   : > { %p331_p10 = scmp.lt.s32.totalorder (!%p293_p9), %s1003_s13, 31  ;;  %s1005_s24 = sshll.u32 (!%p293_p9), %s1276_s18, 4 }
  0x26   : > { %p337_p11 = scmp.lt.s32.totalorder (!%p293_p9), %s1005_s24, 31  ;;  %s1409_s15 = scalar_lea.vmem (!%p293_p9), [#allocation3], %s1002_s14 }
  0x27   : > { %p1007_p12 = scmp.ne.s32.totalorder (!%p293_p9), %s1272_s17, 0 }
  0x29   : > { %s1546_s13 = smov (!%p331_p10, %s1003_s13), 31  ;;  %s1548_s24 = smov (!%p337_p11, %s1005_s24), 31 }
  0x2a   : > { %s1004_s25 = sshll.u32 %s1546_s13, 2  ;;  %s1006_s30 = sshll.u32 %s1548_s24, 2 }
  0x2b   : > { %s1402_s29 = scalar_lea.vmem %s1529_s1, %s1004_s25  ;;  %s1407_s7 = scalar_lea.vmem %s1532_s4, %s1006_s30 }
  0x2c   : > { %346 = sbr.rel (%p1007_p12) target bundleno = 58 (0x3a), region = 81 }
  0x31   : > { %vm347_vm0 = vcmask 785408   ;;  %v1290_v16 = vmov 0.0  }
  0x32   : > { %348 = vst.msk [vmem:[#allocation2] sm:$0xff] %vm347_vm0, %v1290_v16  ;;  %349 = vst.msk [vmem:[#allocation2 + $0x8] sm:$0xff] %vm347_vm0, %v1290_v16 }
  0x33   : > { %350 = vst.msk [vmem:[#allocation2 + $0x10] sm:$0xff] %vm347_vm0, %v1290_v16  ;;  %351 = vst.msk [vmem:[#allocation2 + $0x18] sm:$0xff] %vm347_vm0, %v1290_v16 }
  0x34   : > { %352 = vst.msk [vmem:[#allocation2 + $0x20] sm:$0xff] %vm347_vm0, %v1290_v16  ;;  %353 = vst.msk [vmem:[#allocation2 + $0x28] sm:$0xff] %vm347_vm0, %v1290_v16 }
  0x35   : > { %354 = vst.msk [vmem:[#allocation2 + $0x30] sm:$0xff] %vm347_vm0, %v1290_v16  ;;  %355 = vst.msk [vmem:[#allocation2 + $0x38] sm:$0xff] %vm347_vm0, %v1290_v16 }
  0x36   : > { %356 = vst.msk [vmem:[#allocation2 + $0x40] sm:$0xff] %vm347_vm0, %v1290_v16  ;;  %357 = vst.msk [vmem:[#allocation2 + $0x48] sm:$0xff] %vm347_vm0, %v1290_v16 }
  0x37   : > { %358 = vst.msk [vmem:[#allocation2 + $0x50] sm:$0xff] %vm347_vm0, %v1290_v16  ;;  %359 = vst.msk [vmem:[#allocation2 + $0x58] sm:$0xff] %vm347_vm0, %v1290_v16 }
  0x38   : > { %360 = vst.msk [vmem:[#allocation2 + $0x60] sm:$0xff] %vm347_vm0, %v1290_v16  ;;  %361 = vst.msk [vmem:[#allocation2 + $0x68] sm:$0xff] %vm347_vm0, %v1290_v16 }
  0x39   : > { %362 = vst.msk [vmem:[#allocation2 + $0x70] sm:$0xff] %vm347_vm0, %v1290_v16  ;;  %363 = vst.msk [vmem:[#allocation2 + $0x78] sm:$0xff] %vm347_vm0, %v1290_v16 }
  0x3a PF: > { %v380_v17 = vld [vmem:[%s1530_s2] sm:$0xf]  ;;  %vm446_vm1 = vcmask 1043456   ;;  %vm421_vm2 = vcmask 64512   ;;  %v1219_v20 = vld [vmem:[%s1402_s29 + $0x8] sm:$0xff]   ;;  %v1220_v21 = vld [vmem:[%s1402_s29 + $0x10] sm:$0xff]  }
  0x3b   : > { %v1218_v18 = vld [vmem:[%s1402_s29] sm:$0xff]   ;;  %1160 = vmatprep.subr.msk.bf16.mxu0 %vm446_vm1, %v380_v17  ;;  %v448_v19 = vsel %vm446_vm1, %v380_v17, 0  ;;  %v1221_v22 = vld [vmem:[%s1402_s29 + $0x18] sm:$0xff]   ;;  %v1223_v24 = vld [vmem:[%s1402_s29 + $0x28] sm:$0xff]   ;;  %vm748_vm3 = vcmask 785408   ;;  %p1032_p13 = scmp.ne.s32.totalorder %s1272_s17, 1 }
  0x3c   : > { %1095 = vmatpush3.bf16.msra.mxu0 %v448_v19  ;;  %1096 = vmatprep.mubr.msk.bf16.mxu0 %vm421_vm2, %v1218_v18  ;;  %v1222_v23 = vld [vmem:[%s1402_s29 + $0x20] sm:$0xff]   ;;  %v1224_v25 = vld [vmem:[%s1402_s29 + $0x30] sm:$0xff]   ;;  %v1225_v26 = vld [vmem:[%s1402_s29 + $0x38] sm:$0xff]  }
  0x3d   : > { %v1226_v27 = vld [vmem:[%s1409_s15 + $0x10] sm:$0xff]   ;;  %v1230_v28 = vld [vmem:[%s1409_s15] sm:$0xff]   ;;  %v1227_v53 = vld [vmem:[%s1409_s15 + $0x18] sm:$0xff]  }
  0x3e   : > { %1132 = vmatprep.mubr.bf16.mxu1 %v1226_v27  ;;  %v1231_v54 = vld [vmem:[%s1409_s15 + $0x8] sm:$0xff]   ;;  %v1228_v55 = vld [vmem:[%s1409_s15 + $0x20] sm:$0xff]   ;;  %v1232_v57 = vld [vmem:[%s1409_s15 + $0x30] sm:$0xff]  }
  0x3f   : > { %1097 = vmatmul.mubr.msk.bf16.vlgmr.msra.gmra.mxu0 %vm421_vm2, %v1219_v20  ;;  %v1229_v56 = vld [vmem:[%s1409_s15 + $0x28] sm:$0xff]   ;;  %v1233_v58 = vld [vmem:[%s1409_s15 + $0x38] sm:$0xff]   ;;  %v553_v59 = vld [vmem:[#allocation2 + $0x30] sm:$0xff] }
  0x40   : > { %1100 = vmatprep.mubr.msk.bf16.mxu0 %vm421_vm2, %v1220_v21  ;;  %v549_v60 = vld [vmem:[#allocation2 + $0x10] sm:$0xff]  ;;  %v551_v62 = vld [vmem:[#allocation2 + $0x20] sm:$0xff]  ;;  %v554_v4 = vld [vmem:[#allocation2 + $0x38] sm:$0xff] }
  0x41   : > { %v547_v0 = vld [vmem:[#allocation2] sm:$0xff]  ;;  %v550_v6 = vld [vmem:[#allocation2 + $0x18] sm:$0xff]  ;;  %v552_v10 = vld [vmem:[#allocation2 + $0x28] sm:$0xff] }
  0x42   : > { %v548_v12 = vld [vmem:[#allocation2 + $0x8] sm:$0xff]  ;;  %v557_v16 = vld [vmem:[#allocation2 + $0x50] sm:$0xff]  ;;  %v555_v21 = vld [vmem:[#allocation2 + $0x40] sm:$0xff] }
  0x43   : > { %v556_v27 = vld [vmem:[#allocation2 + $0x48] sm:$0xff] }
  0x47   : > { %1101 = vmatmul.mubr.msk.bf16.gmra.mxu0 %vm421_vm2, %v1221_v22 }
  0x48   : > { %1104 = vmatprep.mubr.msk.bf16.mxu0 %vm421_vm2, %v1222_v23 }
  0x4f   : > { %1105 = vmatmul.mubr.msk.bf16.gmra.mxu0 %vm421_vm2, %v1223_v24  ;;  %v558_v24 = vld [vmem:[#allocation2 + $0x58] sm:$0xff] }
  0x50   : > { %1108 = vmatprep.mubr.msk.bf16.mxu0 %vm421_vm2, %v1224_v25 }
  0x57   : > { %1109 = vmatmul.mubr.msk.bf16.gmra.mxu0 %vm421_vm2, %v1225_v26 }
  0x58   : > { %1128 = vmatprep.mubr.bf16.mxu0 %v1230_v28 }
  0xff   : > { %v1098_v29 = vpop.f32.mrf.mxu0 }
 0x101   : > { %v484_v30 = vpop.f32.mrf.mxu0 }
 0x103   : > { %v1099_v31 = vpop.f32.mrf.mxu0 }
 0x104   : > { %v580_v51 = vpack.c.bf16 %v1099_v31, %v1098_v29 }
 0x105   : > { %v487_v32 = vpop.f32.mrf.mxu0 }
 0x106   : > { %v579_v52 = vpack.c.bf16 %v487_v32, %v484_v30  ;;  %v561_v30 = vld [vmem:[#allocation2 + $0x70] sm:$0xff] }
 0x107   : > { %v1102_v33 = vpop.f32.mrf.mxu0 }
 0x109   : > { %v500_v34 = vpop.f32.mrf.mxu0 }
 0x10b   : > { %v1103_v35 = vpop.f32.mrf.mxu0 }
 0x10c   : > { %v582_v49 = vpack.c.bf16 %v1103_v35, %v1102_v33  ;;  %v559_v33 = vld [vmem:[#allocation2 + $0x60] sm:$0xff] }
 0x10d   : > { %v503_v36 = vpop.f32.mrf.mxu0 }
 0x10e   : > { %v581_v50 = vpack.c.bf16 %v503_v36, %v500_v34  ;;  %v562_v36 = vld [vmem:[#allocation2 + $0x78] sm:$0xff] }
 0x10f   : > { %v1106_v37 = vpop.f32.mrf.mxu0 }
 0x111   : > { %v516_v38 = vpop.f32.mrf.mxu0 }
 0x113   : > { %v1107_v39 = vpop.f32.mrf.mxu0 }
 0x114   : > { %v584_v47 = vpack.c.bf16 %v1107_v39, %v1106_v37  ;;  %v560_v39 = vld [vmem:[#allocation2 + $0x68] sm:$0xff] }
 0x115   : > { %v519_v40 = vpop.f32.mrf.mxu0 }
 0x116   : > { %v583_v48 = vpack.c.bf16 %v519_v40, %v516_v38 }
 0x117   : > { %v1110_v41 = vpop.f32.mrf.mxu0 }
 0x119   : > { %v532_v42 = vpop.f32.mrf.mxu0 }
 0x11b   : > { %v1111_v43 = vpop.f32.mrf.mxu0 }
 0x11c   : > { %v586_v44 = vpack.c.bf16 %v1111_v43, %v1110_v41 }
 0x11d   : > { %v535_v45 = vpop.f32.mrf.mxu0 }
 0x11e   : > { %v585_v46 = vpack.c.bf16 %v535_v45, %v532_v42  ;;  %1112 = vmatprep.subr.bf16.mxu0 %v586_v44  ;;  %1144 = vmatprep.subr.bf16.mxu1 %v586_v44 }
 0x11f   : > { %1113 = vmatpush3.bf16.msra.mxu0 %v586_v44  ;;  %1152 = vmatpush3.bf16.msra.mxu1 %v586_v44 }
 0x120   : > { %1114 = vmatprep.subr.bf16.mxu0 %v585_v46  ;;  %1145 = vmatprep.subr.bf16.mxu1 %v585_v46 }
 0x123   : > { %1115 = vmatpush3.bf16.msra.mxu0 %v585_v46  ;;  %1153 = vmatpush3.bf16.msra.mxu1 %v585_v46 }
 0x124   : > { %1116 = vmatprep.subr.bf16.mxu0 %v584_v47  ;;  %1146 = vmatprep.subr.bf16.mxu1 %v584_v47 }
 0x127   : > { %1117 = vmatpush3.bf16.msra.mxu0 %v584_v47  ;;  %1154 = vmatpush3.bf16.msra.mxu1 %v584_v47 }
 0x128   : > { %1118 = vmatprep.subr.bf16.mxu0 %v583_v48  ;;  %1147 = vmatprep.subr.bf16.mxu1 %v583_v48 }
 0x12b   : > { %1119 = vmatpush3.bf16.msra.mxu0 %v583_v48  ;;  %1155 = vmatpush3.bf16.msra.mxu1 %v583_v48 }
 0x12c   : > { %1120 = vmatprep.subr.bf16.mxu0 %v582_v49  ;;  %1148 = vmatprep.subr.bf16.mxu1 %v582_v49 }
 0x12f   : > { %1121 = vmatpush3.bf16.msra.mxu0 %v582_v49  ;;  %1156 = vmatpush3.bf16.msra.mxu1 %v582_v49 }
 0x130   : > { %1122 = vmatprep.subr.bf16.mxu0 %v581_v50  ;;  %1149 = vmatprep.subr.bf16.mxu1 %v581_v50 }
 0x133   : > { %1123 = vmatpush3.bf16.msra.mxu0 %v581_v50  ;;  %1157 = vmatpush3.bf16.msra.mxu1 %v581_v50 }
 0x134   : > { %1124 = vmatprep.subr.bf16.mxu0 %v580_v51  ;;  %1150 = vmatprep.subr.bf16.mxu1 %v580_v51 }
 0x137   : > { %1125 = vmatpush3.bf16.msra.mxu0 %v580_v51  ;;  %1158 = vmatpush3.bf16.msra.mxu1 %v580_v51 }
 0x138   : > { %1126 = vmatprep.subr.bf16.mxu0 %v579_v52  ;;  %1151 = vmatprep.subr.bf16.mxu1 %v579_v52 }
 0x13b   : > { %1127 = vmatpush3.bf16.msra.mxu0 %v579_v52  ;;  %1159 = vmatpush3.bf16.msra.mxu1 %v579_v52 }
 0x13e   : > { %1133 = vmatmul.mubr.bf16.vlgmr.msra.gmra.mxu1 %v1227_v53  ;;  %1129 = vmatmul.mubr.bf16.vlgmr.msra.gmra.mxu0 %v1231_v54 }
 0x13f   : > { %1136 = vmatprep.mubr.bf16.mxu1 %v1228_v55 }
 0x146   : > { %1137 = vmatmul.mubr.bf16.gmra.mxu1 %v1229_v56 }
 0x147   : > { %1140 = vmatprep.mubr.bf16.mxu1 %v1232_v57 }
 0x14e   : > { %1141 = vmatmul.mubr.bf16.gmra.mxu1 %v1233_v58 }
 0x1fe   : > { %v1134_v61 = vpop.f32.mrf.mxu1  ;;  %v1130_v63 = vpop.f32.mrf.mxu0 }
 0x1ff   : > { %v738_v1 = vadd.f32 %v1134_v61, %v553_v59  ;;  %v734_v2 = vadd.f32 %v1130_v63, %v549_v60 }
 0x200   : > { %v685_v3 = vpop.f32.mrf.mxu1  ;;  %v669_v5 = vpop.f32.mrf.mxu0 }
 0x201   : > { %755 = vst.msk [vmem:[#allocation2 + $0x30] sm:$0xff] %vm748_vm3, %v738_v1  ;;  %v736_v7 = vadd.f32 %v685_v3, %v551_v62  ;;  %751 = vst.msk [vmem:[#allocation2 + $0x10] sm:$0xff] %vm748_vm3, %v734_v2  ;;  %v732_v8 = vadd.f32 %v669_v5, %v547_v0 }
 0x202   : > { %v1135_v9 = vpop.f32.mrf.mxu1  ;;  %v1131_v11 = vpop.f32.mrf.mxu0 }
 0x203   : > { %753 = vst.msk [vmem:[#allocation2 + $0x20] sm:$0xff] %vm748_vm3, %v736_v7  ;;  %v739_v13 = vadd.f32 %v1135_v9, %v554_v4  ;;  %749 = vst.msk [vmem:[#allocation2] sm:$0xff] %vm748_vm3, %v732_v8  ;;  %v735_v14 = vadd.f32 %v1131_v11, %v550_v6 }
 0x204   : > { %v688_v15 = vpop.f32.mrf.mxu1  ;;  %v672_v17 = vpop.f32.mrf.mxu0 }
 0x205   : > { %756 = vst.msk [vmem:[#allocation2 + $0x38] sm:$0xff] %vm748_vm3, %v739_v13  ;;  %v737_v18 = vadd.f32 %v688_v15, %v552_v10  ;;  %752 = vst.msk [vmem:[#allocation2 + $0x18] sm:$0xff] %vm748_vm3, %v735_v14  ;;  %v733_v19 = vadd.f32 %v672_v17, %v548_v12 }
 0x206   : > { %v1138_v20 = vpop.f32.mrf.mxu1 }
 0x207   : > { %754 = vst.msk [vmem:[#allocation2 + $0x28] sm:$0xff] %vm748_vm3, %v737_v18  ;;  %v742_v22 = vadd.f32 %v1138_v20, %v557_v16  ;;  %750 = vst.msk [vmem:[#allocation2 + $0x8] sm:$0xff] %vm748_vm3, %v733_v19 }
 0x208   : > { %v701_v23 = vpop.f32.mrf.mxu1 }
 0x209   : > { %759 = vst.msk [vmem:[#allocation2 + $0x50] sm:$0xff] %vm748_vm3, %v742_v22  ;;  %v740_v25 = vadd.f32 %v701_v23, %v555_v21 }
 0x20a   : > { %v1139_v26 = vpop.f32.mrf.mxu1 }
 0x20b   : > { %757 = vst.msk [vmem:[#allocation2 + $0x40] sm:$0xff] %vm748_vm3, %v740_v25  ;;  %v743_v28 = vadd.f32 %v1139_v26, %v558_v24 }
 0x20c   : > { %v704_v29 = vpop.f32.mrf.mxu1 }
 0x20d   : > { %760 = vst.msk [vmem:[#allocation2 + $0x58] sm:$0xff] %vm748_vm3, %v743_v28  ;;  %v741_v31 = vadd.f32 %v704_v29, %v556_v27 }
 0x20e   : > { %v1142_v32 = vpop.f32.mrf.mxu1 }
 0x20f   : > { %758 = vst.msk [vmem:[#allocation2 + $0x48] sm:$0xff] %vm748_vm3, %v741_v31  ;;  %v746_v34 = vadd.f32 %v1142_v32, %v561_v30 }
 0x210   : > { %v717_v35 = vpop.f32.mrf.mxu1 }
 0x211   : > { %763 = vst.msk [vmem:[#allocation2 + $0x70] sm:$0xff] %vm748_vm3, %v746_v34  ;;  %v744_v37 = vadd.f32 %v717_v35, %v559_v33 }
 0x212   : > { %v1143_v38 = vpop.f32.mrf.mxu1 }
 0x213   : > { %761 = vst.msk [vmem:[#allocation2 + $0x60] sm:$0xff] %vm748_vm3, %v744_v37  ;;  %v747_v40 = vadd.f32 %v1143_v38, %v562_v36  ;;  %768 = sbr.rel (%p1032_p13) target bundleno = 554 (0x22a), region = 85 }
 0x214   : > { %v720_v41 = vpop.f32.mrf.mxu1 }
 0x215   : > { %764 = vst.msk [vmem:[#allocation2 + $0x78] sm:$0xff] %vm748_vm3, %v747_v40  ;;  %v745_v42 = vadd.f32 %v720_v41, %v560_v39 }
 0x217   : > { %762 = vst.msk [vmem:[#allocation2 + $0x68] sm:$0xff] %vm748_vm3, %v745_v42 }
 0x218   : > { %v769_v43 = vld [vmem:[#allocation2] sm:$0xff]  ;;  %v770_v45 = vld [vmem:[#allocation2 + $0x8] sm:$0xff]  ;;  %v771_v48 = vld [vmem:[#allocation2 + $0x10] sm:$0xff]  ;;  %vm888_vm4 = vcmask 781312  }
 0x219   : > { %v1033_v44 = vld [vmem:[%s1531_s3] ss:$0 sm:$0xff]  ;;  %v772_v49 = vld [vmem:[#allocation2 + $0x18] sm:$0xff]  ;;  %v774_v54 = vld [vmem:[#allocation2 + $0x28] sm:$0xff] }
 0x21a   : > { %v792_v46 = vadd.f32 %v1033_v44, %v769_v43  ;;  %v793_v47 = vadd.f32 %v1033_v44, %v770_v45  ;;  %v773_v50 = vld [vmem:[#allocation2 + $0x20] sm:$0xff]  ;;  %v794_v51 = vadd.f32 %v1033_v44, %v771_v48  ;;  %v795_v52 = vadd.f32 %v1033_v44, %v772_v49  ;;  %v775_v55 = vld [vmem:[#allocation2 + $0x30] sm:$0xff]  ;;  %v776_v56 = vld [vmem:[#allocation2 + $0x38] sm:$0xff] }
 0x21b   : > { %v796_v53 = vadd.f32 %v1033_v44, %v773_v50  ;;  %v797_v59 = vadd.f32 %v1033_v44, %v774_v54  ;;  %v798_v60 = vadd.f32 %v1033_v44, %v775_v55  ;;  %v799_v0 = vadd.f32 %v1033_v44, %v776_v56  ;;  %v777_v1 = vld [vmem:[#allocation2 + $0x40] sm:$0xff]  ;;  %v778_v2 = vld [vmem:[#allocation2 + $0x48] sm:$0xff]  ;;  %v779_v7 = vld [vmem:[#allocation2 + $0x50] sm:$0xff] }
 0x21c   : > { %v808_v57 = vmax.f32 %v792_v46, 0.0  ;;  %v809_v58 = vmax.f32 %v793_v47, 0.0  ;;  %v810_v61 = vmax.f32 %v794_v51, 0.0  ;;  %v811_v62 = vmax.f32 %v795_v52, 0.0  ;;  %v780_v8 = vld [vmem:[#allocation2 + $0x58] sm:$0xff]  ;;  %v781_v9 = vld [vmem:[#allocation2 + $0x60] sm:$0xff] }
 0x21d   : > { %v812_v63 = vmax.f32 %v796_v53, 0.0  ;;  %v813_v5 = vmax.f32 %v797_v59, 0.0  ;;  %v814_v6 = vmax.f32 %v798_v60, 0.0  ;;  %v815_v13 = vmax.f32 %v799_v0, 0.0  ;;  %v783_v15 = vld [vmem:[#allocation2 + $0x70] sm:$0xff]  ;;  %v784_v20 = vld [vmem:[#allocation2 + $0x78] sm:$0xff] }
 0x21e   : > { %v1053_v3 = vpack.c.bf16 %v808_v57, %v808_v57  ;;  %v1054_v4 = vpack.c.bf16 %v809_v58, %v809_v58  ;;  %v1055_v10 = vpack.c.bf16 %v810_v61, %v810_v61  ;;  %v1056_v11 = vpack.c.bf16 %v811_v62, %v811_v62  ;;  %v782_v14 = vld [vmem:[#allocation2 + $0x68] sm:$0xff] }
 0x21f   : > { %v1057_v12 = vpack.c.bf16 %v812_v63, %v812_v63  ;;  %v1058_v16 = vpack.c.bf16 %v813_v5, %v813_v5  ;;  %v1059_v17 = vpack.c.bf16 %v814_v6, %v814_v6  ;;  %v800_v18 = vadd.f32 %v1033_v44, %v777_v1 }
 0x220   : > { %889 = vst.msk [vmem:[%s1407_s7] sm:$0xf] %vm888_vm4, %v1053_v3  ;;  %890 = vst.msk [vmem:[%s1407_s7 + $0x4] sm:$0xf] %vm888_vm4, %v1054_v4  ;;  %v801_v19 = vadd.f32 %v1033_v44, %v778_v2  ;;  %v1060_v21 = vpack.c.bf16 %v815_v13, %v815_v13  ;;  %v802_v22 = vadd.f32 %v1033_v44, %v779_v7 }
 0x221   : > { %891 = vst.msk [vmem:[%s1407_s7 + $0x8] sm:$0xf] %vm888_vm4, %v1055_v10  ;;  %892 = vst.msk [vmem:[%s1407_s7 + $0xc] sm:$0xf] %vm888_vm4, %v1056_v11  ;;  %v803_v23 = vadd.f32 %v1033_v44, %v780_v8  ;;  %v804_v24 = vadd.f32 %v1033_v44, %v781_v9  ;;  %v816_v25 = vmax.f32 %v800_v18, 0.0  ;;  %v805_v27 = vadd.f32 %v1033_v44, %v782_v14 }
 0x222   : > { %893 = vst.msk [vmem:[%s1407_s7 + $0x10] sm:$0xf] %vm888_vm4, %v1057_v12  ;;  %894 = vst.msk [vmem:[%s1407_s7 + $0x14] sm:$0xf] %vm888_vm4, %v1058_v16  ;;  %v817_v26 = vmax.f32 %v801_v19, 0.0  ;;  %v806_v28 = vadd.f32 %v1033_v44, %v783_v15  ;;  %v818_v29 = vmax.f32 %v802_v22, 0.0  ;;  %v807_v32 = vadd.f32 %v1033_v44, %v784_v20 }
 0x223   : > { %895 = vst.msk [vmem:[%s1407_s7 + $0x18] sm:$0xf] %vm888_vm4, %v1059_v17  ;;  %896 = vst.msk [vmem:[%s1407_s7 + $0x1c] sm:$0xf] %vm888_vm4, %v1060_v21  ;;  %v819_v30 = vmax.f32 %v803_v23, 0.0  ;;  %v820_v31 = vmax.f32 %v804_v24, 0.0  ;;  %v1061_v33 = vpack.c.bf16 %v816_v25, %v816_v25 }
 0x224   : > { %v1062_v34 = vpack.c.bf16 %v817_v26, %v817_v26  ;;  %v821_v35 = vmax.f32 %v805_v27, 0.0  ;;  %v822_v36 = vmax.f32 %v806_v28, 0.0  ;;  %v1063_v37 = vpack.c.bf16 %v818_v29, %v818_v29 }
 0x225   : > { %v1064_v38 = vpack.c.bf16 %v819_v30, %v819_v30  ;;  %v1065_v39 = vpack.c.bf16 %v820_v31, %v820_v31  ;;  %v823_v40 = vmax.f32 %v807_v32, 0.0  ;;  %897 = vst.msk [vmem:[%s1407_s7 + $0x20] sm:$0xf] %vm888_vm4, %v1061_v33 }
 0x226   : > { %898 = vst.msk [vmem:[%s1407_s7 + $0x24] sm:$0xf] %vm888_vm4, %v1062_v34  ;;  %v1066_v41 = vpack.c.bf16 %v821_v35, %v821_v35  ;;  %v1067_v42 = vpack.c.bf16 %v822_v36, %v822_v36  ;;  %899 = vst.msk [vmem:[%s1407_s7 + $0x28] sm:$0xf] %vm888_vm4, %v1063_v37 }
 0x227   : > { %900 = vst.msk [vmem:[%s1407_s7 + $0x2c] sm:$0xf] %vm888_vm4, %v1064_v38  ;;  %901 = vst.msk [vmem:[%s1407_s7 + $0x30] sm:$0xf] %vm888_vm4, %v1065_v39  ;;  %v1068_v43 = vpack.c.bf16 %v823_v40, %v823_v40 }
 0x228   : > { %902 = vst.msk [vmem:[%s1407_s7 + $0x34] sm:$0xf] %vm888_vm4, %v1066_v41  ;;  %903 = vst.msk [vmem:[%s1407_s7 + $0x38] sm:$0xf] %vm888_vm4, %v1067_v42 }
 0x229   : > { %904 = vst.msk [vmem:[%s1407_s7 + $0x3c] sm:$0xf] %vm888_vm4, %v1068_v43 }
 0x22a PF: > { %s14_s21 = sadd.s32 1, %s1288_s21   ;;  %s1533_s15 = smov %s1268_s16 }
 0x22b   : > { %p11_p0 = scmp.ge.s32.totalorder %s14_s21, 6   ;;  %s1534_s16 = smov %s1367_s28 }
 0x22c   : > { %s1535_s17 = smov %s1280_s19  ;;  %s1536_s18 = smov %s1284_s20 }
 0x22d   : > { %s1537_s19 = smov %s1540_s22  ;;  %s1538_s20 = smov %s1544_s23 }
 0x22e   :  { %13 = sbr.rel (!%p11_p0) target bundleno = 4 (0x4), region = 123 }

// kernel: gcn_ogb_moe_forward.10
= control target key start
LH: loop header
LB: loop body
LE: loop exit
PB: predicated region body
PF: predicated region fallthrough
CT: control target
= control target key end

     0   :  { %s1358_s15 = smov 0   ;;  %s1360_s16 = smov 0   ;;  %s1579_s0 = inlined_call_operand.vmem [shape: bf16[256,256], index: 0, kind: input, shape index: {}]   ;;  %s1580_s1 = inlined_call_operand.vmem [shape: bf16[256,64], index: 1, kind: input, shape index: {}]   ;;  %s1581_s2 = inlined_call_operand.vmem [shape: bf16[64,64], index: 2, kind: input, shape index: {}]   ;;  %s1582_s3 = inlined_call_operand.vmem [shape: f32[1,64], index: 3, kind: input, shape index: {}]   ;;  %s1583_s4 = inlined_call_operand.vmem [shape: bf16[256,64], index: 4, kind: output, shape index: {}]  }
   0x1   :  { %s1362_s17 = smov 0   ;;  %s1364_s18 = smov 0  }
   0x2   :  { %s1366_s19 = smov 0   ;;  %s1368_s20 = smov 0  }
   0x3   :  { %s1370_s21 = smov 0  }
   0x4 LB: > { %s23_s22 = sadd.s32 1, %s1322_s19  ;;  %s26_s23 = sadd.s32 1, %s1326_s20  ;;  %s1330_s21 = sphi %s1370_s21, %s14_s21   ;;  %s1326_s20 = sphi %s1368_s20, %s1589_s20   ;;  %s1322_s19 = sphi %s1366_s19, %s1588_s19   ;;  %s1318_s18 = sphi %s1364_s18, %s1587_s18   ;;  %s1314_s17 = sphi %s1362_s17, %s1586_s17   ;;  %s1310_s16 = sphi %s1360_s16, %s1585_s16   ;;  %s1306_s15 = sphi %s1358_s15, %s1584_s15  }
   0x5   : > { %p24_p0 = scmp.ge.s32.totalorder %s23_s22, 2  ;;  %p42_p1 = scmp.ne.s32.totalorder %s1310_s16, %s1306_s15 }
   0x6   : > { %p43_p2 = scmp.eq.s32.totalorder %s1330_s21, 0  ;;  %s35_s27 = sadd.s32 1, %s1310_s16 }
   0x7   : > { %s1591_s22 = smov (%p24_p0, %s23_s22), 0  ;;  %s1593_s23 = smov (!%p24_p0, %s26_s23), %s1326_s20 }
   0x8   : > { %p44_p3 = por %p43_p2, %p42_p1  ;;  %p28_p4 = scmp.ge.s32.totalorder %s1593_s23, 2 }
   0x9   : > { %s31_s24 = ssub.s32 %s1322_s19, %s1591_s22  ;;  %p1022_p6 = scmp.ge.s32.totalorder %s1330_s21, 4 }
   0xa   : > { %s1595_s23 = smov (%p28_p4, %s1593_s23), 0 }
   0xb   : > { %s30_s25 = ssub.s32 %s1326_s20, %s1595_s23  ;;  %168 = sbr.rel (%p1022_p6) target bundleno = 32 (0x20), region = 24 }
   0xc   : > { %s32_s26 = sor.u32 %s31_s24, %s30_s25 }
   0xd   : > { %p33_p5 = scmp.eq.s32.totalorder %s32_s26, 0 }
   0xf   : > { %s1409_s28 = scalar_select %p33_p5, %s1310_s16, %s35_s27  }
  0x10   : > { %171 = sbr.rel (!%p44_p3) target bundleno = 32 (0x20), region = 28  ;;  %s173_s29 = sand.u32 (%p44_p3), 1, %s1310_s16  }
  0x11   : > { %s1082_s30 = sshll.u32 (%p44_p3), %s1326_s20, 5  ;;  %s1023_s5 = sshll.u32 (%p44_p3), %s173_s29, 6 }
  0x12   : > { %s178_s6 = sadd.s32 (%p44_p3), %s1322_s19, %s1082_s30  ;;  %s175_s11 = scalar_lea.vmem (%p44_p3), [#allocation3], %s1023_s5 }
  0x13   : > { %s1026_s7 = sshll.u32 (%p44_p3), %s178_s6, 2 }
  0x14   : > { %s1418_s10 = scalar_lea.vmem (%p44_p3), %s1579_s0, %s1026_s7 }
  0x15   : > { %v197_v0 = vld [vmem:[%s1418_s10] sm:$0xf]  ;;  %v199_v1 = vld [vmem:[%s1418_s10 + $0x8] sm:$0xf]  ;;  %v201_v2 = vld [vmem:[%s1418_s10 + $0x10] sm:$0xf] }
  0x16   : > { %198 = vst [vmem:[%s175_s11] sm:$0xf] %v197_v0  ;;  %200 = vst [vmem:[%s175_s11 + $0x4] sm:$0xf] %v199_v1  ;;  %v203_v3 = vld [vmem:[%s1418_s10 + $0x18] sm:$0xf] }
  0x17   : > { %202 = vst [vmem:[%s175_s11 + $0x8] sm:$0xf] %v201_v2  ;;  %v205_v4 = vld [vmem:[%s1418_s10 + $0x20] sm:$0xf]  ;;  %v207_v5 = vld [vmem:[%s1418_s10 + $0x28] sm:$0xf] }
  0x18   : > { %204 = vst [vmem:[%s175_s11 + $0xc] sm:$0xf] %v203_v3  ;;  %206 = vst [vmem:[%s175_s11 + $0x10] sm:$0xf] %v205_v4  ;;  %v209_v6 = vld [vmem:[%s1418_s10 + $0x30] sm:$0xf] }
  0x19   : > { %208 = vst [vmem:[%s175_s11 + $0x14] sm:$0xf] %v207_v5  ;;  %v211_v7 = vld [vmem:[%s1418_s10 + $0x38] sm:$0xf]  ;;  %v213_v8 = vld [vmem:[%s1418_s10 + $0x40] sm:$0xf] }
  0x1a   : > { %210 = vst [vmem:[%s175_s11 + $0x18] sm:$0xf] %v209_v6  ;;  %212 = vst [vmem:[%s175_s11 + $0x1c] sm:$0xf] %v211_v7  ;;  %v215_v9 = vld [vmem:[%s1418_s10 + $0x48] sm:$0xf] }
  0x1b   : > { %214 = vst [vmem:[%s175_s11 + $0x20] sm:$0xf] %v213_v8  ;;  %v217_v10 = vld [vmem:[%s1418_s10 + $0x50] sm:$0xf]  ;;  %v219_v11 = vld [vmem:[%s1418_s10 + $0x58] sm:$0xf] }
  0x1c   : > { %216 = vst [vmem:[%s175_s11 + $0x24] sm:$0xf] %v215_v9  ;;  %218 = vst [vmem:[%s175_s11 + $0x28] sm:$0xf] %v217_v10  ;;  %v221_v12 = vld [vmem:[%s1418_s10 + $0x60] sm:$0xf] }
  0x1d   : > { %220 = vst [vmem:[%s175_s11 + $0x2c] sm:$0xf] %v219_v11  ;;  %v223_v13 = vld [vmem:[%s1418_s10 + $0x68] sm:$0xf]  ;;  %v225_v14 = vld [vmem:[%s1418_s10 + $0x70] sm:$0xf] }
  0x1e   : > { %222 = vst [vmem:[%s175_s11 + $0x30] sm:$0xf] %v221_v12  ;;  %224 = vst [vmem:[%s175_s11 + $0x34] sm:$0xf] %v223_v13  ;;  %v227_v15 = vld [vmem:[%s1418_s10 + $0x78] sm:$0xf] }
  0x1f   : > { %226 = vst [vmem:[%s175_s11 + $0x38] sm:$0xf] %v225_v14  ;;  %228 = vst [vmem:[%s175_s11 + $0x3c] sm:$0xf] %v227_v15 }
  0x20 PF: > { %p1027_p7 = scmp.ge.s32.totalorder %s1330_s21, 1  ;;  %p292_p8 = scmp.lt.s32.totalorder %s1330_s21, 5 }
  0x22   : > { %p293_p9 = pnand %p1027_p7, %p292_p8 }
  0x23   : > { %s299_s12 = sand.u32 (!%p293_p9), 1, %s1306_s15   ;;  %s1029_s13 = sshll.u32 (!%p293_p9), %s1314_s17, 4 }
  0x24   : > { %296 = sbr.rel (%p293_p9) target bundleno = 566 (0x236), region = 73  ;;  %s1028_s14 = sshll.u32 (!%p293_p9), %s299_s12, 6 }
  0x25   : > { %p331_p10 = scmp.lt.s32.totalorder (!%p293_p9), %s1029_s13, 31  ;;  %s1031_s24 = sshll.u32 (!%p293_p9), %s1318_s18, 4 }
  0x26   : > { %p337_p11 = scmp.lt.s32.totalorder (!%p293_p9), %s1031_s24, 31  ;;  %s1451_s15 = scalar_lea.vmem (!%p293_p9), [#allocation3], %s1028_s14 }
  0x27   : > { %p1033_p12 = scmp.ne.s32.totalorder (!%p293_p9), %s1314_s17, 0 }
  0x29   : > { %s1597_s13 = smov (!%p331_p10, %s1029_s13), 31  ;;  %s1599_s24 = smov (!%p337_p11, %s1031_s24), 31 }
  0x2a   : > { %s1030_s25 = sshll.u32 %s1597_s13, 2  ;;  %s1032_s30 = sshll.u32 %s1599_s24, 2 }
  0x2b   : > { %s1444_s29 = scalar_lea.vmem %s1580_s1, %s1030_s25  ;;  %s1449_s7 = scalar_lea.vmem %s1583_s4, %s1032_s30 }
  0x2c   : > { %346 = sbr.rel (%p1033_p12) target bundleno = 58 (0x3a), region = 81 }
  0x31   : > { %vm347_vm0 = vcmask 523264   ;;  %v1332_v16 = vmov 0.0  }
  0x32   : > { %348 = vst.msk [vmem:[#allocation2] sm:$0xff] %vm347_vm0, %v1332_v16  ;;  %349 = vst.msk [vmem:[#allocation2 + $0x8] sm:$0xff] %vm347_vm0, %v1332_v16 }
  0x33   : > { %350 = vst.msk [vmem:[#allocation2 + $0x10] sm:$0xff] %vm347_vm0, %v1332_v16  ;;  %351 = vst.msk [vmem:[#allocation2 + $0x18] sm:$0xff] %vm347_vm0, %v1332_v16 }
  0x34   : > { %352 = vst.msk [vmem:[#allocation2 + $0x20] sm:$0xff] %vm347_vm0, %v1332_v16  ;;  %353 = vst.msk [vmem:[#allocation2 + $0x28] sm:$0xff] %vm347_vm0, %v1332_v16 }
  0x35   : > { %354 = vst.msk [vmem:[#allocation2 + $0x30] sm:$0xff] %vm347_vm0, %v1332_v16  ;;  %355 = vst.msk [vmem:[#allocation2 + $0x38] sm:$0xff] %vm347_vm0, %v1332_v16 }
  0x36   : > { %356 = vst.msk [vmem:[#allocation2 + $0x40] sm:$0xff] %vm347_vm0, %v1332_v16  ;;  %357 = vst.msk [vmem:[#allocation2 + $0x48] sm:$0xff] %vm347_vm0, %v1332_v16 }
  0x37   : > { %358 = vst.msk [vmem:[#allocation2 + $0x50] sm:$0xff] %vm347_vm0, %v1332_v16  ;;  %359 = vst.msk [vmem:[#allocation2 + $0x58] sm:$0xff] %vm347_vm0, %v1332_v16 }
  0x38   : > { %360 = vst.msk [vmem:[#allocation2 + $0x60] sm:$0xff] %vm347_vm0, %v1332_v16  ;;  %361 = vst.msk [vmem:[#allocation2 + $0x68] sm:$0xff] %vm347_vm0, %v1332_v16 }
  0x39   : > { %362 = vst.msk [vmem:[#allocation2 + $0x70] sm:$0xff] %vm347_vm0, %v1332_v16  ;;  %363 = vst.msk [vmem:[#allocation2 + $0x78] sm:$0xff] %vm347_vm0, %v1332_v16 }
  0x3a PF: > { %v1256_v17 = vld [vmem:[%s1581_s2 + $0x18] sm:$0xff]   ;;  %v1257_v18 = vld [vmem:[%s1581_s2 + $0x10] sm:$0xff]   ;;  %v1258_v19 = vld [vmem:[%s1581_s2 + $0x8] sm:$0xff]   ;;  %vm452_vm1 = vcmask 523264   ;;  %p1062_p13 = scmp.ne.s32.totalorder %s1314_s17, 1 }
  0x3b   : > { %1127 = vmatprep.subr.bf16.mxu0 %v1256_v17  ;;  %v1260_v20 = vld [vmem:[%s1444_s29] sm:$0xff]   ;;  %v1261_v22 = vld [vmem:[%s1444_s29 + $0x8] sm:$0xff]   ;;  %v1262_v23 = vld [vmem:[%s1444_s29 + $0x10] sm:$0xff]  }
  0x3c   : > { %1128 = vmatpush3.bf16.msra.mxu0 %v1256_v17  ;;  %1135 = vmatprep.mubr.msk.bf16.mxu0 %vm452_vm1, %v1260_v20  ;;  %v1259_v21 = vld [vmem:[%s1581_s2] sm:$0xff]   ;;  %v1263_v24 = vld [vmem:[%s1444_s29 + $0x18] sm:$0xff]   ;;  %v1265_v26 = vld [vmem:[%s1444_s29 + $0x28] sm:$0xff]  }
  0x3d   : > { %1129 = vmatprep.subr.bf16.mxu0 %v1257_v18  ;;  %v1264_v25 = vld [vmem:[%s1444_s29 + $0x20] sm:$0xff]   ;;  %v1266_v27 = vld [vmem:[%s1444_s29 + $0x30] sm:$0xff]   ;;  %v1267_v28 = vld [vmem:[%s1444_s29 + $0x38] sm:$0xff]  }
  0x3e   : > { %v1268_v29 = vld [vmem:[%s1451_s15 + $0x10] sm:$0xff]   ;;  %v1272_v30 = vld [vmem:[%s1451_s15] sm:$0xff]   ;;  %v1269_v55 = vld [vmem:[%s1451_s15 + $0x18] sm:$0xff]  }
  0x3f   : > { %1171 = vmatprep.mubr.bf16.mxu1 %v1268_v29  ;;  %v1273_v56 = vld [vmem:[%s1451_s15 + $0x8] sm:$0xff]   ;;  %v1270_v57 = vld [vmem:[%s1451_s15 + $0x20] sm:$0xff]   ;;  %v1274_v59 = vld [vmem:[%s1451_s15 + $0x30] sm:$0xff]  }
  0x40   : > { %1130 = vmatpush3.bf16.msra.mxu0 %v1257_v18  ;;  %v1271_v58 = vld [vmem:[%s1451_s15 + $0x28] sm:$0xff]   ;;  %v1275_v60 = vld [vmem:[%s1451_s15 + $0x38] sm:$0xff]   ;;  %v580_v61 = vld [vmem:[#allocation2 + $0x30] sm:$0xff] }
  0x41   : > { %1131 = vmatprep.subr.bf16.mxu0 %v1258_v19  ;;  %v576_v62 = vld [vmem:[#allocation2 + $0x10] sm:$0xff]  ;;  %v578_v0 = vld [vmem:[#allocation2 + $0x20] sm:$0xff]  ;;  %v581_v6 = vld [vmem:[#allocation2 + $0x38] sm:$0xff] }
  0x42   : > { %v574_v2 = vld [vmem:[#allocation2] sm:$0xff]  ;;  %v577_v8 = vld [vmem:[#allocation2 + $0x18] sm:$0xff]  ;;  %v579_v12 = vld [vmem:[#allocation2 + $0x28] sm:$0xff] }
  0x43   : > { %v575_v14 = vld [vmem:[#allocation2 + $0x8] sm:$0xff]  ;;  %v584_v18 = vld [vmem:[#allocation2 + $0x50] sm:$0xff] }
  0x44   : > { %1132 = vmatpush3.bf16.msra.mxu0 %v1258_v19  ;;  %v583_v29 = vld [vmem:[#allocation2 + $0x48] sm:$0xff] }
  0x45   : > { %1133 = vmatprep.subr.bf16.mxu0 %v1259_v21 }
  0x48   : > { %1134 = vmatpush3.bf16.msra.mxu0 %v1259_v21 }
  0x4b   : > { %1136 = vmatmul.mubr.msk.bf16.vlgmr.msra.gmra.mxu0 %vm452_vm1, %v1261_v22 }
  0x4c   : > { %1139 = vmatprep.mubr.msk.bf16.mxu0 %vm452_vm1, %v1262_v23  ;;  %v582_v23 = vld [vmem:[#allocation2 + $0x40] sm:$0xff] }
  0x53   : > { %1140 = vmatmul.mubr.msk.bf16.gmra.mxu0 %vm452_vm1, %v1263_v24 }
  0x54   : > { %1143 = vmatprep.mubr.msk.bf16.mxu0 %vm452_vm1, %v1264_v25 }
  0x5b   : > { %1144 = vmatmul.mubr.msk.bf16.gmra.mxu0 %vm452_vm1, %v1265_v26  ;;  %v585_v26 = vld [vmem:[#allocation2 + $0x58] sm:$0xff] }
  0x5c   : > { %1147 = vmatprep.mubr.msk.bf16.mxu0 %vm452_vm1, %v1266_v27 }
  0x63   : > { %1148 = vmatmul.mubr.msk.bf16.gmra.mxu0 %vm452_vm1, %v1267_v28 }
  0x64   : > { %1167 = vmatprep.mubr.bf16.mxu0 %v1272_v30 }
 0x10b   : > { %v1137_v31 = vpop.f32.mrf.mxu0 }
 0x10d   : > { %v511_v32 = vpop.f32.mrf.mxu0 }
 0x10f   : > { %v1138_v33 = vpop.f32.mrf.mxu0 }
 0x110   : > { %v607_v53 = vpack.c.bf16 %v1138_v33, %v1137_v31 }
 0x111   : > { %v514_v34 = vpop.f32.mrf.mxu0 }
 0x112   : > { %v606_v54 = vpack.c.bf16 %v514_v34, %v511_v32  ;;  %v588_v32 = vld [vmem:[#allocation2 + $0x70] sm:$0xff] }
 0x113   : > { %v1141_v35 = vpop.f32.mrf.mxu0 }
 0x115   : > { %v527_v36 = vpop.f32.mrf.mxu0 }
 0x117   : > { %v1142_v37 = vpop.f32.mrf.mxu0 }
 0x118   : > { %v609_v51 = vpack.c.bf16 %v1142_v37, %v1141_v35  ;;  %v586_v35 = vld [vmem:[#allocation2 + $0x60] sm:$0xff] }
 0x119   : > { %v530_v38 = vpop.f32.mrf.mxu0 }
 0x11a   : > { %v608_v52 = vpack.c.bf16 %v530_v38, %v527_v36  ;;  %v589_v38 = vld [vmem:[#allocation2 + $0x78] sm:$0xff] }
 0x11b   : > { %v1145_v39 = vpop.f32.mrf.mxu0 }
 0x11d   : > { %v543_v40 = vpop.f32.mrf.mxu0 }
 0x11f   : > { %v1146_v41 = vpop.f32.mrf.mxu0 }
 0x120   : > { %v611_v49 = vpack.c.bf16 %v1146_v41, %v1145_v39  ;;  %v587_v41 = vld [vmem:[#allocation2 + $0x68] sm:$0xff] }
 0x121   : > { %v546_v42 = vpop.f32.mrf.mxu0 }
 0x122   : > { %v610_v50 = vpack.c.bf16 %v546_v42, %v543_v40 }
 0x123   : > { %v1149_v43 = vpop.f32.mrf.mxu0 }
 0x125   : > { %v559_v44 = vpop.f32.mrf.mxu0 }
 0x127   : > { %v1150_v45 = vpop.f32.mrf.mxu0 }
 0x128   : > { %v613_v46 = vpack.c.bf16 %v1150_v45, %v1149_v43 }
 0x129   : > { %v562_v47 = vpop.f32.mrf.mxu0 }
 0x12a   : > { %v612_v48 = vpack.c.bf16 %v562_v47, %v559_v44  ;;  %1151 = vmatprep.subr.bf16.mxu0 %v613_v46  ;;  %1183 = vmatprep.subr.bf16.mxu1 %v613_v46 }
 0x12b   : > { %1152 = vmatpush3.bf16.msra.mxu0 %v613_v46  ;;  %1191 = vmatpush3.bf16.msra.mxu1 %v613_v46 }
 0x12c   : > { %1153 = vmatprep.subr.bf16.mxu0 %v612_v48  ;;  %1184 = vmatprep.subr.bf16.mxu1 %v612_v48 }
 0x12f   : > { %1154 = vmatpush3.bf16.msra.mxu0 %v612_v48  ;;  %1192 = vmatpush3.bf16.msra.mxu1 %v612_v48 }
 0x130   : > { %1155 = vmatprep.subr.bf16.mxu0 %v611_v49  ;;  %1185 = vmatprep.subr.bf16.mxu1 %v611_v49 }
 0x133   : > { %1156 = vmatpush3.bf16.msra.mxu0 %v611_v49  ;;  %1193 = vmatpush3.bf16.msra.mxu1 %v611_v49 }
 0x134   : > { %1157 = vmatprep.subr.bf16.mxu0 %v610_v50  ;;  %1186 = vmatprep.subr.bf16.mxu1 %v610_v50 }
 0x137   : > { %1158 = vmatpush3.bf16.msra.mxu0 %v610_v50  ;;  %1194 = vmatpush3.bf16.msra.mxu1 %v610_v50 }
 0x138   : > { %1159 = vmatprep.subr.bf16.mxu0 %v609_v51  ;;  %1187 = vmatprep.subr.bf16.mxu1 %v609_v51 }
 0x13b   : > { %1160 = vmatpush3.bf16.msra.mxu0 %v609_v51  ;;  %1195 = vmatpush3.bf16.msra.mxu1 %v609_v51 }
 0x13c   : > { %1161 = vmatprep.subr.bf16.mxu0 %v608_v52  ;;  %1188 = vmatprep.subr.bf16.mxu1 %v608_v52 }
 0x13f   : > { %1162 = vmatpush3.bf16.msra.mxu0 %v608_v52  ;;  %1196 = vmatpush3.bf16.msra.mxu1 %v608_v52 }
 0x140   : > { %1163 = vmatprep.subr.bf16.mxu0 %v607_v53  ;;  %1189 = vmatprep.subr.bf16.mxu1 %v607_v53 }
 0x143   : > { %1164 = vmatpush3.bf16.msra.mxu0 %v607_v53  ;;  %1197 = vmatpush3.bf16.msra.mxu1 %v607_v53 }
 0x144   : > { %1165 = vmatprep.subr.bf16.mxu0 %v606_v54  ;;  %1190 = vmatprep.subr.bf16.mxu1 %v606_v54 }
 0x147   : > { %1166 = vmatpush3.bf16.msra.mxu0 %v606_v54  ;;  %1198 = vmatpush3.bf16.msra.mxu1 %v606_v54 }
 0x14a   : > { %1172 = vmatmul.mubr.bf16.vlgmr.msra.gmra.mxu1 %v1269_v55  ;;  %1168 = vmatmul.mubr.bf16.vlgmr.msra.gmra.mxu0 %v1273_v56 }
 0x14b   : > { %1175 = vmatprep.mubr.bf16.mxu1 %v1270_v57 }
 0x152   : > { %1176 = vmatmul.mubr.bf16.gmra.mxu1 %v1271_v58 }
 0x153   : > { %1179 = vmatprep.mubr.bf16.mxu1 %v1274_v59 }
 0x15a   : > { %1180 = vmatmul.mubr.bf16.gmra.mxu1 %v1275_v60 }
 0x20a   : > { %v1173_v63 = vpop.f32.mrf.mxu1  ;;  %v1169_v1 = vpop.f32.mrf.mxu0 }
 0x20b   : > { %v765_v3 = vadd.f32 %v1173_v63, %v580_v61  ;;  %v761_v4 = vadd.f32 %v1169_v1, %v576_v62 }
 0x20c   : > { %v712_v5 = vpop.f32.mrf.mxu1  ;;  %v696_v7 = vpop.f32.mrf.mxu0 }
 0x20d   : > { %781 = vst.msk [vmem:[#allocation2 + $0x30] sm:$0xff] %vm452_vm1, %v765_v3  ;;  %v763_v9 = vadd.f32 %v712_v5, %v578_v0  ;;  %777 = vst.msk [vmem:[#allocation2 + $0x10] sm:$0xff] %vm452_vm1, %v761_v4  ;;  %v759_v10 = vadd.f32 %v696_v7, %v574_v2 }
 0x20e   : > { %v1174_v11 = vpop.f32.mrf.mxu1  ;;  %v1170_v13 = vpop.f32.mrf.mxu0 }
 0x20f   : > { %779 = vst.msk [vmem:[#allocation2 + $0x20] sm:$0xff] %vm452_vm1, %v763_v9  ;;  %v766_v15 = vadd.f32 %v1174_v11, %v581_v6  ;;  %775 = vst.msk [vmem:[#allocation2] sm:$0xff] %vm452_vm1, %v759_v10  ;;  %v762_v16 = vadd.f32 %v1170_v13, %v577_v8 }
 0x210   : > { %v715_v17 = vpop.f32.mrf.mxu1  ;;  %v699_v19 = vpop.f32.mrf.mxu0 }
 0x211   : > { %782 = vst.msk [vmem:[#allocation2 + $0x38] sm:$0xff] %vm452_vm1, %v766_v15  ;;  %v764_v20 = vadd.f32 %v715_v17, %v579_v12  ;;  %778 = vst.msk [vmem:[#allocation2 + $0x18] sm:$0xff] %vm452_vm1, %v762_v16  ;;  %v760_v21 = vadd.f32 %v699_v19, %v575_v14 }
 0x212   : > { %v1177_v22 = vpop.f32.mrf.mxu1 }
 0x213   : > { %780 = vst.msk [vmem:[#allocation2 + $0x28] sm:$0xff] %vm452_vm1, %v764_v20  ;;  %v769_v24 = vadd.f32 %v1177_v22, %v584_v18  ;;  %776 = vst.msk [vmem:[#allocation2 + $0x8] sm:$0xff] %vm452_vm1, %v760_v21 }
 0x214   : > { %v728_v25 = vpop.f32.mrf.mxu1 }
 0x215   : > { %785 = vst.msk [vmem:[#allocation2 + $0x50] sm:$0xff] %vm452_vm1, %v769_v24  ;;  %v767_v27 = vadd.f32 %v728_v25, %v582_v23 }
 0x216   : > { %v1178_v28 = vpop.f32.mrf.mxu1 }
 0x217   : > { %783 = vst.msk [vmem:[#allocation2 + $0x40] sm:$0xff] %vm452_vm1, %v767_v27  ;;  %v770_v30 = vadd.f32 %v1178_v28, %v585_v26 }
 0x218   : > { %v731_v31 = vpop.f32.mrf.mxu1 }
 0x219   : > { %786 = vst.msk [vmem:[#allocation2 + $0x58] sm:$0xff] %vm452_vm1, %v770_v30  ;;  %v768_v33 = vadd.f32 %v731_v31, %v583_v29 }
 0x21a   : > { %v1181_v34 = vpop.f32.mrf.mxu1 }
 0x21b   : > { %784 = vst.msk [vmem:[#allocation2 + $0x48] sm:$0xff] %vm452_vm1, %v768_v33  ;;  %v773_v36 = vadd.f32 %v1181_v34, %v588_v32 }
 0x21c   : > { %v744_v37 = vpop.f32.mrf.mxu1 }
 0x21d   : > { %789 = vst.msk [vmem:[#allocation2 + $0x70] sm:$0xff] %vm452_vm1, %v773_v36  ;;  %v771_v39 = vadd.f32 %v744_v37, %v586_v35 }
 0x21e   : > { %v1182_v40 = vpop.f32.mrf.mxu1 }
 0x21f   : > { %787 = vst.msk [vmem:[#allocation2 + $0x60] sm:$0xff] %vm452_vm1, %v771_v39  ;;  %v774_v42 = vadd.f32 %v1182_v40, %v589_v38  ;;  %794 = sbr.rel (%p1062_p13) target bundleno = 566 (0x236), region = 85 }
 0x220   : > { %v747_v43 = vpop.f32.mrf.mxu1 }
 0x221   : > { %790 = vst.msk [vmem:[#allocation2 + $0x78] sm:$0xff] %vm452_vm1, %v774_v42  ;;  %v772_v44 = vadd.f32 %v747_v43, %v587_v41 }
 0x223   : > { %788 = vst.msk [vmem:[#allocation2 + $0x68] sm:$0xff] %vm452_vm1, %v772_v44 }
 0x224   : > { %v795_v45 = vld [vmem:[#allocation2] sm:$0xff]  ;;  %v796_v47 = vld [vmem:[#allocation2 + $0x8] sm:$0xff]  ;;  %v797_v50 = vld [vmem:[#allocation2 + $0x10] sm:$0xff]  ;;  %vm914_vm2 = vcmask 519168  }
 0x225   : > { %v1063_v46 = vld [vmem:[%s1582_s3] ss:$0 sm:$0xff]  ;;  %v798_v51 = vld [vmem:[#allocation2 + $0x18] sm:$0xff]  ;;  %v800_v56 = vld [vmem:[#allocation2 + $0x28] sm:$0xff] }
 0x226   : > { %v818_v48 = vadd.f32 %v1063_v46, %v795_v45  ;;  %v819_v49 = vadd.f32 %v1063_v46, %v796_v47  ;;  %v799_v52 = vld [vmem:[#allocation2 + $0x20] sm:$0xff]  ;;  %v820_v53 = vadd.f32 %v1063_v46, %v797_v50  ;;  %v821_v54 = vadd.f32 %v1063_v46, %v798_v51  ;;  %v801_v57 = vld [vmem:[#allocation2 + $0x30] sm:$0xff]  ;;  %v802_v58 = vld [vmem:[#allocation2 + $0x38] sm:$0xff] }
 0x227   : > { %v822_v55 = vadd.f32 %v1063_v46, %v799_v52  ;;  %v823_v61 = vadd.f32 %v1063_v46, %v800_v56  ;;  %v824_v62 = vadd.f32 %v1063_v46, %v801_v57  ;;  %v825_v2 = vadd.f32 %v1063_v46, %v802_v58  ;;  %v803_v3 = vld [vmem:[#allocation2 + $0x40] sm:$0xff]  ;;  %v804_v4 = vld [vmem:[#allocation2 + $0x48] sm:$0xff]  ;;  %v805_v9 = vld [vmem:[#allocation2 + $0x50] sm:$0xff] }
 0x228   : > { %v834_v59 = vmax.f32 %v818_v48, 0.0  ;;  %v835_v60 = vmax.f32 %v819_v49, 0.0  ;;  %v836_v63 = vmax.f32 %v820_v53, 0.0  ;;  %v837_v0 = vmax.f32 %v821_v54, 0.0  ;;  %v806_v10 = vld [vmem:[#allocation2 + $0x58] sm:$0xff]  ;;  %v807_v11 = vld [vmem:[#allocation2 + $0x60] sm:$0xff] }
 0x229   : > { %v838_v1 = vmax.f32 %v822_v55, 0.0  ;;  %v839_v7 = vmax.f32 %v823_v61, 0.0  ;;  %v840_v8 = vmax.f32 %v824_v62, 0.0  ;;  %v841_v15 = vmax.f32 %v825_v2, 0.0  ;;  %v809_v17 = vld [vmem:[#allocation2 + $0x70] sm:$0xff]  ;;  %v810_v22 = vld [vmem:[#allocation2 + $0x78] sm:$0xff] }
 0x22a   : > { %v1083_v5 = vpack.c.bf16 %v834_v59, %v834_v59  ;;  %v1084_v6 = vpack.c.bf16 %v835_v60, %v835_v60  ;;  %v1085_v12 = vpack.c.bf16 %v836_v63, %v836_v63  ;;  %v1086_v13 = vpack.c.bf16 %v837_v0, %v837_v0  ;;  %v808_v16 = vld [vmem:[#allocation2 + $0x68] sm:$0xff] }
 0x22b   : > { %v1087_v14 = vpack.c.bf16 %v838_v1, %v838_v1  ;;  %v1088_v18 = vpack.c.bf16 %v839_v7, %v839_v7  ;;  %v1089_v19 = vpack.c.bf16 %v840_v8, %v840_v8  ;;  %v826_v20 = vadd.f32 %v1063_v46, %v803_v3 }
 0x22c   : > { %915 = vst.msk [vmem:[%s1449_s7] sm:$0xf] %vm914_vm2, %v1083_v5  ;;  %916 = vst.msk [vmem:[%s1449_s7 + $0x4] sm:$0xf] %vm914_vm2, %v1084_v6  ;;  %v827_v21 = vadd.f32 %v1063_v46, %v804_v4  ;;  %v1090_v23 = vpack.c.bf16 %v841_v15, %v841_v15  ;;  %v828_v24 = vadd.f32 %v1063_v46, %v805_v9 }
 0x22d   : > { %917 = vst.msk [vmem:[%s1449_s7 + $0x8] sm:$0xf] %vm914_vm2, %v1085_v12  ;;  %918 = vst.msk [vmem:[%s1449_s7 + $0xc] sm:$0xf] %vm914_vm2, %v1086_v13  ;;  %v829_v25 = vadd.f32 %v1063_v46, %v806_v10  ;;  %v830_v26 = vadd.f32 %v1063_v46, %v807_v11  ;;  %v842_v27 = vmax.f32 %v826_v20, 0.0  ;;  %v831_v29 = vadd.f32 %v1063_v46, %v808_v16 }
 0x22e   : > { %919 = vst.msk [vmem:[%s1449_s7 + $0x10] sm:$0xf] %vm914_vm2, %v1087_v14  ;;  %920 = vst.msk [vmem:[%s1449_s7 + $0x14] sm:$0xf] %vm914_vm2, %v1088_v18  ;;  %v843_v28 = vmax.f32 %v827_v21, 0.0  ;;  %v832_v30 = vadd.f32 %v1063_v46, %v809_v17  ;;  %v844_v31 = vmax.f32 %v828_v24, 0.0  ;;  %v833_v34 = vadd.f32 %v1063_v46, %v810_v22 }
 0x22f   : > { %921 = vst.msk [vmem:[%s1449_s7 + $0x18] sm:$0xf] %vm914_vm2, %v1089_v19  ;;  %922 = vst.msk [vmem:[%s1449_s7 + $0x1c] sm:$0xf] %vm914_vm2, %v1090_v23  ;;  %v845_v32 = vmax.f32 %v829_v25, 0.0  ;;  %v846_v33 = vmax.f32 %v830_v26, 0.0  ;;  %v1091_v35 = vpack.c.bf16 %v842_v27, %v842_v27 }
 0x230   : > { %v1092_v36 = vpack.c.bf16 %v843_v28, %v843_v28  ;;  %v847_v37 = vmax.f32 %v831_v29, 0.0  ;;  %v848_v38 = vmax.f32 %v832_v30, 0.0  ;;  %v1093_v39 = vpack.c.bf16 %v844_v31, %v844_v31 }
 0x231   : > { %v1094_v40 = vpack.c.bf16 %v845_v32, %v845_v32  ;;  %v1095_v41 = vpack.c.bf16 %v846_v33, %v846_v33  ;;  %v849_v42 = vmax.f32 %v833_v34, 0.0  ;;  %923 = vst.msk [vmem:[%s1449_s7 + $0x20] sm:$0xf] %vm914_vm2, %v1091_v35 }
 0x232   : > { %924 = vst.msk [vmem:[%s1449_s7 + $0x24] sm:$0xf] %vm914_vm2, %v1092_v36  ;;  %v1096_v43 = vpack.c.bf16 %v847_v37, %v847_v37  ;;  %v1097_v44 = vpack.c.bf16 %v848_v38, %v848_v38  ;;  %925 = vst.msk [vmem:[%s1449_s7 + $0x28] sm:$0xf] %vm914_vm2, %v1093_v39 }
 0x233   : > { %926 = vst.msk [vmem:[%s1449_s7 + $0x2c] sm:$0xf] %vm914_vm2, %v1094_v40  ;;  %927 = vst.msk [vmem:[%s1449_s7 + $0x30] sm:$0xf] %vm914_vm2, %v1095_v41  ;;  %v1098_v45 = vpack.c.bf16 %v849_v42, %v849_v42 }
 0x234   : > { %928 = vst.msk [vmem:[%s1449_s7 + $0x34] sm:$0xf] %vm914_vm2, %v1096_v43  ;;  %929 = vst.msk [vmem:[%s1449_s7 + $0x38] sm:$0xf] %vm914_vm2, %v1097_v44 }
 0x235   : > { %930 = vst.msk [vmem:[%s1449_s7 + $0x3c] sm:$0xf] %vm914_vm2, %v1098_v45 }
 0x236 PF: > { %s14_s21 = sadd.s32 1, %s1330_s21   ;;  %s1584_s15 = smov %s1310_s16 }
 0x237   : > { %p11_p0 = scmp.ge.s32.totalorder %s14_s21, 6   ;;  %s1585_s16 = smov %s1409_s28 }
 0x238   : > { %s1586_s17 = smov %s1322_s19  ;;  %s1587_s18 = smov %s1326_s20 }
 0x239   : > { %s1588_s19 = smov %s1591_s22  ;;  %s1589_s20 = smov %s1595_s23 }
 0x23a   :  { %13 = sbr.rel (!%p11_p0) target bundleno = 4 (0x4), region = 123 }

// kernel: gcn_ogb_moe_forward.12
= control target key start
LH: loop header
LB: loop body
LE: loop exit
PB: predicated region body
PF: predicated region fallthrough
CT: control target
= control target key end

     0   :  { %s1332_s15 = smov 0   ;;  %s1334_s16 = smov 0   ;;  %s1547_s0 = inlined_call_operand.vmem [shape: bf16[256,256], index: 0, kind: input, shape index: {}]   ;;  %s1548_s1 = inlined_call_operand.vmem [shape: bf16[256,32], index: 1, kind: input, shape index: {}]   ;;  %s1549_s2 = inlined_call_operand.vmem [shape: bf16[32,32], index: 2, kind: input, shape index: {}]   ;;  %s1550_s3 = inlined_call_operand.vmem [shape: f32[1,32], index: 3, kind: input, shape index: {}]   ;;  %s1551_s4 = inlined_call_operand.vmem [shape: bf16[256,32], index: 4, kind: output, shape index: {}]  }
   0x1   :  { %s1336_s17 = smov 0   ;;  %s1338_s18 = smov 0  }
   0x2   :  { %s1340_s19 = smov 0   ;;  %s1342_s20 = smov 0  }
   0x3   :  { %s1344_s21 = smov 0  }
   0x4 LB: > { %s23_s22 = sadd.s32 1, %s1296_s19  ;;  %s26_s23 = sadd.s32 1, %s1300_s20  ;;  %s1304_s21 = sphi %s1344_s21, %s14_s21   ;;  %s1300_s20 = sphi %s1342_s20, %s1557_s20   ;;  %s1296_s19 = sphi %s1340_s19, %s1556_s19   ;;  %s1292_s18 = sphi %s1338_s18, %s1555_s18   ;;  %s1288_s17 = sphi %s1336_s17, %s1554_s17   ;;  %s1284_s16 = sphi %s1334_s16, %s1553_s16   ;;  %s1280_s15 = sphi %s1332_s15, %s1552_s15  }
   0x5   : > { %p24_p0 = scmp.ge.s32.totalorder %s23_s22, 2  ;;  %p42_p1 = scmp.ne.s32.totalorder %s1284_s16, %s1280_s15 }
   0x6   : > { %p43_p2 = scmp.eq.s32.totalorder %s1304_s21, 0  ;;  %s35_s27 = sadd.s32 1, %s1284_s16 }
   0x7   : > { %s1559_s22 = smov (%p24_p0, %s23_s22), 0  ;;  %s1561_s23 = smov (!%p24_p0, %s26_s23), %s1300_s20 }
   0x8   : > { %p44_p3 = por %p43_p2, %p42_p1  ;;  %p28_p4 = scmp.ge.s32.totalorder %s1561_s23, 2 }
   0x9   : > { %s31_s24 = ssub.s32 %s1296_s19, %s1559_s22  ;;  %p1006_p6 = scmp.ge.s32.totalorder %s1304_s21, 4 }
   0xa   : > { %s1563_s23 = smov (%p28_p4, %s1561_s23), 0 }
   0xb   : > { %s30_s25 = ssub.s32 %s1300_s20, %s1563_s23  ;;  %168 = sbr.rel (%p1006_p6) target bundleno = 32 (0x20), region = 24 }
   0xc   : > { %s32_s26 = sor.u32 %s31_s24, %s30_s25 }
   0xd   : > { %p33_p5 = scmp.eq.s32.totalorder %s32_s26, 0 }
   0xf   : > { %s1383_s28 = scalar_select %p33_p5, %s1284_s16, %s35_s27  }
  0x10   : > { %171 = sbr.rel (!%p44_p3) target bundleno = 32 (0x20), region = 28  ;;  %s173_s29 = sand.u32 (%p44_p3), 1, %s1284_s16  }
  0x11   : > { %s1064_s30 = sshll.u32 (%p44_p3), %s1300_s20, 5  ;;  %s1007_s5 = sshll.u32 (%p44_p3), %s173_s29, 6 }
  0x12   : > { %s178_s6 = sadd.s32 (%p44_p3), %s1296_s19, %s1064_s30  ;;  %s175_s11 = scalar_lea.vmem (%p44_p3), [#allocation3], %s1007_s5 }
  0x13   : > { %s1010_s7 = sshll.u32 (%p44_p3), %s178_s6, 2 }
  0x14   : > { %s1392_s10 = scalar_lea.vmem (%p44_p3), %s1547_s0, %s1010_s7 }
  0x15   : > { %v197_v0 = vld [vmem:[%s1392_s10] sm:$0xf]  ;;  %v199_v1 = vld [vmem:[%s1392_s10 + $0x8] sm:$0xf]  ;;  %v201_v2 = vld [vmem:[%s1392_s10 + $0x10] sm:$0xf] }
  0x16   : > { %198 = vst [vmem:[%s175_s11] sm:$0xf] %v197_v0  ;;  %200 = vst [vmem:[%s175_s11 + $0x4] sm:$0xf] %v199_v1  ;;  %v203_v3 = vld [vmem:[%s1392_s10 + $0x18] sm:$0xf] }
  0x17   : > { %202 = vst [vmem:[%s175_s11 + $0x8] sm:$0xf] %v201_v2  ;;  %v205_v4 = vld [vmem:[%s1392_s10 + $0x20] sm:$0xf]  ;;  %v207_v5 = vld [vmem:[%s1392_s10 + $0x28] sm:$0xf] }
  0x18   : > { %204 = vst [vmem:[%s175_s11 + $0xc] sm:$0xf] %v203_v3  ;;  %206 = vst [vmem:[%s175_s11 + $0x10] sm:$0xf] %v205_v4  ;;  %v209_v6 = vld [vmem:[%s1392_s10 + $0x30] sm:$0xf] }
  0x19   : > { %208 = vst [vmem:[%s175_s11 + $0x14] sm:$0xf] %v207_v5  ;;  %v211_v7 = vld [vmem:[%s1392_s10 + $0x38] sm:$0xf]  ;;  %v213_v8 = vld [vmem:[%s1392_s10 + $0x40] sm:$0xf] }
  0x1a   : > { %210 = vst [vmem:[%s175_s11 + $0x18] sm:$0xf] %v209_v6  ;;  %212 = vst [vmem:[%s175_s11 + $0x1c] sm:$0xf] %v211_v7  ;;  %v215_v9 = vld [vmem:[%s1392_s10 + $0x48] sm:$0xf] }
  0x1b   : > { %214 = vst [vmem:[%s175_s11 + $0x20] sm:$0xf] %v213_v8  ;;  %v217_v10 = vld [vmem:[%s1392_s10 + $0x50] sm:$0xf]  ;;  %v219_v11 = vld [vmem:[%s1392_s10 + $0x58] sm:$0xf] }
  0x1c   : > { %216 = vst [vmem:[%s175_s11 + $0x24] sm:$0xf] %v215_v9  ;;  %218 = vst [vmem:[%s175_s11 + $0x28] sm:$0xf] %v217_v10  ;;  %v221_v12 = vld [vmem:[%s1392_s10 + $0x60] sm:$0xf] }
  0x1d   : > { %220 = vst [vmem:[%s175_s11 + $0x2c] sm:$0xf] %v219_v11  ;;  %v223_v13 = vld [vmem:[%s1392_s10 + $0x68] sm:$0xf]  ;;  %v225_v14 = vld [vmem:[%s1392_s10 + $0x70] sm:$0xf] }
  0x1e   : > { %222 = vst [vmem:[%s175_s11 + $0x30] sm:$0xf] %v221_v12  ;;  %224 = vst [vmem:[%s175_s11 + $0x34] sm:$0xf] %v223_v13  ;;  %v227_v15 = vld [vmem:[%s1392_s10 + $0x78] sm:$0xf] }
  0x1f   : > { %226 = vst [vmem:[%s175_s11 + $0x38] sm:$0xf] %v225_v14  ;;  %228 = vst [vmem:[%s175_s11 + $0x3c] sm:$0xf] %v227_v15 }
  0x20 PF: > { %p1011_p7 = scmp.ge.s32.totalorder %s1304_s21, 1  ;;  %p292_p8 = scmp.lt.s32.totalorder %s1304_s21, 5 }
  0x22   : > { %p293_p9 = pnand %p1011_p7, %p292_p8 }
  0x23   : > { %s299_s12 = sand.u32 (!%p293_p9), 1, %s1280_s15   ;;  %s1013_s13 = sshll.u32 (!%p293_p9), %s1288_s17, 4 }
  0x24   : > { %296 = sbr.rel (%p293_p9) target bundleno = 558 (0x22e), region = 73  ;;  %s1012_s14 = sshll.u32 (!%p293_p9), %s299_s12, 6 }
  0x25   : > { %p331_p10 = scmp.lt.s32.totalorder (!%p293_p9), %s1013_s13, 31  ;;  %s1015_s24 = sshll.u32 (!%p293_p9), %s1292_s18, 4 }
  0x26   : > { %p337_p11 = scmp.lt.s32.totalorder (!%p293_p9), %s1015_s24, 31  ;;  %s1425_s15 = scalar_lea.vmem (!%p293_p9), [#allocation3], %s1012_s14 }
  0x27   : > { %p1017_p12 = scmp.ne.s32.totalorder (!%p293_p9), %s1288_s17, 0 }
  0x29   : > { %s1565_s13 = smov (!%p331_p10, %s1013_s13), 31  ;;  %s1567_s24 = smov (!%p337_p11, %s1015_s24), 31 }
  0x2a   : > { %s1014_s25 = sshll.u32 %s1565_s13, 2  ;;  %s1016_s30 = sshll.u32 %s1567_s24, 2 }
  0x2b   : > { %s1418_s29 = scalar_lea.vmem %s1548_s1, %s1014_s25  ;;  %s1423_s7 = scalar_lea.vmem %s1551_s4, %s1016_s30 }
  0x2c   : > { %346 = sbr.rel (%p1017_p12) target bundleno = 58 (0x3a), region = 81 }
  0x31   : > { %vm347_vm0 = vcmask 261120   ;;  %v1306_v16 = vmov 0.0  }
  0x32   : > { %348 = vst.msk [vmem:[#allocation2] sm:$0xff] %vm347_vm0, %v1306_v16  ;;  %349 = vst.msk [vmem:[#allocation2 + $0x8] sm:$0xff] %vm347_vm0, %v1306_v16 }
  0x33   : > { %350 = vst.msk [vmem:[#allocation2 + $0x10] sm:$0xff] %vm347_vm0, %v1306_v16  ;;  %351 = vst.msk [vmem:[#allocation2 + $0x18] sm:$0xff] %vm347_vm0, %v1306_v16 }
  0x34   : > { %352 = vst.msk [vmem:[#allocation2 + $0x20] sm:$0xff] %vm347_vm0, %v1306_v16  ;;  %353 = vst.msk [vmem:[#allocation2 + $0x28] sm:$0xff] %vm347_vm0, %v1306_v16 }
  0x35   : > { %354 = vst.msk [vmem:[#allocation2 + $0x30] sm:$0xff] %vm347_vm0, %v1306_v16  ;;  %355 = vst.msk [vmem:[#allocation2 + $0x38] sm:$0xff] %vm347_vm0, %v1306_v16 }
  0x36   : > { %356 = vst.msk [vmem:[#allocation2 + $0x40] sm:$0xff] %vm347_vm0, %v1306_v16  ;;  %357 = vst.msk [vmem:[#allocation2 + $0x48] sm:$0xff] %vm347_vm0, %v1306_v16 }
  0x37   : > { %358 = vst.msk [vmem:[#allocation2 + $0x50] sm:$0xff] %vm347_vm0, %v1306_v16  ;;  %359 = vst.msk [vmem:[#allocation2 + $0x58] sm:$0xff] %vm347_vm0, %v1306_v16 }
  0x38   : > { %360 = vst.msk [vmem:[#allocation2 + $0x60] sm:$0xff] %vm347_vm0, %v1306_v16  ;;  %361 = vst.msk [vmem:[#allocation2 + $0x68] sm:$0xff] %vm347_vm0, %v1306_v16 }
  0x39   : > { %362 = vst.msk [vmem:[#allocation2 + $0x70] sm:$0xff] %vm347_vm0, %v1306_v16  ;;  %363 = vst.msk [vmem:[#allocation2 + $0x78] sm:$0xff] %vm347_vm0, %v1306_v16 }
  0x3a PF: > { %v1232_v17 = vld [vmem:[%s1549_s2 + $0x8] sm:$0xff]   ;;  %v1233_v18 = vld [vmem:[%s1549_s2] sm:$0xff]   ;;  %vm436_vm1 = vcmask 261120   ;;  %v1236_v21 = vld [vmem:[%s1418_s29 + $0x10] sm:$0xff]   ;;  %p1044_p13 = scmp.ne.s32.totalorder %s1288_s17, 1 }
  0x3b   : > { %1107 = vmatprep.subr.bf16.mxu0 %v1232_v17  ;;  %v1234_v19 = vld [vmem:[%s1418_s29] sm:$0xff]   ;;  %v1235_v20 = vld [vmem:[%s1418_s29 + $0x8] sm:$0xff]   ;;  %v1237_v22 = vld [vmem:[%s1418_s29 + $0x18] sm:$0xff]  }
  0x3c   : > { %1108 = vmatpush3.bf16.msra.mxu0 %v1232_v17  ;;  %1111 = vmatprep.mubr.msk.bf16.mxu0 %vm436_vm1, %v1234_v19  ;;  %v1238_v23 = vld [vmem:[%s1418_s29 + $0x20] sm:$0xff]   ;;  %v1239_v24 = vld [vmem:[%s1418_s29 + $0x28] sm:$0xff]   ;;  %v1240_v25 = vld [vmem:[%s1418_s29 + $0x30] sm:$0xff]  }
  0x3d   : > { %1109 = vmatprep.subr.bf16.mxu0 %v1233_v18  ;;  %v1241_v26 = vld [vmem:[%s1418_s29 + $0x38] sm:$0xff]   ;;  %v1242_v27 = vld [vmem:[%s1425_s15 + $0x10] sm:$0xff]   ;;  %v1246_v28 = vld [vmem:[%s1425_s15] sm:$0xff]  }
  0x3e   : > { %1147 = vmatprep.mubr.bf16.mxu1 %v1242_v27  ;;  %v1243_v53 = vld [vmem:[%s1425_s15 + $0x18] sm:$0xff]   ;;  %v1247_v54 = vld [vmem:[%s1425_s15 + $0x8] sm:$0xff]   ;;  %v1244_v55 = vld [vmem:[%s1425_s15 + $0x20] sm:$0xff]  }
  0x3f   : > { %v1245_v56 = vld [vmem:[%s1425_s15 + $0x28] sm:$0xff]   ;;  %v1248_v57 = vld [vmem:[%s1425_s15 + $0x30] sm:$0xff]   ;;  %v1249_v58 = vld [vmem:[%s1425_s15 + $0x38] sm:$0xff]  }
  0x40   : > { %1110 = vmatpush3.bf16.msra.mxu0 %v1233_v18  ;;  %v564_v59 = vld [vmem:[#allocation2 + $0x30] sm:$0xff]  ;;  %v562_v62 = vld [vmem:[#allocation2 + $0x20] sm:$0xff]  ;;  %v565_v4 = vld [vmem:[#allocation2 + $0x38] sm:$0xff] }
  0x41   : > { %v560_v60 = vld [vmem:[#allocation2 + $0x10] sm:$0xff]  ;;  %v558_v0 = vld [vmem:[#allocation2] sm:$0xff]  ;;  %v561_v6 = vld [vmem:[#allocation2 + $0x18] sm:$0xff] }
  0x42   : > { %v563_v10 = vld [vmem:[#allocation2 + $0x28] sm:$0xff]  ;;  %v568_v16 = vld [vmem:[#allocation2 + $0x50] sm:$0xff] }
  0x43   : > { %1112 = vmatmul.mubr.msk.bf16.vlgmr.msra.gmra.mxu0 %vm436_vm1, %v1235_v20  ;;  %v559_v12 = vld [vmem:[#allocation2 + $0x8] sm:$0xff] }
  0x44   : > { %1115 = vmatprep.mubr.msk.bf16.mxu0 %vm436_vm1, %v1236_v21  ;;  %v566_v21 = vld [vmem:[#allocation2 + $0x40] sm:$0xff]  ;;  %v567_v27 = vld [vmem:[#allocation2 + $0x48] sm:$0xff] }
  0x4b   : > { %1116 = vmatmul.mubr.msk.bf16.gmra.mxu0 %vm436_vm1, %v1237_v22 }
  0x4c   : > { %1119 = vmatprep.mubr.msk.bf16.mxu0 %vm436_vm1, %v1238_v23 }
  0x53   : > { %1120 = vmatmul.mubr.msk.bf16.gmra.mxu0 %vm436_vm1, %v1239_v24  ;;  %v569_v24 = vld [vmem:[#allocation2 + $0x58] sm:$0xff] }
  0x54   : > { %1123 = vmatprep.mubr.msk.bf16.mxu0 %vm436_vm1, %v1240_v25 }
  0x5b   : > { %1124 = vmatmul.mubr.msk.bf16.gmra.mxu0 %vm436_vm1, %v1241_v26 }
  0x5c   : > { %1143 = vmatprep.mubr.bf16.mxu0 %v1246_v28 }
 0x103   : > { %v1113_v29 = vpop.f32.mrf.mxu0 }
 0x105   : > { %v495_v30 = vpop.f32.mrf.mxu0 }
 0x107   : > { %v1114_v31 = vpop.f32.mrf.mxu0 }
 0x108   : > { %v591_v51 = vpack.c.bf16 %v1114_v31, %v1113_v29 }
 0x109   : > { %v498_v32 = vpop.f32.mrf.mxu0 }
 0x10a   : > { %v590_v52 = vpack.c.bf16 %v498_v32, %v495_v30  ;;  %v572_v30 = vld [vmem:[#allocation2 + $0x70] sm:$0xff] }
 0x10b   : > { %v1117_v33 = vpop.f32.mrf.mxu0 }
 0x10d   : > { %v511_v34 = vpop.f32.mrf.mxu0 }
 0x10f   : > { %v1118_v35 = vpop.f32.mrf.mxu0 }
 0x110   : > { %v593_v49 = vpack.c.bf16 %v1118_v35, %v1117_v33  ;;  %v570_v33 = vld [vmem:[#allocation2 + $0x60] sm:$0xff] }
 0x111   : > { %v514_v36 = vpop.f32.mrf.mxu0 }
 0x112   : > { %v592_v50 = vpack.c.bf16 %v514_v36, %v511_v34  ;;  %v573_v36 = vld [vmem:[#allocation2 + $0x78] sm:$0xff] }
 0x113   : > { %v1121_v37 = vpop.f32.mrf.mxu0 }
 0x115   : > { %v527_v38 = vpop.f32.mrf.mxu0 }
 0x117   : > { %v1122_v39 = vpop.f32.mrf.mxu0 }
 0x118   : > { %v595_v47 = vpack.c.bf16 %v1122_v39, %v1121_v37  ;;  %v571_v39 = vld [vmem:[#allocation2 + $0x68] sm:$0xff] }
 0x119   : > { %v530_v40 = vpop.f32.mrf.mxu0 }
 0x11a   : > { %v594_v48 = vpack.c.bf16 %v530_v40, %v527_v38 }
 0x11b   : > { %v1125_v41 = vpop.f32.mrf.mxu0 }
 0x11d   : > { %v543_v42 = vpop.f32.mrf.mxu0 }
 0x11f   : > { %v1126_v43 = vpop.f32.mrf.mxu0 }
 0x120   : > { %v597_v44 = vpack.c.bf16 %v1126_v43, %v1125_v41 }
 0x121   : > { %v546_v45 = vpop.f32.mrf.mxu0 }
 0x122   : > { %v596_v46 = vpack.c.bf16 %v546_v45, %v543_v42  ;;  %1127 = vmatprep.subr.bf16.mxu0 %v597_v44  ;;  %1159 = vmatprep.subr.bf16.mxu1 %v597_v44 }
 0x123   : > { %1128 = vmatpush3.bf16.msra.mxu0 %v597_v44  ;;  %1167 = vmatpush3.bf16.msra.mxu1 %v597_v44 }
 0x124   : > { %1129 = vmatprep.subr.bf16.mxu0 %v596_v46  ;;  %1160 = vmatprep.subr.bf16.mxu1 %v596_v46 }
 0x127   : > { %1130 = vmatpush3.bf16.msra.mxu0 %v596_v46  ;;  %1168 = vmatpush3.bf16.msra.mxu1 %v596_v46 }
 0x128   : > { %1131 = vmatprep.subr.bf16.mxu0 %v595_v47  ;;  %1161 = vmatprep.subr.bf16.mxu1 %v595_v47 }
 0x12b   : > { %1132 = vmatpush3.bf16.msra.mxu0 %v595_v47  ;;  %1169 = vmatpush3.bf16.msra.mxu1 %v595_v47 }
 0x12c   : > { %1133 = vmatprep.subr.bf16.mxu0 %v594_v48  ;;  %1162 = vmatprep.subr.bf16.mxu1 %v594_v48 }
 0x12f   : > { %1134 = vmatpush3.bf16.msra.mxu0 %v594_v48  ;;  %1170 = vmatpush3.bf16.msra.mxu1 %v594_v48 }
 0x130   : > { %1135 = vmatprep.subr.bf16.mxu0 %v593_v49  ;;  %1163 = vmatprep.subr.bf16.mxu1 %v593_v49 }
 0x133   : > { %1136 = vmatpush3.bf16.msra.mxu0 %v593_v49  ;;  %1171 = vmatpush3.bf16.msra.mxu1 %v593_v49 }
 0x134   : > { %1137 = vmatprep.subr.bf16.mxu0 %v592_v50  ;;  %1164 = vmatprep.subr.bf16.mxu1 %v592_v50 }
 0x137   : > { %1138 = vmatpush3.bf16.msra.mxu0 %v592_v50  ;;  %1172 = vmatpush3.bf16.msra.mxu1 %v592_v50 }
 0x138   : > { %1139 = vmatprep.subr.bf16.mxu0 %v591_v51  ;;  %1165 = vmatprep.subr.bf16.mxu1 %v591_v51 }
 0x13b   : > { %1140 = vmatpush3.bf16.msra.mxu0 %v591_v51  ;;  %1173 = vmatpush3.bf16.msra.mxu1 %v591_v51 }
 0x13c   : > { %1141 = vmatprep.subr.bf16.mxu0 %v590_v52  ;;  %1166 = vmatprep.subr.bf16.mxu1 %v590_v52 }
 0x13f   : > { %1142 = vmatpush3.bf16.msra.mxu0 %v590_v52  ;;  %1174 = vmatpush3.bf16.msra.mxu1 %v590_v52 }
 0x142   : > { %1148 = vmatmul.mubr.bf16.vlgmr.msra.gmra.mxu1 %v1243_v53  ;;  %1144 = vmatmul.mubr.bf16.vlgmr.msra.gmra.mxu0 %v1247_v54 }
 0x143   : > { %1151 = vmatprep.mubr.bf16.mxu1 %v1244_v55 }
 0x14a   : > { %1152 = vmatmul.mubr.bf16.gmra.mxu1 %v1245_v56 }
 0x14b   : > { %1155 = vmatprep.mubr.bf16.mxu1 %v1248_v57 }
 0x152   : > { %1156 = vmatmul.mubr.bf16.gmra.mxu1 %v1249_v58 }
 0x202   : > { %v1149_v61 = vpop.f32.mrf.mxu1  ;;  %v1145_v63 = vpop.f32.mrf.mxu0 }
 0x203   : > { %v749_v1 = vadd.f32 %v1149_v61, %v564_v59  ;;  %v745_v2 = vadd.f32 %v1145_v63, %v560_v60 }
 0x204   : > { %v696_v3 = vpop.f32.mrf.mxu1  ;;  %v680_v5 = vpop.f32.mrf.mxu0 }
 0x205   : > { %765 = vst.msk [vmem:[#allocation2 + $0x30] sm:$0xff] %vm436_vm1, %v749_v1  ;;  %v747_v7 = vadd.f32 %v696_v3, %v562_v62  ;;  %761 = vst.msk [vmem:[#allocation2 + $0x10] sm:$0xff] %vm436_vm1, %v745_v2  ;;  %v743_v8 = vadd.f32 %v680_v5, %v558_v0 }
 0x206   : > { %v1150_v9 = vpop.f32.mrf.mxu1  ;;  %v1146_v11 = vpop.f32.mrf.mxu0 }
 0x207   : > { %763 = vst.msk [vmem:[#allocation2 + $0x20] sm:$0xff] %vm436_vm1, %v747_v7  ;;  %v750_v13 = vadd.f32 %v1150_v9, %v565_v4  ;;  %759 = vst.msk [vmem:[#allocation2] sm:$0xff] %vm436_vm1, %v743_v8  ;;  %v746_v14 = vadd.f32 %v1146_v11, %v561_v6 }
 0x208   : > { %v699_v15 = vpop.f32.mrf.mxu1  ;;  %v683_v17 = vpop.f32.mrf.mxu0 }
 0x209   : > { %766 = vst.msk [vmem:[#allocation2 + $0x38] sm:$0xff] %vm436_vm1, %v750_v13  ;;  %v748_v18 = vadd.f32 %v699_v15, %v563_v10  ;;  %762 = vst.msk [vmem:[#allocation2 + $0x18] sm:$0xff] %vm436_vm1, %v746_v14  ;;  %v744_v19 = vadd.f32 %v683_v17, %v559_v12 }
 0x20a   : > { %v1153_v20 = vpop.f32.mrf.mxu1 }
 0x20b   : > { %764 = vst.msk [vmem:[#allocation2 + $0x28] sm:$0xff] %vm436_vm1, %v748_v18  ;;  %v753_v22 = vadd.f32 %v1153_v20, %v568_v16  ;;  %760 = vst.msk [vmem:[#allocation2 + $0x8] sm:$0xff] %vm436_vm1, %v744_v19 }
 0x20c   : > { %v712_v23 = vpop.f32.mrf.mxu1 }
 0x20d   : > { %769 = vst.msk [vmem:[#allocation2 + $0x50] sm:$0xff] %vm436_vm1, %v753_v22  ;;  %v751_v25 = vadd.f32 %v712_v23, %v566_v21 }
 0x20e   : > { %v1154_v26 = vpop.f32.mrf.mxu1 }
 0x20f   : > { %767 = vst.msk [vmem:[#allocation2 + $0x40] sm:$0xff] %vm436_vm1, %v751_v25  ;;  %v754_v28 = vadd.f32 %v1154_v26, %v569_v24 }
 0x210   : > { %v715_v29 = vpop.f32.mrf.mxu1 }
 0x211   : > { %770 = vst.msk [vmem:[#allocation2 + $0x58] sm:$0xff] %vm436_vm1, %v754_v28  ;;  %v752_v31 = vadd.f32 %v715_v29, %v567_v27 }
 0x212   : > { %v1157_v32 = vpop.f32.mrf.mxu1 }
 0x213   : > { %768 = vst.msk [vmem:[#allocation2 + $0x48] sm:$0xff] %vm436_vm1, %v752_v31  ;;  %v757_v34 = vadd.f32 %v1157_v32, %v572_v30 }
 0x214   : > { %v728_v35 = vpop.f32.mrf.mxu1 }
 0x215   : > { %773 = vst.msk [vmem:[#allocation2 + $0x70] sm:$0xff] %vm436_vm1, %v757_v34  ;;  %v755_v37 = vadd.f32 %v728_v35, %v570_v33 }
 0x216   : > { %v1158_v38 = vpop.f32.mrf.mxu1 }
 0x217   : > { %771 = vst.msk [vmem:[#allocation2 + $0x60] sm:$0xff] %vm436_vm1, %v755_v37  ;;  %v758_v40 = vadd.f32 %v1158_v38, %v573_v36  ;;  %778 = sbr.rel (%p1044_p13) target bundleno = 558 (0x22e), region = 85 }
 0x218   : > { %v731_v41 = vpop.f32.mrf.mxu1 }
 0x219   : > { %774 = vst.msk [vmem:[#allocation2 + $0x78] sm:$0xff] %vm436_vm1, %v758_v40  ;;  %v756_v42 = vadd.f32 %v731_v41, %v571_v39 }
 0x21b   : > { %772 = vst.msk [vmem:[#allocation2 + $0x68] sm:$0xff] %vm436_vm1, %v756_v42 }
 0x21c   : > { %v779_v43 = vld [vmem:[#allocation2] sm:$0xff]  ;;  %v780_v45 = vld [vmem:[#allocation2 + $0x8] sm:$0xff]  ;;  %v781_v48 = vld [vmem:[#allocation2 + $0x10] sm:$0xff]  ;;  %vm898_vm2 = vcmask 257024  }
 0x21d   : > { %v1045_v44 = vld [vmem:[%s1550_s3] ss:$0 sm:$0xff]  ;;  %v782_v49 = vld [vmem:[#allocation2 + $0x18] sm:$0xff]  ;;  %v784_v54 = vld [vmem:[#allocation2 + $0x28] sm:$0xff] }
 0x21e   : > { %v802_v46 = vadd.f32 %v1045_v44, %v779_v43  ;;  %v803_v47 = vadd.f32 %v1045_v44, %v780_v45  ;;  %v783_v50 = vld [vmem:[#allocation2 + $0x20] sm:$0xff]  ;;  %v804_v51 = vadd.f32 %v1045_v44, %v781_v48  ;;  %v805_v52 = vadd.f32 %v1045_v44, %v782_v49  ;;  %v785_v55 = vld [vmem:[#allocation2 + $0x30] sm:$0xff]  ;;  %v786_v56 = vld [vmem:[#allocation2 + $0x38] sm:$0xff] }
 0x21f   : > { %v806_v53 = vadd.f32 %v1045_v44, %v783_v50  ;;  %v807_v59 = vadd.f32 %v1045_v44, %v784_v54  ;;  %v808_v60 = vadd.f32 %v1045_v44, %v785_v55  ;;  %v809_v0 = vadd.f32 %v1045_v44, %v786_v56  ;;  %v787_v1 = vld [vmem:[#allocation2 + $0x40] sm:$0xff]  ;;  %v788_v2 = vld [vmem:[#allocation2 + $0x48] sm:$0xff]  ;;  %v789_v7 = vld [vmem:[#allocation2 + $0x50] sm:$0xff] }
 0x220   : > { %v818_v57 = vmax.f32 %v802_v46, 0.0  ;;  %v819_v58 = vmax.f32 %v803_v47, 0.0  ;;  %v820_v61 = vmax.f32 %v804_v51, 0.0  ;;  %v821_v62 = vmax.f32 %v805_v52, 0.0  ;;  %v790_v8 = vld [vmem:[#allocation2 + $0x58] sm:$0xff]  ;;  %v791_v9 = vld [vmem:[#allocation2 + $0x60] sm:$0xff] }
 0x221   : > { %v822_v63 = vmax.f32 %v806_v53, 0.0  ;;  %v823_v5 = vmax.f32 %v807_v59, 0.0  ;;  %v824_v6 = vmax.f32 %v808_v60, 0.0  ;;  %v825_v13 = vmax.f32 %v809_v0, 0.0  ;;  %v793_v15 = vld [vmem:[#allocation2 + $0x70] sm:$0xff]  ;;  %v794_v20 = vld [vmem:[#allocation2 + $0x78] sm:$0xff] }
 0x222   : > { %v1065_v3 = vpack.c.bf16 %v818_v57, %v818_v57  ;;  %v1066_v4 = vpack.c.bf16 %v819_v58, %v819_v58  ;;  %v1067_v10 = vpack.c.bf16 %v820_v61, %v820_v61  ;;  %v1068_v11 = vpack.c.bf16 %v821_v62, %v821_v62  ;;  %v792_v14 = vld [vmem:[#allocation2 + $0x68] sm:$0xff] }
 0x223   : > { %v1069_v12 = vpack.c.bf16 %v822_v63, %v822_v63  ;;  %v1070_v16 = vpack.c.bf16 %v823_v5, %v823_v5  ;;  %v1071_v17 = vpack.c.bf16 %v824_v6, %v824_v6  ;;  %v810_v18 = vadd.f32 %v1045_v44, %v787_v1 }
 0x224   : > { %899 = vst.msk [vmem:[%s1423_s7] sm:$0xf] %vm898_vm2, %v1065_v3  ;;  %900 = vst.msk [vmem:[%s1423_s7 + $0x4] sm:$0xf] %vm898_vm2, %v1066_v4  ;;  %v811_v19 = vadd.f32 %v1045_v44, %v788_v2  ;;  %v1072_v21 = vpack.c.bf16 %v825_v13, %v825_v13  ;;  %v812_v22 = vadd.f32 %v1045_v44, %v789_v7 }
 0x225   : > { %901 = vst.msk [vmem:[%s1423_s7 + $0x8] sm:$0xf] %vm898_vm2, %v1067_v10  ;;  %902 = vst.msk [vmem:[%s1423_s7 + $0xc] sm:$0xf] %vm898_vm2, %v1068_v11  ;;  %v813_v23 = vadd.f32 %v1045_v44, %v790_v8  ;;  %v814_v24 = vadd.f32 %v1045_v44, %v791_v9  ;;  %v826_v25 = vmax.f32 %v810_v18, 0.0  ;;  %v815_v27 = vadd.f32 %v1045_v44, %v792_v14 }
 0x226   : > { %903 = vst.msk [vmem:[%s1423_s7 + $0x10] sm:$0xf] %vm898_vm2, %v1069_v12  ;;  %904 = vst.msk [vmem:[%s1423_s7 + $0x14] sm:$0xf] %vm898_vm2, %v1070_v16  ;;  %v827_v26 = vmax.f32 %v811_v19, 0.0  ;;  %v816_v28 = vadd.f32 %v1045_v44, %v793_v15  ;;  %v828_v29 = vmax.f32 %v812_v22, 0.0  ;;  %v817_v32 = vadd.f32 %v1045_v44, %v794_v20 }
 0x227   : > { %905 = vst.msk [vmem:[%s1423_s7 + $0x18] sm:$0xf] %vm898_vm2, %v1071_v17  ;;  %906 = vst.msk [vmem:[%s1423_s7 + $0x1c] sm:$0xf] %vm898_vm2, %v1072_v21  ;;  %v829_v30 = vmax.f32 %v813_v23, 0.0  ;;  %v830_v31 = vmax.f32 %v814_v24, 0.0  ;;  %v1073_v33 = vpack.c.bf16 %v826_v25, %v826_v25 }
 0x228   : > { %v1074_v34 = vpack.c.bf16 %v827_v26, %v827_v26  ;;  %v831_v35 = vmax.f32 %v815_v27, 0.0  ;;  %v832_v36 = vmax.f32 %v816_v28, 0.0  ;;  %v1075_v37 = vpack.c.bf16 %v828_v29, %v828_v29 }
 0x229   : > { %v1076_v38 = vpack.c.bf16 %v829_v30, %v829_v30  ;;  %v1077_v39 = vpack.c.bf16 %v830_v31, %v830_v31  ;;  %v833_v40 = vmax.f32 %v817_v32, 0.0  ;;  %907 = vst.msk [vmem:[%s1423_s7 + $0x20] sm:$0xf] %vm898_vm2, %v1073_v33 }
 0x22a   : > { %908 = vst.msk [vmem:[%s1423_s7 + $0x24] sm:$0xf] %vm898_vm2, %v1074_v34  ;;  %v1078_v41 = vpack.c.bf16 %v831_v35, %v831_v35  ;;  %v1079_v42 = vpack.c.bf16 %v832_v36, %v832_v36  ;;  %909 = vst.msk [vmem:[%s1423_s7 + $0x28] sm:$0xf] %vm898_vm2, %v1075_v37 }
 0x22b   : > { %910 = vst.msk [vmem:[%s1423_s7 + $0x2c] sm:$0xf] %vm898_vm2, %v1076_v38  ;;  %911 = vst.msk [vmem:[%s1423_s7 + $0x30] sm:$0xf] %vm898_vm2, %v1077_v39  ;;  %v1080_v43 = vpack.c.bf16 %v833_v40, %v833_v40 }
 0x22c   : > { %912 = vst.msk [vmem:[%s1423_s7 + $0x34] sm:$0xf] %vm898_vm2, %v1078_v41  ;;  %913 = vst.msk [vmem:[%s1423_s7 + $0x38] sm:$0xf] %vm898_vm2, %v1079_v42 }
 0x22d   : > { %914 = vst.msk [vmem:[%s1423_s7 + $0x3c] sm:$0xf] %vm898_vm2, %v1080_v43 }
 0x22e PF: > { %s14_s21 = sadd.s32 1, %s1304_s21   ;;  %s1552_s15 = smov %s1284_s16 }
 0x22f   : > { %p11_p0 = scmp.ge.s32.totalorder %s14_s21, 6   ;;  %s1553_s16 = smov %s1383_s28 }
 0x230   : > { %s1554_s17 = smov %s1296_s19  ;;  %s1555_s18 = smov %s1300_s20 }
 0x231   : > { %s1556_s19 = smov %s1559_s22  ;;  %s1557_s20 = smov %s1563_s23 }
 0x232   :  { %13 = sbr.rel (!%p11_p0) target bundleno = 4 (0x4), region = 123 }

// kernel: gcn_ogb_moe_forward.9
= control target key start
LH: loop header
LB: loop body
LE: loop exit
PB: predicated region body
PF: predicated region fallthrough
CT: control target
= control target key end

     0   :  { %s1504_s21 = smov 0   ;;  %s1506_s22 = smov 0   ;;  %s1797_s0 = inlined_call_operand.vmem [shape: bf16[256,256], index: 0, kind: input, shape index: {}]   ;;  %s1798_s1 = inlined_call_operand.vmem [shape: bf16[256,32], index: 1, kind: input, shape index: {}]   ;;  %s1799_s2 = inlined_call_operand.vmem [shape: bf16[32,16], index: 2, kind: input, shape index: {}]   ;;  %s1800_s3 = inlined_call_operand.vmem [shape: f32[1,16], index: 3, kind: input, shape index: {}]   ;;  %s1801_s4 = inlined_call_operand.vmem [shape: f32[256,1], index: 4, kind: input, shape index: {}]   ;;  %s1802_s5 = inlined_call_operand.vmem [shape: f32[256,16], index: 5, kind: input, shape index: {}, may-alias: {5,6}]   ;;  %s1803_s6 = inlined_call_operand.vmem [shape: f32[256,16], index: 6, kind: output, shape index: {}, may-alias: {5,6}]  }
   0x1   :  { %s1508_s23 = smov 0   ;;  %s1510_s24 = smov 0  }
   0x2   :  { %s1512_s25 = smov 0   ;;  %s1514_s26 = smov 0  }
   0x3   :  { %s1516_s27 = smov 0  }
   0x4 LB: > { %s25_s28 = sadd.s32 1, %s1457_s25  ;;  %s28_s29 = sadd.s32 1, %s1461_s26  ;;  %s1465_s27 = sphi %s1516_s27, %s16_s27   ;;  %s1461_s26 = sphi %s1514_s26, %s1809_s26   ;;  %s1457_s25 = sphi %s1512_s25, %s1808_s25   ;;  %s1453_s24 = sphi %s1510_s24, %s1807_s24   ;;  %s1449_s23 = sphi %s1508_s23, %s1806_s23   ;;  %s1445_s22 = sphi %s1506_s22, %s1805_s22   ;;  %s1441_s21 = sphi %s1504_s21, %s1804_s21  }
   0x5   : > { %p26_p0 = scmp.ge.s32.totalorder %s25_s28, 2  ;;  %p44_p1 = scmp.ne.s32.totalorder %s1445_s22, %s1441_s21 }
   0x6   : > { %p45_p2 = scmp.eq.s32.totalorder %s1465_s27, 0  ;;  %s37_s9 = sadd.s32 1, %s1445_s22 }
   0x7   : > { %s1811_s28 = smov (%p26_p0, %s25_s28), 0  ;;  %s1813_s29 = smov (!%p26_p0, %s28_s29), %s1461_s26 }
   0x8   : > { %p46_p3 = por %p45_p2, %p44_p1  ;;  %p30_p4 = scmp.ge.s32.totalorder %s1813_s29, 2 }
   0x9   : > { %s33_s30 = ssub.s32 %s1457_s25, %s1811_s28  ;;  %p1192_p6 = scmp.ge.s32.totalorder %s1465_s27, 4 }
   0xa   : > { %s1815_s29 = smov (%p30_p4, %s1813_s29), 0 }
   0xb   : > { %s32_s7 = ssub.s32 %s1461_s26, %s1815_s29  ;;  %222 = sbr.rel (%p1192_p6) target bundleno = 32 (0x20), region = 24 }
   0xc   : > { %s34_s8 = sor.u32 %s33_s30, %s32_s7 }
   0xd   : > { %p35_p5 = scmp.eq.s32.totalorder %s34_s8, 0 }
   0xf   : > { %s1555_s10 = scalar_select %p35_p5, %s1445_s22, %s37_s9  }
  0x10   : > { %225 = sbr.rel (!%p46_p3) target bundleno = 32 (0x20), region = 28  ;;  %s227_s11 = sand.u32 (%p46_p3), 1, %s1445_s22  }
  0x11   : > { %s1238_s12 = sshll.u32 (%p46_p3), %s1461_s26, 5  ;;  %s1193_s13 = sshll.u32 (%p46_p3), %s227_s11, 6 }
  0x12   : > { %s232_s14 = sadd.s32 (%p46_p3), %s1457_s25, %s1238_s12  ;;  %s229_s19 = scalar_lea.vmem (%p46_p3), [#allocation3], %s1193_s13 }
  0x13   : > { %s1196_s15 = sshll.u32 (%p46_p3), %s232_s14, 2 }
  0x14   : > { %s1564_s18 = scalar_lea.vmem (%p46_p3), %s1797_s0, %s1196_s15 }
  0x15   : > { %v251_v0 = vld [vmem:[%s1564_s18] sm:$0xf]  ;;  %v253_v1 = vld [vmem:[%s1564_s18 + $0x8] sm:$0xf]  ;;  %v255_v2 = vld [vmem:[%s1564_s18 + $0x10] sm:$0xf] }
  0x16   : > { %252 = vst [vmem:[%s229_s19] sm:$0xf] %v251_v0  ;;  %254 = vst [vmem:[%s229_s19 + $0x4] sm:$0xf] %v253_v1  ;;  %v257_v3 = vld [vmem:[%s1564_s18 + $0x18] sm:$0xf] }
  0x17   : > { %256 = vst [vmem:[%s229_s19 + $0x8] sm:$0xf] %v255_v2  ;;  %v259_v4 = vld [vmem:[%s1564_s18 + $0x20] sm:$0xf]  ;;  %v261_v5 = vld [vmem:[%s1564_s18 + $0x28] sm:$0xf] }
  0x18   : > { %258 = vst [vmem:[%s229_s19 + $0xc] sm:$0xf] %v257_v3  ;;  %260 = vst [vmem:[%s229_s19 + $0x10] sm:$0xf] %v259_v4  ;;  %v263_v6 = vld [vmem:[%s1564_s18 + $0x30] sm:$0xf] }
  0x19   : > { %262 = vst [vmem:[%s229_s19 + $0x14] sm:$0xf] %v261_v5  ;;  %v265_v7 = vld [vmem:[%s1564_s18 + $0x38] sm:$0xf]  ;;  %v267_v8 = vld [vmem:[%s1564_s18 + $0x40] sm:$0xf] }
  0x1a   : > { %264 = vst [vmem:[%s229_s19 + $0x18] sm:$0xf] %v263_v6  ;;  %266 = vst [vmem:[%s229_s19 + $0x1c] sm:$0xf] %v265_v7  ;;  %v269_v9 = vld [vmem:[%s1564_s18 + $0x48] sm:$0xf] }
  0x1b   : > { %268 = vst [vmem:[%s229_s19 + $0x20] sm:$0xf] %v267_v8  ;;  %v271_v10 = vld [vmem:[%s1564_s18 + $0x50] sm:$0xf]  ;;  %v273_v11 = vld [vmem:[%s1564_s18 + $0x58] sm:$0xf] }
  0x1c   : > { %270 = vst [vmem:[%s229_s19 + $0x24] sm:$0xf] %v269_v9  ;;  %272 = vst [vmem:[%s229_s19 + $0x28] sm:$0xf] %v271_v10  ;;  %v275_v12 = vld [vmem:[%s1564_s18 + $0x60] sm:$0xf] }
  0x1d   : > { %274 = vst [vmem:[%s229_s19 + $0x2c] sm:$0xf] %v273_v11  ;;  %v277_v13 = vld [vmem:[%s1564_s18 + $0x68] sm:$0xf]  ;;  %v279_v14 = vld [vmem:[%s1564_s18 + $0x70] sm:$0xf] }
  0x1e   : > { %276 = vst [vmem:[%s229_s19 + $0x30] sm:$0xf] %v275_v12  ;;  %278 = vst [vmem:[%s229_s19 + $0x34] sm:$0xf] %v277_v13  ;;  %v281_v15 = vld [vmem:[%s1564_s18 + $0x78] sm:$0xf] }
  0x1f   : > { %280 = vst [vmem:[%s229_s19 + $0x38] sm:$0xf] %v279_v14  ;;  %282 = vst [vmem:[%s229_s19 + $0x3c] sm:$0xf] %v281_v15 }
  0x20 PF: > { %p1197_p7 = scmp.ge.s32.totalorder %s1465_s27, 1  ;;  %p364_p8 = scmp.lt.s32.totalorder %s1465_s27, 5 }
  0x22   : > { %p365_p9 = pnand %p1197_p7, %p364_p8 }
  0x23   : > { %s371_s20 = sand.u32 (!%p365_p9), 1, %s1441_s21   ;;  %s1199_s30 = sshll.u32 (!%p365_p9), %s1449_s23, 4 }
  0x24   : > { %368 = sbr.rel (%p365_p9) target bundleno = 700 (0x2bc), region = 81  ;;  %s1198_s7 = sshll.u32 (!%p365_p9), %s371_s20, 6 }
  0x25   : > { %p417_p10 = scmp.lt.s32.totalorder (!%p365_p9), %s1199_s30, 31  ;;  %s1201_s8 = sshll.u32 (!%p365_p9), %s1453_s24, 4 }
  0x26   : > { %p423_p11 = scmp.lt.s32.totalorder (!%p365_p9), %s1201_s8, 31  ;;  %s1607_s11 = scalar_lea.vmem (!%p365_p9), [#allocation3], %s1198_s7 }
  0x27   : > { %p1207_p12 = scmp.ne.s32.totalorder (!%p365_p9), %s1449_s23, 0 }
  0x29   : > { %s1817_s30 = smov (!%p417_p10, %s1199_s30), 31  ;;  %s1819_s8 = smov (!%p423_p11, %s1201_s8), 31 }
  0x2a   : > { %s1200_s9 = sshll.u32 %s1817_s30, 2  ;;  %s1202_s14 = sshll.u32 %s1819_s8, 3 }
  0x2b   : > { %s1590_s13 = scalar_lea.vmem %s1798_s1, %s1200_s9  ;;  %s1595_s17 = scalar_lea.vmem %s1801_s4, %s1202_s14 }
  0x2c   : > { %s1600_s19 = scalar_lea.vmem %s1802_s5, %s1202_s14  ;;  %s1605_s30 = scalar_lea.vmem %s1803_s6, %s1202_s14 }
  0x2d   : > { %444 = sbr.rel (%p1207_p12) target bundleno = 59 (0x3b), region = 89 }
  0x32   : > { %vm445_vm0 = vcmask 130048   ;;  %v1467_v16 = vmov 0.0  }
  0x33   : > { %446 = vst.msk [vmem:[#allocation2] sm:$0xff] %vm445_vm0, %v1467_v16  ;;  %447 = vst.msk [vmem:[#allocation2 + $0x8] sm:$0xff] %vm445_vm0, %v1467_v16 }
  0x34   : > { %448 = vst.msk [vmem:[#allocation2 + $0x10] sm:$0xff] %vm445_vm0, %v1467_v16  ;;  %449 = vst.msk [vmem:[#allocation2 + $0x18] sm:$0xff] %vm445_vm0, %v1467_v16 }
  0x35   : > { %450 = vst.msk [vmem:[#allocation2 + $0x20] sm:$0xff] %vm445_vm0, %v1467_v16  ;;  %451 = vst.msk [vmem:[#allocation2 + $0x28] sm:$0xff] %vm445_vm0, %v1467_v16 }
  0x36   : > { %452 = vst.msk [vmem:[#allocation2 + $0x30] sm:$0xff] %vm445_vm0, %v1467_v16  ;;  %453 = vst.msk [vmem:[#allocation2 + $0x38] sm:$0xff] %vm445_vm0, %v1467_v16 }
  0x37   : > { %454 = vst.msk [vmem:[#allocation2 + $0x40] sm:$0xff] %vm445_vm0, %v1467_v16  ;;  %455 = vst.msk [vmem:[#allocation2 + $0x48] sm:$0xff] %vm445_vm0, %v1467_v16 }
  0x38   : > { %456 = vst.msk [vmem:[#allocation2 + $0x50] sm:$0xff] %vm445_vm0, %v1467_v16  ;;  %457 = vst.msk [vmem:[#allocation2 + $0x58] sm:$0xff] %vm445_vm0, %v1467_v16 }
  0x39   : > { %458 = vst.msk [vmem:[#allocation2 + $0x60] sm:$0xff] %vm445_vm0, %v1467_v16  ;;  %459 = vst.msk [vmem:[#allocation2 + $0x68] sm:$0xff] %vm445_vm0, %v1467_v16 }
  0x3a   : > { %460 = vst.msk [vmem:[#allocation2 + $0x70] sm:$0xff] %vm445_vm0, %v1467_v16  ;;  %461 = vst.msk [vmem:[#allocation2 + $0x78] sm:$0xff] %vm445_vm0, %v1467_v16 }
  0x3b PF: > { %v1391_v17 = vld [vmem:[%s1799_s2 + $0x8] sm:$0xff]   ;;  %v1392_v18 = vld [vmem:[%s1799_s2] sm:$0xff]   ;;  %vm534_vm1 = vcmask 261120   ;;  %v1395_v21 = vld [vmem:[%s1590_s13 + $0x10] sm:$0xff]   ;;  %vm857_vm2 = vcmask 130048   ;;  %p1234_p13 = scmp.ne.s32.totalorder %s1449_s23, 1 }
  0x3c   : > { %1265 = vmatprep.subr.bf16.mxu0 %v1391_v17  ;;  %v1393_v19 = vld [vmem:[%s1590_s13] sm:$0xff]   ;;  %v1394_v20 = vld [vmem:[%s1590_s13 + $0x8] sm:$0xff]   ;;  %v1396_v22 = vld [vmem:[%s1590_s13 + $0x18] sm:$0xff]  }
  0x3d   : > { %1266 = vmatpush3.bf16.msra.mxu0 %v1391_v17  ;;  %1269 = vmatprep.mubr.msk.bf16.mxu0 %vm534_vm1, %v1393_v19  ;;  %v1397_v23 = vld [vmem:[%s1590_s13 + $0x20] sm:$0xff]   ;;  %v1398_v24 = vld [vmem:[%s1590_s13 + $0x28] sm:$0xff]   ;;  %v1399_v25 = vld [vmem:[%s1590_s13 + $0x30] sm:$0xff]  }
  0x3e   : > { %1267 = vmatprep.subr.bf16.mxu0 %v1392_v18  ;;  %v1400_v26 = vld [vmem:[%s1590_s13 + $0x38] sm:$0xff]   ;;  %v1401_v27 = vld [vmem:[%s1607_s11 + $0x10] sm:$0xff]   ;;  %v1405_v28 = vld [vmem:[%s1607_s11] sm:$0xff]  }
  0x3f   : > { %1305 = vmatprep.mubr.bf16.mxu1 %v1401_v27  ;;  %v1402_v53 = vld [vmem:[%s1607_s11 + $0x18] sm:$0xff]   ;;  %v1406_v54 = vld [vmem:[%s1607_s11 + $0x8] sm:$0xff]   ;;  %v1403_v55 = vld [vmem:[%s1607_s11 + $0x20] sm:$0xff]  }
  0x40   : > { %v1404_v56 = vld [vmem:[%s1607_s11 + $0x28] sm:$0xff]   ;;  %v1407_v57 = vld [vmem:[%s1607_s11 + $0x30] sm:$0xff]   ;;  %v1408_v58 = vld [vmem:[%s1607_s11 + $0x38] sm:$0xff]  }
  0x41   : > { %1268 = vmatpush3.bf16.msra.mxu0 %v1392_v18  ;;  %v662_v59 = vld [vmem:[#allocation2 + $0x30] sm:$0xff]  ;;  %v660_v62 = vld [vmem:[#allocation2 + $0x20] sm:$0xff]  ;;  %v663_v4 = vld [vmem:[#allocation2 + $0x38] sm:$0xff] }
  0x42   : > { %v658_v60 = vld [vmem:[#allocation2 + $0x10] sm:$0xff]  ;;  %v656_v0 = vld [vmem:[#allocation2] sm:$0xff]  ;;  %v659_v6 = vld [vmem:[#allocation2 + $0x18] sm:$0xff] }
  0x43   : > { %v661_v10 = vld [vmem:[#allocation2 + $0x28] sm:$0xff]  ;;  %v666_v16 = vld [vmem:[#allocation2 + $0x50] sm:$0xff] }
  0x44   : > { %1270 = vmatmul.mubr.msk.bf16.vlgmr.msra.gmra.mxu0 %vm534_vm1, %v1394_v20  ;;  %v657_v12 = vld [vmem:[#allocation2 + $0x8] sm:$0xff] }
  0x45   : > { %1273 = vmatprep.mubr.msk.bf16.mxu0 %vm534_vm1, %v1395_v21  ;;  %v664_v21 = vld [vmem:[#allocation2 + $0x40] sm:$0xff]  ;;  %v665_v27 = vld [vmem:[#allocation2 + $0x48] sm:$0xff] }
  0x4c   : > { %1274 = vmatmul.mubr.msk.bf16.gmra.mxu0 %vm534_vm1, %v1396_v22 }
  0x4d   : > { %1277 = vmatprep.mubr.msk.bf16.mxu0 %vm534_vm1, %v1397_v23 }
  0x54   : > { %1278 = vmatmul.mubr.msk.bf16.gmra.mxu0 %vm534_vm1, %v1398_v24  ;;  %v667_v24 = vld [vmem:[#allocation2 + $0x58] sm:$0xff] }
  0x55   : > { %1281 = vmatprep.mubr.msk.bf16.mxu0 %vm534_vm1, %v1399_v25 }
  0x5c   : > { %1282 = vmatmul.mubr.msk.bf16.gmra.mxu0 %vm534_vm1, %v1400_v26 }
  0x5d   : > { %1301 = vmatprep.mubr.bf16.mxu0 %v1405_v28 }
 0x104   : > { %v1271_v29 = vpop.f32.mrf.mxu0 }
 0x106   : > { %v593_v30 = vpop.f32.mrf.mxu0 }
 0x108   : > { %v1272_v31 = vpop.f32.mrf.mxu0 }
 0x109   : > { %v689_v51 = vpack.c.bf16 %v1272_v31, %v1271_v29 }
 0x10a   : > { %v596_v32 = vpop.f32.mrf.mxu0 }
 0x10b   : > { %v688_v52 = vpack.c.bf16 %v596_v32, %v593_v30  ;;  %v670_v30 = vld [vmem:[#allocation2 + $0x70] sm:$0xff] }
 0x10c   : > { %v1275_v33 = vpop.f32.mrf.mxu0 }
 0x10e   : > { %v609_v34 = vpop.f32.mrf.mxu0 }
 0x110   : > { %v1276_v35 = vpop.f32.mrf.mxu0 }
 0x111   : > { %v691_v49 = vpack.c.bf16 %v1276_v35, %v1275_v33  ;;  %v668_v33 = vld [vmem:[#allocation2 + $0x60] sm:$0xff] }
 0x112   : > { %v612_v36 = vpop.f32.mrf.mxu0 }
 0x113   : > { %v690_v50 = vpack.c.bf16 %v612_v36, %v609_v34  ;;  %v671_v36 = vld [vmem:[#allocation2 + $0x78] sm:$0xff] }
 0x114   : > { %v1279_v37 = vpop.f32.mrf.mxu0 }
 0x116   : > { %v625_v38 = vpop.f32.mrf.mxu0 }
 0x118   : > { %v1280_v39 = vpop.f32.mrf.mxu0 }
 0x119   : > { %v693_v47 = vpack.c.bf16 %v1280_v39, %v1279_v37  ;;  %v669_v39 = vld [vmem:[#allocation2 + $0x68] sm:$0xff] }
 0x11a   : > { %v628_v40 = vpop.f32.mrf.mxu0 }
 0x11b   : > { %v692_v48 = vpack.c.bf16 %v628_v40, %v625_v38 }
 0x11c   : > { %v1283_v41 = vpop.f32.mrf.mxu0 }
 0x11e   : > { %v641_v42 = vpop.f32.mrf.mxu0 }
 0x120   : > { %v1284_v43 = vpop.f32.mrf.mxu0 }
 0x121   : > { %v695_v44 = vpack.c.bf16 %v1284_v43, %v1283_v41 }
 0x122   : > { %v644_v45 = vpop.f32.mrf.mxu0 }
 0x123   : > { %v694_v46 = vpack.c.bf16 %v644_v45, %v641_v42  ;;  %1285 = vmatprep.subr.bf16.mxu0 %v695_v44  ;;  %1317 = vmatprep.subr.bf16.mxu1 %v695_v44 }
 0x124   : > { %1286 = vmatpush3.bf16.msra.mxu0 %v695_v44  ;;  %1325 = vmatpush3.bf16.msra.mxu1 %v695_v44 }
 0x125   : > { %1287 = vmatprep.subr.bf16.mxu0 %v694_v46  ;;  %1318 = vmatprep.subr.bf16.mxu1 %v694_v46 }
 0x128   : > { %1288 = vmatpush3.bf16.msra.mxu0 %v694_v46  ;;  %1326 = vmatpush3.bf16.msra.mxu1 %v694_v46 }
 0x129   : > { %1289 = vmatprep.subr.bf16.mxu0 %v693_v47  ;;  %1319 = vmatprep.subr.bf16.mxu1 %v693_v47 }
 0x12c   : > { %1290 = vmatpush3.bf16.msra.mxu0 %v693_v47  ;;  %1327 = vmatpush3.bf16.msra.mxu1 %v693_v47 }
 0x12d   : > { %1291 = vmatprep.subr.bf16.mxu0 %v692_v48  ;;  %1320 = vmatprep.subr.bf16.mxu1 %v692_v48 }
 0x130   : > { %1292 = vmatpush3.bf16.msra.mxu0 %v692_v48  ;;  %1328 = vmatpush3.bf16.msra.mxu1 %v692_v48 }
 0x131   : > { %1293 = vmatprep.subr.bf16.mxu0 %v691_v49  ;;  %1321 = vmatprep.subr.bf16.mxu1 %v691_v49 }
 0x134   : > { %1294 = vmatpush3.bf16.msra.mxu0 %v691_v49  ;;  %1329 = vmatpush3.bf16.msra.mxu1 %v691_v49 }
 0x135   : > { %1295 = vmatprep.subr.bf16.mxu0 %v690_v50  ;;  %1322 = vmatprep.subr.bf16.mxu1 %v690_v50 }
 0x138   : > { %1296 = vmatpush3.bf16.msra.mxu0 %v690_v50  ;;  %1330 = vmatpush3.bf16.msra.mxu1 %v690_v50 }
 0x139   : > { %1297 = vmatprep.subr.bf16.mxu0 %v689_v51  ;;  %1323 = vmatprep.subr.bf16.mxu1 %v689_v51 }
 0x13c   : > { %1298 = vmatpush3.bf16.msra.mxu0 %v689_v51  ;;  %1331 = vmatpush3.bf16.msra.mxu1 %v689_v51 }
 0x13d   : > { %1299 = vmatprep.subr.bf16.mxu0 %v688_v52  ;;  %1324 = vmatprep.subr.bf16.mxu1 %v688_v52 }
 0x140   : > { %1300 = vmatpush3.bf16.msra.mxu0 %v688_v52  ;;  %1332 = vmatpush3.bf16.msra.mxu1 %v688_v52 }
 0x143   : > { %1306 = vmatmul.mubr.bf16.vlgmr.msra.gmra.mxu1 %v1402_v53  ;;  %1302 = vmatmul.mubr.bf16.vlgmr.msra.gmra.mxu0 %v1406_v54 }
 0x144   : > { %1309 = vmatprep.mubr.bf16.mxu1 %v1403_v55 }
 0x14b   : > { %1310 = vmatmul.mubr.bf16.gmra.mxu1 %v1404_v56 }
 0x14c   : > { %1313 = vmatprep.mubr.bf16.mxu1 %v1407_v57 }
 0x153   : > { %1314 = vmatmul.mubr.bf16.gmra.mxu1 %v1408_v58 }
 0x203   : > { %v1307_v61 = vpop.f32.mrf.mxu1  ;;  %v1303_v63 = vpop.f32.mrf.mxu0 }
 0x204   : > { %v847_v1 = vadd.f32 %v1307_v61, %v662_v59  ;;  %v843_v2 = vadd.f32 %v1303_v63, %v658_v60 }
 0x205   : > { %v794_v3 = vpop.f32.mrf.mxu1  ;;  %v778_v5 = vpop.f32.mrf.mxu0 }
 0x206   : > { %864 = vst.msk [vmem:[#allocation2 + $0x30] sm:$0xff] %vm857_vm2, %v847_v1  ;;  %v845_v7 = vadd.f32 %v794_v3, %v660_v62  ;;  %860 = vst.msk [vmem:[#allocation2 + $0x10] sm:$0xff] %vm857_vm2, %v843_v2  ;;  %v841_v8 = vadd.f32 %v778_v5, %v656_v0 }
 0x207   : > { %v1308_v9 = vpop.f32.mrf.mxu1  ;;  %v1304_v11 = vpop.f32.mrf.mxu0 }
 0x208   : > { %862 = vst.msk [vmem:[#allocation2 + $0x20] sm:$0xff] %vm857_vm2, %v845_v7  ;;  %v848_v13 = vadd.f32 %v1308_v9, %v663_v4  ;;  %858 = vst.msk [vmem:[#allocation2] sm:$0xff] %vm857_vm2, %v841_v8  ;;  %v844_v14 = vadd.f32 %v1304_v11, %v659_v6 }
 0x209   : > { %v797_v15 = vpop.f32.mrf.mxu1  ;;  %v781_v17 = vpop.f32.mrf.mxu0 }
 0x20a   : > { %865 = vst.msk [vmem:[#allocation2 + $0x38] sm:$0xff] %vm857_vm2, %v848_v13  ;;  %v846_v18 = vadd.f32 %v797_v15, %v661_v10  ;;  %861 = vst.msk [vmem:[#allocation2 + $0x18] sm:$0xff] %vm857_vm2, %v844_v14  ;;  %v842_v19 = vadd.f32 %v781_v17, %v657_v12 }
 0x20b   : > { %v1311_v20 = vpop.f32.mrf.mxu1 }
 0x20c   : > { %863 = vst.msk [vmem:[#allocation2 + $0x28] sm:$0xff] %vm857_vm2, %v846_v18  ;;  %v851_v22 = vadd.f32 %v1311_v20, %v666_v16  ;;  %859 = vst.msk [vmem:[#allocation2 + $0x8] sm:$0xff] %vm857_vm2, %v842_v19 }
 0x20d   : > { %v810_v23 = vpop.f32.mrf.mxu1 }
 0x20e   : > { %868 = vst.msk [vmem:[#allocation2 + $0x50] sm:$0xff] %vm857_vm2, %v851_v22  ;;  %v849_v25 = vadd.f32 %v810_v23, %v664_v21 }
 0x20f   : > { %v1312_v26 = vpop.f32.mrf.mxu1 }
 0x210   : > { %866 = vst.msk [vmem:[#allocation2 + $0x40] sm:$0xff] %vm857_vm2, %v849_v25  ;;  %v852_v28 = vadd.f32 %v1312_v26, %v667_v24 }
 0x211   : > { %v813_v29 = vpop.f32.mrf.mxu1 }
 0x212   : > { %869 = vst.msk [vmem:[#allocation2 + $0x58] sm:$0xff] %vm857_vm2, %v852_v28  ;;  %v850_v31 = vadd.f32 %v813_v29, %v665_v27 }
 0x213   : > { %v1315_v32 = vpop.f32.mrf.mxu1 }
 0x214   : > { %867 = vst.msk [vmem:[#allocation2 + $0x48] sm:$0xff] %vm857_vm2, %v850_v31  ;;  %v855_v34 = vadd.f32 %v1315_v32, %v670_v30 }
 0x215   : > { %v826_v35 = vpop.f32.mrf.mxu1 }
 0x216   : > { %872 = vst.msk [vmem:[#allocation2 + $0x70] sm:$0xff] %vm857_vm2, %v855_v34  ;;  %v853_v37 = vadd.f32 %v826_v35, %v668_v33 }
 0x217   : > { %v1316_v38 = vpop.f32.mrf.mxu1 }
 0x218   : > { %870 = vst.msk [vmem:[#allocation2 + $0x60] sm:$0xff] %vm857_vm2, %v853_v37  ;;  %v856_v40 = vadd.f32 %v1316_v38, %v671_v36  ;;  %877 = sbr.rel (%p1234_p13) target bundleno = 700 (0x2bc), region = 93 }
 0x219   : > { %v829_v41 = vpop.f32.mrf.mxu1 }
 0x21a   : > { %873 = vst.msk [vmem:[#allocation2 + $0x78] sm:$0xff] %vm857_vm2, %v856_v40  ;;  %v854_v42 = vadd.f32 %v829_v41, %v669_v39 }
 0x21c   : > { %871 = vst.msk [vmem:[#allocation2 + $0x68] sm:$0xff] %vm857_vm2, %v854_v42 }
 0x21d   : > { %v896_v43 = vld [vmem:[%s1595_s17 + $0x10] sm:$0xff]  ;;  %v894_v44 = vld [vmem:[%s1595_s17] sm:$0xff]  ;;  %v1468_v45 = vmov 0   ;;  %v897_v46 = vld [vmem:[%s1595_s17 + $0x18] sm:$0xff] }
 0x21e   : > { %1410 = vset.pattern.permute.xlu1 %v1468_v45  ;;  %1409 = vset.pattern.permute.xlu0 %v1468_v45  ;;  %v895_v47 = vld [vmem:[%s1595_s17 + $0x8] sm:$0xff]  ;;  %v898_v49 = vld [vmem:[%s1595_s17 + $0x20] sm:$0xff]  ;;  %v901_v50 = vld [vmem:[%s1595_s17 + $0x38] sm:$0xff] }
 0x21f   : > { %961 = vperm.xlu1 %1410, %v896_v43   ;;  %951 = vperm.xlu0 %1409, %v894_v44   ;;  %v899_v48 = vld [vmem:[%s1595_s17 + $0x28] sm:$0xff]  ;;  %v900_v51 = vld [vmem:[%s1595_s17 + $0x30] sm:$0xff]  ;;  %v902_v53 = vld [vmem:[%s1595_s17 + $0x40] sm:$0xff] }
 0x220   : > { %v903_v52 = vld [vmem:[%s1595_s17 + $0x48] sm:$0xff]  ;;  %v905_v54 = vld [vmem:[%s1595_s17 + $0x58] sm:$0xff]  ;;  %v904_v55 = vld [vmem:[%s1595_s17 + $0x50] sm:$0xff] }
 0x221   : > { %v907_v56 = vld [vmem:[%s1595_s17 + $0x68] sm:$0xff]  ;;  %v906_v57 = vld [vmem:[%s1595_s17 + $0x60] sm:$0xff]  ;;  %v909_v58 = vld [vmem:[%s1595_s17 + $0x78] sm:$0xff] }
 0x222   : > { %v908_v59 = vld [vmem:[%s1595_s17 + $0x70] sm:$0xff]  ;;  %v1692_v61 = vld [vmem:[%s1800_s3] ss:$0 sm:$0xff]  ;;  %v913_v1 = vld [vmem:[#allocation2 + $0x18] sm:$0xff] }
 0x223   : > { %966 = vperm.xlu1 %1410, %v897_v46   ;;  %956 = vperm.xlu0 %1409, %v895_v47   ;;  %v912_v60 = vld [vmem:[#allocation2 + $0x10] sm:$0xff]  ;;  %v910_v62 = vld [vmem:[#allocation2] sm:$0xff]  ;;  %v911_v2 = vld [vmem:[#allocation2 + $0x8] sm:$0xff]  ;;  %v936_v19 = vadd.f32 %v1692_v61, %v913_v1 }
 0x224   : > { %v935_v63 = vadd.f32 %v1692_v61, %v912_v60  ;;  %v933_v0 = vadd.f32 %v1692_v61, %v910_v62  ;;  %v880_v3 = vld [vmem:[%s1600_s19 + $0x10] sm:$0xff]  ;;  %v878_v4 = vld [vmem:[%s1600_s19] sm:$0xff]  ;;  %v881_v7 = vld [vmem:[%s1600_s19 + $0x18] sm:$0xff]  ;;  %v934_v20 = vadd.f32 %v1692_v61, %v911_v2 }
 0x225   : > { %v879_v8 = vld [vmem:[%s1600_s19 + $0x8] sm:$0xff]  ;;  %v914_v11 = vld [vmem:[#allocation2 + $0x20] sm:$0xff]  ;;  %v885_v13 = vld [vmem:[%s1600_s19 + $0x38] sm:$0xff] }
 0x226   : > { %v915_v9 = vld [vmem:[#allocation2 + $0x28] sm:$0xff]  ;;  %v882_v12 = vld [vmem:[%s1600_s19 + $0x20] sm:$0xff]  ;;  %v884_v14 = vld [vmem:[%s1600_s19 + $0x30] sm:$0xff]  ;;  %v937_v34 = vadd.f32 %v1692_v61, %v914_v11 }
 0x227   : > { %976 = vperm.xlu1 %1410, %v899_v48   ;;  %971 = vperm.xlu0 %1409, %v898_v49   ;;  %v883_v10 = vld [vmem:[%s1600_s19 + $0x28] sm:$0xff]  ;;  %v886_v16 = vld [vmem:[%s1600_s19 + $0x40] sm:$0xff]  ;;  %v1709_v21 = vld [vmem:[%s1600_s19 + $0x58] sm:$0xff]  ;;  %v938_v33 = vadd.f32 %v1692_v61, %v915_v9 }
 0x228   : > { %v887_v15 = vld [vmem:[%s1600_s19 + $0x48] sm:$0xff]  ;;  %v1712_v22 = vld [vmem:[%s1600_s19 + $0x50] sm:$0xff]  ;;  %v1718_v24 = vld [vmem:[%s1600_s19 + $0x60] sm:$0xff] }
 0x229   : > { %v1715_v23 = vld [vmem:[%s1600_s19 + $0x68] sm:$0xff]  ;;  %v1721_v25 = vld [vmem:[%s1600_s19 + $0x78] sm:$0xff]  ;;  %v1724_v26 = vld [vmem:[%s1600_s19 + $0x70] sm:$0xff] }
 0x22a   : > { %v917_v35 = vld [vmem:[#allocation2 + $0x38] sm:$0xff]  ;;  %v916_v36 = vld [vmem:[#allocation2 + $0x30] sm:$0xff]  ;;  %v919_v45 = vld [vmem:[#allocation2 + $0x48] sm:$0xff] }
 0x22b   : > { %986 = vperm.xlu1 %1410, %v901_v50   ;;  %981 = vperm.xlu0 %1409, %v900_v51   ;;  %v940_v43 = vadd.f32 %v1692_v61, %v917_v35  ;;  %v939_v44 = vadd.f32 %v1692_v61, %v916_v36  ;;  %v918_v46 = vld [vmem:[#allocation2 + $0x40] sm:$0xff]  ;;  %v923_v2 = vld [vmem:[#allocation2 + $0x68] sm:$0xff] }
 0x22f   : > { %996 = vperm.xlu1 %1410, %v903_v52   ;;  %991 = vperm.xlu0 %1409, %v902_v53   ;;  %v942_v53 = vadd.f32 %v1692_v61, %v919_v45 }
 0x233   : > { %1006 = vperm.xlu1 %1410, %v905_v54   ;;  %1001 = vperm.xlu0 %1409, %v904_v55   ;;  %v941_v54 = vadd.f32 %v1692_v61, %v918_v46  ;;  %v921_v55 = vld [vmem:[#allocation2 + $0x58] sm:$0xff] }
 0x237   : > { %1016 = vperm.xlu1 %1410, %v907_v56   ;;  %1011 = vperm.xlu0 %1409, %v906_v57   ;;  %v920_v56 = vld [vmem:[#allocation2 + $0x50] sm:$0xff] }
 0x238   : > { %v943_v1 = vadd.f32 %v1692_v61, %v920_v56 }
 0x23b   : > { %1026 = vperm.xlu1 %1410, %v909_v58   ;;  %1021 = vperm.xlu0 %1409, %v908_v59  }
 0x29a   : > { %v962_v5 = vpop.permute.xlu1 %961  ;;  %v952_v6 = vpop.permute.xlu0 %951 }
 0x29b   : > { %v1031_v17 = vmul.f32 %v962_v5, %v935_v63  ;;  %v1029_v18 = vmul.f32 %v952_v6, %v933_v0  ;;  %v944_v0 = vadd.f32 %v1692_v61, %v921_v55 }
 0x29d   : > { %v1047_v27 = vadd.f32 %v1031_v17, %v880_v3  ;;  %v1045_v28 = vadd.f32 %v1029_v18, %v878_v4  ;;  %v922_v3 = vld [vmem:[#allocation2 + $0x60] sm:$0xff] }
 0x29e   : > { %v967_v29 = vpop.permute.xlu1 %966  ;;  %v957_v30 = vpop.permute.xlu0 %956  ;;  %v945_v11 = vadd.f32 %v1692_v61, %v922_v3 }
 0x29f   : > { %v1032_v31 = vmul.f32 %v967_v29, %v936_v19  ;;  %v1030_v32 = vmul.f32 %v957_v30, %v934_v20  ;;  %1061 = vst.msk [vmem:[%s1605_s30] sm:$0xff] %vm857_vm2, %v1045_v28  ;;  %1063 = vst.msk [vmem:[%s1605_s30 + $0x10] sm:$0xff] %vm857_vm2, %v1047_v27 }
 0x2a1   : > { %v1048_v37 = vadd.f32 %v1032_v31, %v881_v7  ;;  %v1046_v38 = vadd.f32 %v1030_v32, %v879_v8 }
 0x2a2   : > { %v977_v39 = vpop.permute.xlu1 %976  ;;  %v972_v40 = vpop.permute.xlu0 %971 }
 0x2a3   : > { %v1034_v41 = vmul.f32 %v977_v39, %v938_v33  ;;  %v1033_v42 = vmul.f32 %v972_v40, %v937_v34  ;;  %1062 = vst.msk [vmem:[%s1605_s30 + $0x8] sm:$0xff] %vm857_vm2, %v1046_v38  ;;  %1064 = vst.msk [vmem:[%s1605_s30 + $0x18] sm:$0xff] %vm857_vm2, %v1048_v37 }
 0x2a5   : > { %v1050_v47 = vadd.f32 %v1034_v41, %v883_v10  ;;  %v1049_v48 = vadd.f32 %v1033_v42, %v882_v12  ;;  %v946_v10 = vadd.f32 %v1692_v61, %v923_v2  ;;  %v925_v12 = vld [vmem:[#allocation2 + $0x78] sm:$0xff] }
 0x2a6   : > { %v987_v49 = vpop.permute.xlu1 %986  ;;  %v982_v50 = vpop.permute.xlu0 %981  ;;  %v948_v20 = vadd.f32 %v1692_v61, %v925_v12 }
 0x2a7   : > { %v1036_v51 = vmul.f32 %v987_v49, %v940_v43  ;;  %v1035_v52 = vmul.f32 %v982_v50, %v939_v44  ;;  %1065 = vst.msk [vmem:[%s1605_s30 + $0x20] sm:$0xff] %vm857_vm2, %v1049_v48  ;;  %1066 = vst.msk [vmem:[%s1605_s30 + $0x28] sm:$0xff] %vm857_vm2, %v1050_v47 }
 0x2a9   : > { %v1052_v57 = vadd.f32 %v1036_v51, %v885_v13  ;;  %v1051_v58 = vadd.f32 %v1035_v52, %v884_v14  ;;  %v924_v13 = vld [vmem:[#allocation2 + $0x70] sm:$0xff] }
 0x2aa   : > { %v997_v59 = vpop.permute.xlu1 %996  ;;  %v992_v60 = vpop.permute.xlu0 %991  ;;  %v947_v27 = vadd.f32 %v1692_v61, %v924_v13 }
 0x2ab   : > { %v1038_v62 = vmul.f32 %v997_v59, %v942_v53  ;;  %v1037_v63 = vmul.f32 %v992_v60, %v941_v54  ;;  %1067 = vst.msk [vmem:[%s1605_s30 + $0x30] sm:$0xff] %vm857_vm2, %v1051_v58  ;;  %1068 = vst.msk [vmem:[%s1605_s30 + $0x38] sm:$0xff] %vm857_vm2, %v1052_v57 }
 0x2ad   : > { %v1054_v4 = vadd.f32 %v1038_v62, %v887_v15  ;;  %v1053_v5 = vadd.f32 %v1037_v63, %v886_v16 }
 0x2ae   : > { %v1007_v6 = vpop.permute.xlu1 %1006  ;;  %v1002_v7 = vpop.permute.xlu0 %1001 }
 0x2af   : > { %v1040_v8 = vmul.f32 %v1007_v6, %v944_v0  ;;  %v1039_v9 = vmul.f32 %v1002_v7, %v943_v1  ;;  %1069 = vst.msk [vmem:[%s1605_s30 + $0x40] sm:$0xff] %vm857_vm2, %v1053_v5  ;;  %1070 = vst.msk [vmem:[%s1605_s30 + $0x48] sm:$0xff] %vm857_vm2, %v1054_v4 }
 0x2b1   : > { %v1056_v14 = vadd.f32 %v1040_v8, %v1709_v21  ;;  %v1055_v15 = vadd.f32 %v1039_v9, %v1712_v22 }
 0x2b2   : > { %v1017_v16 = vpop.permute.xlu1 %1016  ;;  %v1012_v17 = vpop.permute.xlu0 %1011 }
 0x2b3   : > { %v1042_v18 = vmul.f32 %v1017_v16, %v946_v10  ;;  %v1041_v19 = vmul.f32 %v1012_v17, %v945_v11  ;;  %1071 = vst.msk [vmem:[%s1605_s30 + $0x50] sm:$0xff] %vm857_vm2, %v1055_v15  ;;  %1072 = vst.msk [vmem:[%s1605_s30 + $0x58] sm:$0xff] %vm857_vm2, %v1056_v14 }
 0x2b5   : > { %v1058_v21 = vadd.f32 %v1042_v18, %v1715_v23  ;;  %v1057_v28 = vadd.f32 %v1041_v19, %v1718_v24 }
 0x2b6   : > { %v1027_v22 = vpop.permute.xlu1 %1026  ;;  %v1022_v29 = vpop.permute.xlu0 %1021 }
 0x2b7   : > { %v1044_v30 = vmul.f32 %v1027_v22, %v948_v20  ;;  %v1043_v31 = vmul.f32 %v1022_v29, %v947_v27  ;;  %1073 = vst.msk [vmem:[%s1605_s30 + $0x60] sm:$0xff] %vm857_vm2, %v1057_v28  ;;  %1074 = vst.msk [vmem:[%s1605_s30 + $0x68] sm:$0xff] %vm857_vm2, %v1058_v21 }
 0x2b9   : > { %v1060_v32 = vadd.f32 %v1044_v30, %v1721_v25  ;;  %v1059_v61 = vadd.f32 %v1043_v31, %v1724_v26 }
 0x2bb   : > { %1075 = vst.msk [vmem:[%s1605_s30 + $0x70] sm:$0xff] %vm857_vm2, %v1059_v61  ;;  %1076 = vst.msk [vmem:[%s1605_s30 + $0x78] sm:$0xff] %vm857_vm2, %v1060_v32 }
 0x2bc PF: > { %s16_s27 = sadd.s32 1, %s1465_s27   ;;  %s1804_s21 = smov %s1445_s22 }
 0x2bd   : > { %p13_p0 = scmp.ge.s32.totalorder %s16_s27, 6   ;;  %s1805_s22 = smov %s1555_s10 }
 0x2be   : > { %s1806_s23 = smov %s1457_s25  ;;  %s1807_s24 = smov %s1461_s26 }
 0x2bf   : > { %s1808_s25 = smov %s1811_s28  ;;  %s1809_s26 = smov %s1815_s29 }
 0x2c0   :  { %15 = sbr.rel (!%p13_p0) target bundleno = 4 (0x4), region = 137 }

</bundles_post_ra>
